<compile_context>
chip_gen: v7x
topology: tpu7x:2x2x1
jax: 0.10.0
libtpu: 0.0.40
codegen_flags: <defaults>
</compile_context>

<pallas_src>
from functools import partial

import numpy as np
import jax
import jax.numpy as jnp
from jax.experimental import pallas as pl
from jax.experimental.pallas import tpu as pltpu

# ---- sizes --------------------------------------------------------------
B = 256      # batch
D = 8        # data dimension
DH = 4       # per-dimension features produced by the exclusive (hollow) net
H_EX = 32    # hidden width of each exclusive-net branch
H_DW = 32    # hidden width of the dimwise net
NEX = 2 * H_EX          # fused exclusive-net hidden width
NIN1 = NEX + D          # rows of the fused dimwise layer-1 input


# ---- Pallas kernel ------------------------------------------------------
def _diffeq_exact_trace_kernel(
    t_ref, xt_ref,
    w_ex1x, w_ex1t, b_ex1, w_ex2, b_ex2,          # fused exclusive net (transposed)
    w1f, w1t, c1, tan1, w2, c2, w3, c3,           # block-diag dimwise net (w_ex3 folded in)
    y_ref, jac_ref,
    in1_scr, vt_scr,
):
    xt = xt_ref[...]                       # (D, BT), batch on lanes
    bt = xt.shape[1]
    t = t_ref[0]

    def dot(a, b):
        return jnp.dot(a, b, preferred_element_type=jnp.float32)

    # --- exclusive (hollow) net: two opposite-ordering MADE MLPs fused into
    #     one 2-matmul MLP.  The t input is a rank-1 scalar*vector term (no
    #     lane concat); the output layer has been folded into w1f on the host.
    z = dot(w_ex1x[...], xt) + t * w_ex1t[...] + b_ex1[...]    # (2*H_EX, BT)
    a = jnp.tanh(z)
    in1_scr[NEX:, :] = xt                                       # xt rows of layer-1 input
    in1_scr[:NEX, :] = jnp.tanh(dot(w_ex2[...], a) + b_ex2[...])

    # --- dimwise net, all D dims at once via block-diagonal weights, plus the
    #     exact diagonal Jacobian as a hand-written forward-mode JVP (tangent
    #     w.r.t. the x_i slot of each per-dimension block).
    z1 = dot(w1f[...], in1_scr[...]) + t * w1t[...] + c1[...]   # (D*H_DW, BT)
    a1 = jnp.tanh(z1)
    vt_scr[:, :bt] = a1                                         # value half
    vt_scr[:, bt:] = (1.0 - a1 * a1) * tan1[...]                # tangent half

    s2 = dot(w2[...], vt_scr[...])                              # (D*H_DW, 2*BT)
    a2 = jnp.tanh(s2[:, :bt] + c2[...])
    vt_scr[:, :bt] = a2
    vt_scr[:, bt:] = (1.0 - a2 * a2) * s2[:, bt:]

    s3 = dot(w3[...], vt_scr[...])                              # (D, 2*BT)
    y_ref[...] = s3[:, :bt] + c3[...]       # dense (D, BT) stores, no lane masking
    jac_ref[...] = s3[:, bt:]


# ---- wrapper ------------------------------------------------------------
def _pick_bt(batch):
    """Two 128-wide tiles (one per TensorCore) only on v7x; a single bigger
    tile on v5e/v6e, where a second grid step is pure per-step overhead."""
    kind = ""
    try:
        kind = jax.devices()[0].device_kind.lower()
    except Exception:
        pass
    two_tc = ("v7" in kind) or ("7x" in kind)
    if two_tc and batch >= 2 * 128:
        return 128
    return int(min(256, pl.cdiv(max(batch, 1), 128) * 128))


@partial(jax.jit, static_argnames=("bt",))
def diffeq_exact_trace(t_arr, x, kernel_params, bt):
    """x: (B, D) -> (y, jac), each (B, D).  Boundary transposes / padding fuse
    into this jit; inside an ODE loop keep the state feature-major instead."""
    b, d = x.shape
    b_pad = pl.cdiv(b, bt) * bt
    if b_pad != b:
        xt = jnp.zeros((d, b_pad), jnp.float32).at[:, :b].set(x.T)
    else:
        xt = x.T
    grid = (b_pad // bt,)

    wspec = pl.BlockSpec(memory_space=pltpu.MemorySpace.VMEM)
    in_specs = (
        [pl.BlockSpec(memory_space=pltpu.MemorySpace.SMEM)]   # t scalar
        + [pl.BlockSpec((d, bt), lambda i: (0, i))]           # x batch tile
        + [wspec] * len(kernel_params)                        # resident weights
    )
    out_specs = (
        pl.BlockSpec((d, bt), lambda i: (0, i)),
        pl.BlockSpec((d, bt), lambda i: (0, i)),
    )
    out_shape = (
        jax.ShapeDtypeStruct((d, b_pad), jnp.float32),
        jax.ShapeDtypeStruct((d, b_pad), jnp.float32),
    )
    y_t, jac_t = pl.pallas_call(
        _diffeq_exact_trace_kernel,
        grid=grid,
        in_specs=in_specs,
        out_specs=out_specs,
        out_shape=out_shape,
        scratch_shapes=[
            pltpu.VMEM((NIN1, bt), jnp.float32),         # fused layer-1 input
            pltpu.VMEM((D * H_DW, 2 * bt), jnp.float32), # stacked value/tangent
        ],
        compiler_params=pltpu.CompilerParams(
            dimension_semantics=("parallel",)),          # 2 steps only on v7x
    )(t_arr, xt, *kernel_params)
    return y_t[:, :b].T, jac_t[:, :b].T                  # back to stribor's (..., dim)


# ---- deterministic parameter construction -------------------------------
def _made_masks(dim, d_h, hidden_dims, reverse):
    """MADE-style masks so output block i never depends on x_i (t = degree 0)."""
    order = np.arange(dim, 0, -1) if reverse else np.arange(1, dim + 1)
    in_deg = np.concatenate([[0], order])
    out_deg = np.repeat(order, d_h)
    masks, prev = [], in_deg
    for h in hidden_dims:
        deg = (np.arange(h) % max(dim - 1, 1)) + 1
        masks.append((deg[None, :] >= prev[:, None]).astype(np.float32))
        prev = deg
    masks.append((out_deg[None, :] > prev[:, None]).astype(np.float32))
    return masks


def _linear_init(key, fan_in, fan_out):
    k1, k2 = jax.random.split(key)
    bound = 1.0 / np.sqrt(fan_in)
    w = jax.random.uniform(k1, (fan_in, fan_out), jnp.float32, -bound, bound)
    b = jax.random.uniform(k2, (1, fan_out), jnp.float32, -bound, bound)
    return w, b


def init_params(key):
    """Raw 'module' parameters (two masked exclusive MLPs + dimwise MLP)."""
    dims_ex = [(1 + D, H_EX), (H_EX, H_EX), (H_EX, D * DH)]
    dims_dw = [(2 + DH, H_DW), (H_DW, H_DW), (H_DW, 1)]
    params = []
    for reverse in (False, True):
        masks = _made_masks(D, DH, [H_EX, H_EX], reverse)
        for (fi, fo), m in zip(dims_ex, masks):
            key, sub = jax.random.split(key)
            w, b = _linear_init(sub, fi, fo)
            params += [w * jnp.asarray(m), b]       # pre-masked weights (glue)
    for fi, fo in dims_dw:
        key, sub = jax.random.split(key)
        w, b = _linear_init(sub, fi, fo)
        params += [w, b]
    return tuple(params), key


def build_kernel_params(params, bt):
    """Host-side fusion: exact algebraic repackaging of the module weights into
    the fused / block-diagonal / transposed layout consumed by the kernel."""
    (wa1, ba1, wa2, ba2, wa3, ba3,
     wb1, bb1, wb2, bb2, wb3, bb3,
     v1, c1, v2, c2, v3, c3) = params
    blkd = jax.scipy.linalg.block_diag
    hp = jax.lax.Precision.HIGHEST
    T = jnp.transpose

    # exclusive net: fuse the two opposite-ordering branches into one MLP
    w_ex1 = jnp.concatenate([wa1, wb1], axis=1)      # (1+D, 2*H_EX)
    b_ex1 = jnp.concatenate([ba1, bb1], axis=1)
    w_ex2 = blkd(wa2, wb2)                           # (2*H_EX, 2*H_EX)
    b_ex2 = jnp.concatenate([ba2, bb2], axis=1)
    w_ex3 = jnp.concatenate([wa3, wb3], axis=0)      # (2*H_EX, D*DH)
    b_ex3 = ba3 + bb3                                # (1, D*DH)

    # dimwise net: batch all D dimensions with block-diagonal weights
    w1h = blkd(*([v1[2:]] * D))                      # (D*DH, D*H_DW)
    w1x = blkd(*([v1[1:2]] * D))                     # (D,    D*H_DW)
    w1t = jnp.tile(v1[0:1], (1, D))                  # (1,    D*H_DW)
    c1t = jnp.tile(c1, (1, D))
    tan1 = jnp.tile(v1[1:2], (1, D))                 # layer-1 tangent of the x_i slot
    w2b = blkd(*([v2] * D))                          # (D*H_DW, D*H_DW)
    c2t = jnp.tile(c2, (1, D))
    w3b = blkd(*([v3] * D))                          # (D*H_DW, D)
    c3t = jnp.tile(c3, (1, D))                       # (1, D)

    # fold the exclusive-net output layer into dimwise layer 1 (exact identity;
    # host matmuls at HIGHEST precision).
    w1a = jnp.dot(T(w1h), T(w_ex3), precision=hp)             # (D*H_DW, 2*H_EX)
    c1f = T(c1t) + jnp.dot(T(w1h), T(b_ex3), precision=hp)    # (D*H_DW, 1)
    w1f = jnp.concatenate([w1a, T(w1x)], axis=1)              # (D*H_DW, 2*H_EX + D)

    def bcast(col):   # pre-broadcast (N,1) columns to lane-dense (N, bt) operands
        return jnp.broadcast_to(col, (col.shape[0], bt))

    return (
        T(w_ex1[1:]),            # (2*H_EX, D)   x rows of exclusive layer 1
        bcast(T(w_ex1[0:1])),    # (2*H_EX, bt)  t row (rank-1 term)
        bcast(T(b_ex1)),         # (2*H_EX, bt)
        T(w_ex2),                # (2*H_EX, 2*H_EX)
        bcast(T(b_ex2)),         # (2*H_EX, bt)
        w1f,                     # (D*H_DW, 2*H_EX + D)
        bcast(T(w1t)),           # (D*H_DW, bt)
        bcast(c1f),              # (D*H_DW, bt)
        bcast(T(tan1)),          # (D*H_DW, bt)
        T(w2b),                  # (D*H_DW, D*H_DW)
        bcast(T(c2t)),           # (D*H_DW, bt)
        T(w3b),                  # (D, D*H_DW)
        bcast(T(c3t)),           # (D, bt)
    )


# ---- pure-JAX reference (independent diag-Jacobian via jax.jvp) ---------
def reference(t_val, x, params):
    (wa1, ba1, wa2, ba2, wa3, ba3,
     wb1, bb1, wb2, bb2, wb3, bb3,
     v1, c1, v2, c2, v3, c3) = params
    hp = jax.lax.Precision.HIGHEST

    tcol = jnp.full((x.shape[0], 1), t_val, dtype=jnp.float32)
    inp = jnp.concatenate([tcol, x], axis=1)

    def mlp(u, W1, b1, W2, b2, W3, b3):
        a = jnp.tanh(jnp.dot(u, W1, precision=hp) + b1)
        a = jnp.tanh(jnp.dot(a, W2, precision=hp) + b2)
        return jnp.dot(a, W3, precision=hp) + b3

    h = (mlp(inp, wa1, ba1, wa2, ba2, wa3, ba3)
         + mlp(inp, wb1, bb1, wb2, bb2, wb3, bb3))
    h = h.reshape(x.shape[0], x.shape[1], -1)

    def dimwise(u):
        a = jnp.tanh(jnp.dot(u, v1, precision=hp) + c1[0])
        a = jnp.tanh(jnp.dot(a, v2, precision=hp) + c2[0])
        return (jnp.dot(a, v3, precision=hp) + c3[0])[0]

    def per_elem(xi, hi):
        u = jnp.concatenate([jnp.asarray([t_val], jnp.float32), xi[None], hi])
        tan = jnp.zeros_like(u).at[1].set(1.0)
        return jax.jvp(dimwise, (u,), (tan,))

    return jax.vmap(jax.vmap(per_elem))(x, h)


# ---- main ---------------------------------------------------------------
if __name__ == "__main__":
    key = jax.random.PRNGKey(0)
    params, key = init_params(key)
    bt = _pick_bt(B)
    kernel_params = build_kernel_params(params, bt)

    key, kx = jax.random.split(key)
    x = jax.random.normal(kx, (B, D), dtype=jnp.float32)
    t_val = 0.5
    t_arr = jnp.full((1,), t_val, dtype=jnp.float32)

    y, jac = diffeq_exact_trace(t_arr, x, kernel_params, bt)
    jax.block_until_ready((y, jac))

    y_ref, jac_ref = reference(t_val, x, params)
    np.testing.assert_allclose(np.asarray(y), np.asarray(y_ref), rtol=2e-3, atol=5e-4)
    np.testing.assert_allclose(np.asarray(jac), np.asarray(jac_ref), rtol=2e-3, atol=5e-4)

    print("KERNEL_OK")
</pallas_src>

<mosaic_0001>
module attributes {stable_mosaic.version = 11 : i64} {
  func.func @_diffeq_exact_trace_kernel(%arg0: i32, %arg1: memref<1xf32, #tpu.memory_space<smem>>, %arg2: memref<8x256xf32, #tpu.memory_space<vmem>>, %arg3: memref<64x8xf32, #tpu.memory_space<vmem>>, %arg4: memref<64x256xf32, #tpu.memory_space<vmem>>, %arg5: memref<64x256xf32, #tpu.memory_space<vmem>>, %arg6: memref<64x64xf32, #tpu.memory_space<vmem>>, %arg7: memref<64x256xf32, #tpu.memory_space<vmem>>, %arg8: memref<256x72xf32, #tpu.memory_space<vmem>>, %arg9: memref<256x256xf32, #tpu.memory_space<vmem>>, %arg10: memref<256x256xf32, #tpu.memory_space<vmem>>, %arg11: memref<256x256xf32, #tpu.memory_space<vmem>>, %arg12: memref<256x256xf32, #tpu.memory_space<vmem>>, %arg13: memref<256x256xf32, #tpu.memory_space<vmem>>, %arg14: memref<8x256xf32, #tpu.memory_space<vmem>>, %arg15: memref<8x256xf32, #tpu.memory_space<vmem>>, %arg16: memref<8x256xf32, #tpu.memory_space<vmem>>, %arg17: memref<8x256xf32, #tpu.memory_space<vmem>>, %arg18: memref<72x256xf32, #tpu.memory_space<vmem>>, %arg19: memref<256x512xf32, #tpu.memory_space<vmem>>) attributes {dimension_semantics = [#tpu.dimension_semantics<parallel>], iteration_bounds = array<i64: 1>, scalar_prefetch = 0 : i64, scratch_operands = 2 : i64, tpu.core_type = #tpu.core_type<tc>, window_params = [{transform_indices = @transform_0, window_bounds = array<i64: 1>}, {transform_indices = @transform_1, window_bounds = array<i64: 8, 256>}, {pipeline_mode = #tpu.pipeline_mode<synchronous>, transform_indices = @transform_2, window_bounds = array<i64: 64, 8>}, {pipeline_mode = #tpu.pipeline_mode<synchronous>, transform_indices = @transform_3, window_bounds = array<i64: 64, 256>}, {pipeline_mode = #tpu.pipeline_mode<synchronous>, transform_indices = @transform_4, window_bounds = array<i64: 64, 256>}, {pipeline_mode = #tpu.pipeline_mode<synchronous>, transform_indices = @transform_5, window_bounds = array<i64: 64, 64>}, {pipeline_mode = #tpu.pipeline_mode<synchronous>, transform_indices = @transform_6, window_bounds = array<i64: 64, 256>}, {pipeline_mode = #tpu.pipeline_mode<synchronous>, transform_indices = @transform_7, window_bounds = array<i64: 256, 72>}, {pipeline_mode = #tpu.pipeline_mode<synchronous>, transform_indices = @transform_8, window_bounds = array<i64: 256, 256>}, {pipeline_mode = #tpu.pipeline_mode<synchronous>, transform_indices = @transform_9, window_bounds = array<i64: 256, 256>}, {pipeline_mode = #tpu.pipeline_mode<synchronous>, transform_indices = @transform_10, window_bounds = array<i64: 256, 256>}, {pipeline_mode = #tpu.pipeline_mode<synchronous>, transform_indices = @transform_11, window_bounds = array<i64: 256, 256>}, {pipeline_mode = #tpu.pipeline_mode<synchronous>, transform_indices = @transform_12, window_bounds = array<i64: 256, 256>}, {pipeline_mode = #tpu.pipeline_mode<synchronous>, transform_indices = @transform_13, window_bounds = array<i64: 8, 256>}, {pipeline_mode = #tpu.pipeline_mode<synchronous>, transform_indices = @transform_14, window_bounds = array<i64: 8, 256>}, {transform_indices = @transform_15, window_bounds = array<i64: 8, 256>}, {transform_indices = @transform_16, window_bounds = array<i64: 8, 256>}]} {
    %c0 = arith.constant 0 : index
    %c0_0 = arith.constant 0 : index
    %0 = vector.load %arg2[%c0, %c0_0] : memref<8x256xf32, #tpu.memory_space<vmem>>, vector<8x256xf32>
    %c0_1 = arith.constant 0 : index
    %1 = memref.load %arg1[%c0_1] : memref<1xf32, #tpu.memory_space<smem>>
    %c0_2 = arith.constant 0 : index
    %c0_3 = arith.constant 0 : index
    %2 = vector.load %arg3[%c0_2, %c0_3] : memref<64x8xf32, #tpu.memory_space<vmem>>, vector<64x8xf32>
    %cst = arith.constant dense<0.000000e+00> : vector<64x256xf32>
    %3 = tpu.matmul %2, %0, %cst {dimension_numbers = #tpu.dot_dimension_numbers<[1], [0], [0], [1], [0, 0, 1, 1], [], []>} : vector<64x8xf32>, vector<8x256xf32>, vector<64x256xf32> -> vector<64x256xf32>
    %c0_4 = arith.constant 0 : index
    %c0_5 = arith.constant 0 : index
    %4 = vector.load %arg4[%c0_4, %c0_5] : memref<64x256xf32, #tpu.memory_space<vmem>>, vector<64x256xf32>
    %5 = vector.broadcast %1 : f32 to vector<64x256xf32>
    %6 = arith.mulf %5, %4 : vector<64x256xf32>
    %7 = arith.addf %3, %6 : vector<64x256xf32>
    %c0_6 = arith.constant 0 : index
    %c0_7 = arith.constant 0 : index
    %8 = vector.load %arg5[%c0_6, %c0_7] : memref<64x256xf32, #tpu.memory_space<vmem>>, vector<64x256xf32>
    %9 = arith.addf %7, %8 : vector<64x256xf32>
    %10 = math.tanh %9 : vector<64x256xf32>
    %c64 = arith.constant 64 : index
    %c0_8 = arith.constant 0 : index
    %11 = vector.load %arg18[%c64, %c0_8] : memref<72x256xf32, #tpu.memory_space<vmem>>, vector<8x256xf32>
    tpu.vector_store %arg18[%c64, %c0_8], %0 {strides = array<i32>} : memref<72x256xf32, #tpu.memory_space<vmem>>, vector<8x256xf32>,
    %c0_9 = arith.constant 0 : index
    %c0_10 = arith.constant 0 : index
    %12 = vector.load %arg6[%c0_9, %c0_10] : memref<64x64xf32, #tpu.memory_space<vmem>>, vector<64x64xf32>
    %cst_11 = arith.constant dense<0.000000e+00> : vector<64x256xf32>
    %13 = tpu.matmul %12, %10, %cst_11 {dimension_numbers = #tpu.dot_dimension_numbers<[1], [0], [0], [1], [0, 0, 1, 1], [], []>} : vector<64x64xf32>, vector<64x256xf32>, vector<64x256xf32> -> vector<64x256xf32>
    %c0_12 = arith.constant 0 : index
    %c0_13 = arith.constant 0 : index
    %14 = vector.load %arg7[%c0_12, %c0_13] : memref<64x256xf32, #tpu.memory_space<vmem>>, vector<64x256xf32>
    %15 = arith.addf %13, %14 : vector<64x256xf32>
    %16 = math.tanh %15 : vector<64x256xf32>
    %c0_14 = arith.constant 0 : index
    %c0_15 = arith.constant 0 : index
    %17 = vector.load %arg18[%c0_14, %c0_15] : memref<72x256xf32, #tpu.memory_space<vmem>>, vector<64x256xf32>
    tpu.vector_store %arg18[%c0_14, %c0_15], %16 {strides = array<i32>} : memref<72x256xf32, #tpu.memory_space<vmem>>, vector<64x256xf32>,
    %c0_16 = arith.constant 0 : index
    %c0_17 = arith.constant 0 : index
    %18 = vector.load %arg8[%c0_16, %c0_17] : memref<256x72xf32, #tpu.memory_space<vmem>>, vector<256x72xf32>
    %c0_18 = arith.constant 0 : index
    %c0_19 = arith.constant 0 : index
    %19 = vector.load %arg18[%c0_18, %c0_19] : memref<72x256xf32, #tpu.memory_space<vmem>>, vector<72x256xf32>
    %cst_20 = arith.constant dense<0.000000e+00> : vector<256x256xf32>
    %20 = tpu.matmul %18, %19, %cst_20 {dimension_numbers = #tpu.dot_dimension_numbers<[1], [0], [0], [1], [0, 0, 1, 1], [], []>} : vector<256x72xf32>, vector<72x256xf32>, vector<256x256xf32> -> vector<256x256xf32>
    %c0_21 = arith.constant 0 : index
    %c0_22 = arith.constant 0 : index
    %21 = vector.load %arg9[%c0_21, %c0_22] : memref<256x256xf32, #tpu.memory_space<vmem>>, vector<256x256xf32>
    %22 = vector.broadcast %1 : f32 to vector<256x256xf32>
    %23 = arith.mulf %22, %21 : vector<256x256xf32>
    %24 = arith.addf %20, %23 : vector<256x256xf32>
    %c0_23 = arith.constant 0 : index
    %c0_24 = arith.constant 0 : index
    %25 = vector.load %arg10[%c0_23, %c0_24] : memref<256x256xf32, #tpu.memory_space<vmem>>, vector<256x256xf32>
    %26 = arith.addf %24, %25 : vector<256x256xf32>
    %27 = math.tanh %26 : vector<256x256xf32>
    %c0_25 = arith.constant 0 : index
    %c0_26 = arith.constant 0 : index
    %28 = vector.load %arg19[%c0_25, %c0_26] : memref<256x512xf32, #tpu.memory_space<vmem>>, vector<256x256xf32>
    tpu.vector_store %arg19[%c0_25, %c0_26], %27 {strides = array<i32>} : memref<256x512xf32, #tpu.memory_space<vmem>>, vector<256x256xf32>,
    %29 = arith.mulf %27, %27 : vector<256x256xf32>
    %cst_27 = arith.constant 1.000000e+00 : f32
    %30 = vector.broadcast %cst_27 : f32 to vector<256x256xf32>
    %31 = arith.subf %30, %29 : vector<256x256xf32>
    %c0_28 = arith.constant 0 : index
    %c0_29 = arith.constant 0 : index
    %32 = vector.load %arg11[%c0_28, %c0_29] : memref<256x256xf32, #tpu.memory_space<vmem>>, vector<256x256xf32>
    %33 = arith.mulf %31, %32 : vector<256x256xf32>
    %c0_30 = arith.constant 0 : index
    %c256 = arith.constant 256 : index
    %34 = vector.load %arg19[%c0_30, %c256] : memref<256x512xf32, #tpu.memory_space<vmem>>, vector<256x256xf32>
    tpu.vector_store %arg19[%c0_30, %c256], %33 {strides = array<i32>} : memref<256x512xf32, #tpu.memory_space<vmem>>, vector<256x256xf32>,
    %c0_31 = arith.constant 0 : index
    %c0_32 = arith.constant 0 : index
    %35 = vector.load %arg12[%c0_31, %c0_32] : memref<256x256xf32, #tpu.memory_space<vmem>>, vector<256x256xf32>
    %c0_33 = arith.constant 0 : index
    %c0_34 = arith.constant 0 : index
    %36 = vector.load %arg19[%c0_33, %c0_34] : memref<256x512xf32, #tpu.memory_space<vmem>>, vector<256x512xf32>
    %cst_35 = arith.constant dense<0.000000e+00> : vector<256x512xf32>
    %37 = tpu.matmul %35, %36, %cst_35 {dimension_numbers = #tpu.dot_dimension_numbers<[1], [0], [0], [1], [0, 0, 1, 1], [], []>} : vector<256x256xf32>, vector<256x512xf32>, vector<256x512xf32> -> vector<256x512xf32>
    %38 = vector.extract_strided_slice %37 {offsets = [0, 0], sizes = [256, 256], strides = [1, 1]} : vector<256x512xf32> to vector<256x256xf32>
    %c0_36 = arith.constant 0 : index
    %c0_37 = arith.constant 0 : index
    %39 = vector.load %arg13[%c0_36, %c0_37] : memref<256x256xf32, #tpu.memory_space<vmem>>, vector<256x256xf32>
    %40 = arith.addf %38, %39 : vector<256x256xf32>
    %41 = math.tanh %40 : vector<256x256xf32>
    %c0_38 = arith.constant 0 : index
    %c0_39 = arith.constant 0 : index
    %42 = vector.load %arg19[%c0_38, %c0_39] : memref<256x512xf32, #tpu.memory_space<vmem>>, vector<256x256xf32>
    tpu.vector_store %arg19[%c0_38, %c0_39], %41 {strides = array<i32>} : memref<256x512xf32, #tpu.memory_space<vmem>>, vector<256x256xf32>,
    %43 = arith.mulf %41, %41 : vector<256x256xf32>
    %cst_40 = arith.constant 1.000000e+00 : f32
    %44 = vector.broadcast %cst_40 : f32 to vector<256x256xf32>
    %45 = arith.subf %44, %43 : vector<256x256xf32>
    %46 = vector.extract_strided_slice %37 {offsets = [0, 256], sizes = [256, 256], strides = [1, 1]} : vector<256x512xf32> to vector<256x256xf32>
    %47 = arith.mulf %45, %46 : vector<256x256xf32>
    %c0_41 = arith.constant 0 : index
    %c256_42 = arith.constant 256 : index
    %48 = vector.load %arg19[%c0_41, %c256_42] : memref<256x512xf32, #tpu.memory_space<vmem>>, vector<256x256xf32>
    tpu.vector_store %arg19[%c0_41, %c256_42], %47 {strides = array<i32>} : memref<256x512xf32, #tpu.memory_space<vmem>>, vector<256x256xf32>,
    %c0_43 = arith.constant 0 : index
    %c0_44 = arith.constant 0 : index
    %49 = vector.load %arg14[%c0_43, %c0_44] : memref<8x256xf32, #tpu.memory_space<vmem>>, vector<8x256xf32>
    %c0_45 = arith.constant 0 : index
    %c0_46 = arith.constant 0 : index
    %50 = vector.load %arg19[%c0_45, %c0_46] : memref<256x512xf32, #tpu.memory_space<vmem>>, vector<256x512xf32>
    %cst_47 = arith.constant dense<0.000000e+00> : vector<8x512xf32>
    %51 = tpu.matmul %49, %50, %cst_47 {dimension_numbers = #tpu.dot_dimension_numbers<[1], [0], [0], [1], [0, 0, 1, 1], [], []>} : vector<8x256xf32>, vector<256x512xf32>, vector<8x512xf32> -> vector<8x512xf32>
    %52 = vector.extract_strided_slice %51 {offsets = [0, 0], sizes = [8, 256], strides = [1, 1]} : vector<8x512xf32> to vector<8x256xf32>
    %c0_48 = arith.constant 0 : index
    %c0_49 = arith.constant 0 : index
    %53 = vector.load %arg15[%c0_48, %c0_49] : memref<8x256xf32, #tpu.memory_space<vmem>>, vector<8x256xf32>
    %54 = arith.addf %52, %53 : vector<8x256xf32>
    %c0_50 = arith.constant 0 : index
    %c0_51 = arith.constant 0 : index
    %55 = vector.load %arg16[%c0_50, %c0_51] : memref<8x256xf32, #tpu.memory_space<vmem>>, vector<8x256xf32>
    tpu.vector_store %arg16[%c0_50, %c0_51], %54 {strides = array<i32>} : memref<8x256xf32, #tpu.memory_space<vmem>>, vector<8x256xf32>,
    %56 = vector.extract_strided_slice %51 {offsets = [0, 256], sizes = [8, 256], strides = [1, 1]} : vector<8x512xf32> to vector<8x256xf32>
    %c0_52 = arith.constant 0 : index
    %c0_53 = arith.constant 0 : index
    %57 = vector.load %arg17[%c0_52, %c0_53] : memref<8x256xf32, #tpu.memory_space<vmem>>, vector<8x256xf32>
    tpu.vector_store %arg17[%c0_52, %c0_53], %56 {strides = array<i32>} : memref<8x256xf32, #tpu.memory_space<vmem>>, vector<8x256xf32>,
    return
  }
  func.func @transform_0(%arg0: i32) -> i32 {
    %c0_i32 = arith.constant 0 : i32
    %c0_i32_0 = arith.constant 0 : i32
    return %c0_i32 : i32
  }
  func.func @transform_1(%arg0: i32) -> (i32, i32) {
    %c0_i32 = arith.constant 0 : i32
    %c0_i32_0 = arith.constant 0 : i32
    return %c0_i32, %arg0 : i32, i32
  }
  func.func @transform_2(%arg0: i32) -> (i32, i32) {
    %c0_i32 = arith.constant 0 : i32
    %c0_i32_0 = arith.constant 0 : i32
    %c0_i32_1 = arith.constant 0 : i32
    return %c0_i32, %c0_i32_0 : i32, i32
  }
  func.func @transform_3(%arg0: i32) -> (i32, i32) {
    %c0_i32 = arith.constant 0 : i32
    %c0_i32_0 = arith.constant 0 : i32
    %c0_i32_1 = arith.constant 0 : i32
    return %c0_i32, %c0_i32_0 : i32, i32
  }
  func.func @transform_4(%arg0: i32) -> (i32, i32) {
    %c0_i32 = arith.constant 0 : i32
    %c0_i32_0 = arith.constant 0 : i32
    %c0_i32_1 = arith.constant 0 : i32
    return %c0_i32, %c0_i32_0 : i32, i32
  }
  func.func @transform_5(%arg0: i32) -> (i32, i32) {
    %c0_i32 = arith.constant 0 : i32
    %c0_i32_0 = arith.constant 0 : i32
    %c0_i32_1 = arith.constant 0 : i32
    return %c0_i32, %c0_i32_0 : i32, i32
  }
  func.func @transform_6(%arg0: i32) -> (i32, i32) {
    %c0_i32 = arith.constant 0 : i32
    %c0_i32_0 = arith.constant 0 : i32
    %c0_i32_1 = arith.constant 0 : i32
    return %c0_i32, %c0_i32_0 : i32, i32
  }
  func.func @transform_7(%arg0: i32) -> (i32, i32) {
    %c0_i32 = arith.constant 0 : i32
    %c0_i32_0 = arith.constant 0 : i32
    %c0_i32_1 = arith.constant 0 : i32
    return %c0_i32, %c0_i32_0 : i32, i32
  }
  func.func @transform_8(%arg0: i32) -> (i32, i32) {
    %c0_i32 = arith.constant 0 : i32
    %c0_i32_0 = arith.constant 0 : i32
    %c0_i32_1 = arith.constant 0 : i32
    return %c0_i32, %c0_i32_0 : i32, i32
  }
  func.func @transform_9(%arg0: i32) -> (i32, i32) {
    %c0_i32 = arith.constant 0 : i32
    %c0_i32_0 = arith.constant 0 : i32
    %c0_i32_1 = arith.constant 0 : i32
    return %c0_i32, %c0_i32_0 : i32, i32
  }
  func.func @transform_10(%arg0: i32) -> (i32, i32) {
    %c0_i32 = arith.constant 0 : i32
    %c0_i32_0 = arith.constant 0 : i32
    %c0_i32_1 = arith.constant 0 : i32
    return %c0_i32, %c0_i32_0 : i32, i32
  }
  func.func @transform_11(%arg0: i32) -> (i32, i32) {
    %c0_i32 = arith.constant 0 : i32
    %c0_i32_0 = arith.constant 0 : i32
    %c0_i32_1 = arith.constant 0 : i32
    return %c0_i32, %c0_i32_0 : i32, i32
  }
  func.func @transform_12(%arg0: i32) -> (i32, i32) {
    %c0_i32 = arith.constant 0 : i32
    %c0_i32_0 = arith.constant 0 : i32
    %c0_i32_1 = arith.constant 0 : i32
    return %c0_i32, %c0_i32_0 : i32, i32
  }
  func.func @transform_13(%arg0: i32) -> (i32, i32) {
    %c0_i32 = arith.constant 0 : i32
    %c0_i32_0 = arith.constant 0 : i32
    %c0_i32_1 = arith.constant 0 : i32
    return %c0_i32, %c0_i32_0 : i32, i32
  }
  func.func @transform_14(%arg0: i32) -> (i32, i32) {
    %c0_i32 = arith.constant 0 : i32
    %c0_i32_0 = arith.constant 0 : i32
    %c0_i32_1 = arith.constant 0 : i32
    return %c0_i32, %c0_i32_0 : i32, i32
  }
  func.func @transform_15(%arg0: i32) -> (i32, i32) {
    %c0_i32 = arith.constant 0 : i32
    %c0_i32_0 = arith.constant 0 : i32
    return %c0_i32, %arg0 : i32, i32
  }
  func.func @transform_16(%arg0: i32) -> (i32, i32) {
    %c0_i32 = arith.constant 0 : i32
    %c0_i32_0 = arith.constant 0 : i32
    return %c0_i32, %arg0 : i32, i32
  }
}

</mosaic_0001>

<bundles_post_ra>
// kernel: diffeq_exact_trace.1
= control target key start
LH: loop header
LB: loop body
LE: loop exit
PB: predicated region body
PF: predicated region fallthrough
CT: control target
= control target key end

     0   :  { %s5368_s0 = inlined_call_operand.<no memory space> [shape: f32[1], index: 0, kind: input, shape index: {}]   ;;  %s5369_s1 = inlined_call_operand.hbm [shape: f32[8,256], index: 1, kind: input, shape index: {}]   ;;  %s5370_s2 = inlined_call_operand.vmem [shape: f32[64,8], index: 2, kind: input, shape index: {}]   ;;  %s5371_s3 = inlined_call_operand.hbm [shape: f32[64,256], index: 3, kind: input, shape index: {}]   ;;  %s5372_s4 = inlined_call_operand.hbm [shape: f32[64,256], index: 4, kind: input, shape index: {}]   ;;  %s5373_s5 = inlined_call_operand.hbm [shape: f32[64,64], index: 5, kind: input, shape index: {}]   ;;  %s5374_s6 = inlined_call_operand.hbm [shape: f32[64,256], index: 6, kind: input, shape index: {}]   ;;  %s5375_s7 = inlined_call_operand.vmem [shape: f32[256,72], index: 7, kind: input, shape index: {}]   ;;  %s5376_s8 = inlined_call_operand.hbm [shape: f32[256,256], index: 8, kind: input, shape index: {}]   ;;  %s5377_s9 = inlined_call_operand.hbm [shape: f32[256,256], index: 9, kind: input, shape index: {}]   ;;  %s5378_s10 = inlined_call_operand.vmem [shape: f32[256,256], index: 10, kind: input, shape index: {}]   ;;  %s5379_s11 = inlined_call_operand.hbm [shape: f32[256,256], index: 11, kind: input, shape index: {}]   ;;  %s5380_s12 = inlined_call_operand.hbm [shape: f32[256,256], index: 12, kind: input, shape index: {}]   ;;  %s5381_s13 = inlined_call_operand.hbm [shape: f32[8,256], index: 13, kind: input, shape index: {}]   ;;  %s5382_s14 = inlined_call_operand.hbm [shape: f32[8,256], index: 14, kind: input, shape index: {}]   ;;  %s5383_s15 = inlined_call_operand.hbm [shape: f32[8,256], index: 15, kind: output, shape index: {0}]   ;;  %s5384_s16 = inlined_call_operand.hbm [shape: f32[8,256], index: 16, kind: output, shape index: {1}]  }
   0x1   :  { %5411 = sst [smem:[#allocation56_spill]] %s5368_s0 }
   0x2   :  { %23 = vsyncpa [#allocation6], 0 }
   0x3   :  { %24 = vsyncpa [#allocation9], 0 }
   0x4   :  { %25 = vsyncpa [#allocation12], 0 }
   0x5   :  { %26 = vsyncpa [#allocation15], 0 }
   0x6   :  { %27 = vsyncpa [#allocation18], 0 }
   0x7   :  { %28 = vsyncpa [#allocation21], 0 }
   0x8   :  { %29 = vsyncpa [#allocation7], 0 }
   0x9   :  { %30 = vsyncpa [#allocation25], 0  ;;  %s4243_s21 = smov [#allocation8]   ;;  %s3941_s25 = scalar_lea.hbm %s5371_s3, 2048 }
   0xa   :  { %s50_s22 = sshll.u32 %s4243_s21, 4  ;;  %p3942_p0 = scmp.ne.s32.totalorder %s5371_s3, %s3941_s25  ;;  %s51_s22 = int_to_ptr.vmem [resolvable:$true] %s50_s22 }
   0xb   :  { %p3945_p1 = scmp.lt.u32.totalorder %s3941_s25, %s5371_s3 }
   0xd   :  { %p3947_p2 = pnand %p3945_p1, %p3942_p0 }
   0xf   :  { %3950 = shalt.err (!%p3947_p2)
}
  0x10   :  { %s3951_s30 = scalar_lea.vmem %s51_s22, 2048  ;;  %p3956_p4 = scmp.lt.s32.totalorder %s51_s22, %s51_s22 }
  0x11   :  { %p3952_p3 = scmp.ne.s32.totalorder %s51_s22, %s3951_s30  ;;  %p3957_p5 = scmp.lt.s32.totalorder %s3951_s30, %s3951_s30 }
  0x13   :  { %p3958_p6 = por %p3957_p5, %p3956_p4 }
  0x15   :  { %p3959_p7 = pnand %p3958_p6, %p3952_p3 }
  0x17   :  { %3962 = shalt.err (!%p3959_p7)
}
  0x18   :  { %s5385_s0 = smov 256   ;;  %s5387_s17 = smov 16  }
  0x19   :  { %56 = dma.hbm_to_vmem [thread:$0]  %s5371_s3, 2048, %s51_s22, [#allocation9], %s5385_s0, %s5385_s0, %s5387_s17  }
  0x1a   :  { %s4246_s20 = smov [#allocation11]   ;;  %s3963_s25 = scalar_lea.hbm %s5373_s5, 1024 }
  0x1b   :  { %s74_s21 = sshll.u32 %s4246_s20, 4  ;;  %p3964_p8 = scmp.ne.s32.totalorder %s5373_s5, %s3963_s25  ;;  %s75_s21 = int_to_ptr.vmem [resolvable:$true] %s74_s21 }
  0x1c   :  { %p3967_p9 = scmp.lt.u32.totalorder %s3963_s25, %s5373_s5 }
  0x1e   :  { %p3969_p10 = pnand %p3967_p9, %p3964_p8 }
  0x20   :  { %3972 = shalt.err (!%p3969_p10)
}
  0x21   :  { %s3973_s30 = scalar_lea.vmem %s75_s21, 1024  ;;  %p3978_p12 = scmp.lt.s32.totalorder %s75_s21, %s75_s21 }
  0x22   :  { %p3974_p11 = scmp.ne.s32.totalorder %s75_s21, %s3973_s30  ;;  %p3979_p13 = scmp.lt.s32.totalorder %s3973_s30, %s3973_s30 }
  0x24   :  { %p3980_p0 = por %p3979_p13, %p3978_p12 }
  0x26   :  { %p3981_p1 = pnand %p3980_p0, %p3974_p11 }
  0x28   :  { %3984 = shalt.err (!%p3981_p1)
}
  0x29   :  { %s4247_s3 = smov 128   ;;  %s4248_s22 = smov 8  }
  0x2a   :  { %80 = dma.hbm_to_vmem [thread:$0]  %s5373_s5, 1024, %s75_s21, [#allocation12], %s4247_s3, %s4247_s3, %s4248_s22  }
  0x2b   :  { %s4249_s20 = smov [#allocation14]   ;;  %s4250_s24 = smov [#allocation17]  }
  0x2c   :  { %s100_s23 = sshll.u32 %s4249_s20, 4  ;;  %s126_s26 = sshll.u32 %s4250_s24, 4  ;;  %s101_s23 = int_to_ptr.vmem [resolvable:$true] %s100_s23  ;;  %s4373_s26 = int_to_ptr.vmem [resolvable:$true] %s126_s26 }
  0x2d   :  { %s3985_s28 = scalar_lea.hbm %s5376_s8, 8192 }
  0x2e   :  { %p3986_p2 = scmp.ne.s32.totalorder %s5376_s8, %s3985_s28  ;;  %p3989_p3 = scmp.lt.u32.totalorder %s3985_s28, %s5376_s8 }
  0x30   :  { %p3991_p4 = pnand %p3989_p3, %p3986_p2 }
  0x32   :  { %3994 = shalt.err (!%p3991_p4)
}
  0x33   :  { %s3995_s5 = scalar_lea.vmem %s101_s23, 8192  ;;  %p4000_p6 = scmp.lt.s32.totalorder %s101_s23, %s101_s23 }
  0x34   :  { %p3996_p5 = scmp.ne.s32.totalorder %s101_s23, %s3995_s5  ;;  %p4001_p7 = scmp.lt.s32.totalorder %s3995_s5, %s3995_s5 }
  0x36   :  { %p4002_p8 = por %p4001_p7, %p4000_p6 }
  0x38   :  { %p4003_p9 = pnand %p4002_p8, %p3996_p5 }
  0x3a   :  { %4006 = shalt.err (!%p4003_p9)
}
  0x3b   :  { %s5412_s21 = smov 16   ;;  %s5413_s3 = smov 256  }
  0x3c   :  { %106 = dma.hbm_to_vmem [thread:$0]  %s5376_s8, 8192, %s101_s23, [#allocation15], %s5413_s3, %s5413_s3, %s5412_s21  }
  0x3d   :  { %s4007_s0 = scalar_lea.hbm %s5379_s11, 8192 }
  0x3e   :  { %p4008_p10 = scmp.ne.s32.totalorder %s5379_s11, %s4007_s0  ;;  %p4011_p11 = scmp.lt.u32.totalorder %s4007_s0, %s5379_s11 }
  0x40   :  { %p4013_p12 = pnand %p4011_p11, %p4008_p10 }
  0x42   :  { %4016 = shalt.err (!%p4013_p12)
}
  0x43   :  { %s4017_s28 = scalar_lea.vmem %s4373_s26, 8192  ;;  %p4022_p0 = scmp.lt.s32.totalorder %s4373_s26, %s4373_s26 }
  0x44   :  { %p4018_p13 = scmp.ne.s32.totalorder %s4373_s26, %s4017_s28  ;;  %p4023_p1 = scmp.lt.s32.totalorder %s4017_s28, %s4017_s28 }
  0x46   :  { %p4024_p2 = por %p4023_p1, %p4022_p0 }
  0x48   :  { %p4025_p3 = pnand %p4024_p2, %p4018_p13 }
  0x4a   :  { %4028 = shalt.err (!%p4025_p3)
}
  0x4b   :  { %132 = dma.hbm_to_vmem [thread:$0]  %s5379_s11, 8192, %s4373_s26, [#allocation18], %s5413_s3, %s5413_s3, %s5412_s21  }
  0x4c   :  { %s4251_s29 = smov [#allocation20]   ;;  %s4252_s5 = smov [#allocation5]  }
  0x4d   :  { %s151_s30 = sshll.u32 %s4251_s29, 4  ;;  %s39_s22 = sshll.u32 %s4252_s5, 4  ;;  %s152_s30 = int_to_ptr.vmem [resolvable:$true] %s151_s30  ;;  %s40_s22 = int_to_ptr.vmem [resolvable:$true] %s39_s22 }
  0x4e   :  { %s4029_s20 = scalar_lea.hbm %s5381_s13, 256 }
  0x4f   :  { %p4030_p4 = scmp.ne.s32.totalorder %s5381_s13, %s4029_s20  ;;  %p4033_p5 = scmp.lt.u32.totalorder %s4029_s20, %s5381_s13 }
  0x51   :  { %p4035_p6 = pnand %p4033_p5, %p4030_p4 }
  0x53   :  { %4038 = shalt.err (!%p4035_p6)
}
  0x54   :  { %s4039_s11 = scalar_lea.vmem %s152_s30, 256  ;;  %p4044_p8 = scmp.lt.s32.totalorder %s152_s30, %s152_s30 }
  0x55   :  { %p4040_p7 = scmp.ne.s32.totalorder %s152_s30, %s4039_s11  ;;  %p4045_p9 = scmp.lt.s32.totalorder %s4039_s11, %s4039_s11 }
  0x57   :  { %p4046_p10 = por %p4045_p9, %p4044_p8 }
  0x59   :  { %p4047_p11 = pnand %p4046_p10, %p4040_p7 }
  0x5b   :  { %4050 = shalt.err (!%p4047_p11)
}
  0x5c   :  { %154 = dma.hbm_to_vmem [thread:$0]  %s5381_s13, 256, %s152_s30, [#allocation21]  }
  0x5d   :  { %s4051_s23 = scalar_lea.hbm %s5369_s1, 256 }
  0x5e   :  { %p4052_p12 = scmp.ne.s32.totalorder %s5369_s1, %s4051_s23  ;;  %p4055_p13 = scmp.lt.u32.totalorder %s4051_s23, %s5369_s1 }
  0x60   :  { %p4057_p0 = pnand %p4055_p13, %p4052_p12 }
  0x62   :  { %4060 = shalt.err (!%p4057_p0)
}
  0x63   :  { %s4061_s20 = scalar_lea.vmem %s40_s22, 256  ;;  %p4066_p2 = scmp.lt.s32.totalorder %s40_s22, %s40_s22 }
  0x64   :  { %p4062_p1 = scmp.ne.s32.totalorder %s40_s22, %s4061_s20  ;;  %p4067_p3 = scmp.lt.s32.totalorder %s4061_s20, %s4061_s20 }
  0x66   :  { %p4068_p4 = por %p4067_p3, %p4066_p2 }
  0x68   :  { %p4069_p5 = pnand %p4068_p4, %p4062_p1 }
  0x6a   :  { %4072 = shalt.err (!%p4069_p5)
}
  0x6b   :  { %42 = dma.hbm_to_vmem [thread:$0]  %s5369_s1, 256, %s40_s22, [#allocation6]  }
  0x6c   :  { %s4253_s0 = smov [#allocation10]   ;;  %s4254_s24 = smov [#allocation13]  }
  0x6d   :  { %s62_s17 = sshll.u32 %s4253_s0, 4  ;;  %s86_s25 = sshll.u32 %s4254_s24, 4  ;;  %s63_s17 = int_to_ptr.vmem [resolvable:$true] %s62_s17  ;;  %s4434_s25 = int_to_ptr.vmem [resolvable:$true] %s86_s25 }
  0x6e   :  { %s4073_s27 = scalar_lea.hbm %s5372_s4, 2048 }
  0x6f   :  { %p4074_p6 = scmp.ne.s32.totalorder %s5372_s4, %s4073_s27  ;;  %p4077_p7 = scmp.lt.u32.totalorder %s4073_s27, %s5372_s4 }
  0x71   :  { %p4079_p8 = pnand %p4077_p7, %p4074_p6 }
  0x73   :  { %4082 = shalt.err (!%p4079_p8)
}
  0x74   :  { %s4083_s1 = scalar_lea.vmem %s63_s17, 2048  ;;  %p4088_p10 = scmp.lt.s32.totalorder %s63_s17, %s63_s17 }
  0x75   :  { %p4084_p9 = scmp.ne.s32.totalorder %s63_s17, %s4083_s1  ;;  %p4089_p11 = scmp.lt.s32.totalorder %s4083_s1, %s4083_s1 }
  0x77   :  { %p4090_p12 = por %p4089_p11, %p4088_p10 }
  0x79   :  { %p4091_p13 = pnand %p4090_p12, %p4084_p9 }
  0x7b   :  { %4094 = shalt.err (!%p4091_p13)
}
  0x7c   :  { %68 = dma.hbm_to_vmem [thread:$0]  %s5372_s4, 2048, %s63_s17, [#allocation9], %s5413_s3, %s5413_s3, %s5412_s21  }
  0x7d   :  { %s4095_s20 = scalar_lea.hbm %s5374_s6, 2048 }
  0x7e   :  { %p4096_p0 = scmp.ne.s32.totalorder %s5374_s6, %s4095_s20  ;;  %p4099_p1 = scmp.lt.u32.totalorder %s4095_s20, %s5374_s6 }
  0x80   :  { %p4101_p2 = pnand %p4099_p1, %p4096_p0 }
  0x82   :  { %4104 = shalt.err (!%p4101_p2)
}
  0x83   :  { %s4105_s11 = scalar_lea.vmem %s4434_s25, 2048  ;;  %p4110_p4 = scmp.lt.s32.totalorder %s4434_s25, %s4434_s25 }
  0x84   :  { %p4106_p3 = scmp.ne.s32.totalorder %s4434_s25, %s4105_s11  ;;  %p4111_p5 = scmp.lt.s32.totalorder %s4105_s11, %s4105_s11 }
  0x86   :  { %p4112_p6 = por %p4111_p5, %p4110_p4 }
  0x88   :  { %p4113_p7 = pnand %p4112_p6, %p4106_p3 }
  0x8a   :  { %4116 = shalt.err (!%p4113_p7)
}
  0x8b   :  { %92 = dma.hbm_to_vmem [thread:$0]  %s5374_s6, 2048, %s4434_s25, [#allocation12], %s5413_s3, %s5413_s3, %s5412_s21  }
  0x8c   :  { %s4255_s26 = smov [#allocation16]   ;;  %s4256_s28 = smov [#allocation19]  }
  0x8d   :  { %s112_s27 = sshll.u32 %s4255_s26, 4  ;;  %s138_s8 = sshll.u32 %s4256_s28, 4  ;;  %s113_s27 = int_to_ptr.vmem [resolvable:$true] %s112_s27  ;;  %s4471_s8 = int_to_ptr.vmem [resolvable:$true] %s138_s8 }
  0x8e   :  { %s4117_s1 = scalar_lea.hbm %s5377_s9, 8192 }
  0x8f   :  { %p4118_p8 = scmp.ne.s32.totalorder %s5377_s9, %s4117_s1  ;;  %p4121_p9 = scmp.lt.u32.totalorder %s4117_s1, %s5377_s9 }
  0x91   :  { %p4123_p10 = pnand %p4121_p9, %p4118_p8 }
  0x93   :  { %4126 = shalt.err (!%p4123_p10)
}
  0x94   :  { %s4127_s6 = scalar_lea.vmem %s113_s27, 8192  ;;  %p4132_p12 = scmp.lt.s32.totalorder %s113_s27, %s113_s27 }
  0x95   :  { %p4128_p11 = scmp.ne.s32.totalorder %s113_s27, %s4127_s6  ;;  %p4133_p13 = scmp.lt.s32.totalorder %s4127_s6, %s4127_s6 }
  0x97   :  { %p4134_p0 = por %p4133_p13, %p4132_p12 }
  0x99   :  { %p4135_p1 = pnand %p4134_p0, %p4128_p11 }
  0x9b   :  { %4138 = shalt.err (!%p4135_p1)
}
  0x9c   :  { %118 = dma.hbm_to_vmem [thread:$0]  %s5377_s9, 8192, %s113_s27, [#allocation15], %s5413_s3, %s5413_s3, %s5412_s21  }
  0x9d   :  { %s4139_s0 = scalar_lea.hbm %s5380_s12, 8192 }
  0x9e   :  { %p4140_p2 = scmp.ne.s32.totalorder %s5380_s12, %s4139_s0  ;;  %p4143_p3 = scmp.lt.u32.totalorder %s4139_s0, %s5380_s12 }
  0xa0   :  { %p4145_p4 = pnand %p4143_p3, %p4140_p2 }
  0xa2   :  { %4148 = shalt.err (!%p4145_p4)
}
  0xa3   :  { %s4149_s26 = scalar_lea.vmem %s4471_s8, 8192  ;;  %p4154_p6 = scmp.lt.s32.totalorder %s4471_s8, %s4471_s8 }
  0xa4   :  { %p4150_p5 = scmp.ne.s32.totalorder %s4471_s8, %s4149_s26  ;;  %p4155_p7 = scmp.lt.s32.totalorder %s4149_s26, %s4149_s26 }
  0xa6   :  { %p4156_p8 = por %p4155_p7, %p4154_p6 }
  0xa8   :  { %p4157_p9 = pnand %p4156_p8, %p4150_p5 }
  0xaa   :  { %4160 = shalt.err (!%p4157_p9)
}
  0xab   :  { %144 = dma.hbm_to_vmem [thread:$0]  %s5380_s12, 8192, %s4471_s8, [#allocation18], %s5413_s3, %s5413_s3, %s5412_s21  }
  0xac   :  { %s4257_s28 = smov [#allocation22]   ;;  %s4161_s22 = scalar_lea.hbm %s5382_s14, 256 }
  0xad   :  { %s161_s23 = sshll.u32 %s4257_s28, 4  ;;  %p4162_p10 = scmp.ne.s32.totalorder %s5382_s14, %s4161_s22  ;;  %s162_s23 = int_to_ptr.vmem [resolvable:$true] %s161_s23 }
  0xae   :  { %p4165_p11 = scmp.lt.u32.totalorder %s4161_s22, %s5382_s14 }
  0xb0   :  { %p4167_p12 = pnand %p4165_p11, %p4162_p10 }
  0xb2   :  { %4170 = shalt.err (!%p4167_p12)
}
  0xb3   :  { %s4171_s25 = scalar_lea.vmem %s162_s23, 256  ;;  %p4176_p0 = scmp.lt.s32.totalorder %s162_s23, %s162_s23 }
  0xb4   :  { %p4172_p13 = scmp.ne.s32.totalorder %s162_s23, %s4171_s25  ;;  %p4177_p1 = scmp.lt.s32.totalorder %s4171_s25, %s4171_s25 }
  0xb6   :  { %p4178_p2 = por %p4177_p1, %p4176_p0 }
  0xb8   :  { %p4179_p3 = pnand %p4178_p2, %p4172_p13 }
  0xba   :  { %4182 = shalt.err (!%p4179_p3)
}
  0xbb   :  { %164 = dma.hbm_to_vmem [thread:$0]  %s5382_s14, 256, %s162_s23, [#allocation21]  }
  0xbc   :  { %4227 = dma.done.wait [#allocation6], 256  }
  0xbd   :  { %4228 = vsyncadd [#allocation6], 4294967040 }
  0xbe   :  { %4229 = dma.done.wait [#allocation9], 4096  }
  0xbf   :  { %4230 = vsyncadd [#allocation9], 4294963200 }
  0xc0   :  { %4231 = dma.done.wait [#allocation12], 3072  }
  0xc1   :  { %4232 = vsyncadd [#allocation12], 4294964224 }
  0xc2   :  { %4233 = dma.done.wait [#allocation15], 16384  }
  0xc3   :  { %4234 = vsyncadd [#allocation15], 4294950912 }
  0xc4   :  { %4235 = dma.done.wait [#allocation18], 16384  }
  0xc5   :  { %4236 = vsyncadd [#allocation18], 4294950912 }
  0xc6   :  { %4237 = dma.done.wait [#allocation21], 512  }
  0xc7   :  { %4238 = vsyncadd [#allocation21], 4294966784  ;;  %v4258_v0 = vmov 0.0   ;;  %v4522_v1 = vld [vmem:[#allocation5 + $0x8] sm:$0xff]  ;;  %v4524_v2 = vld [vmem:[#allocation5] sm:$0xff]  ;;  %vm242_vm0 = vcmask 64512  }
  0xc8   :  { %331 = vmatprep.mubr.f32.mxu0 %v4258_v0  ;;  %361 = vmatprep.mubr.f32.mxu1 %v4258_v0  ;;  %v201_v3 = vld [vmem:[%s5370_s2] sm:$0xff]  ;;  %v206_v4 = vld [vmem:[%s5370_s2 + $0x28] sm:$0xff]  ;;  %v207_v6 = vld [vmem:[%s5370_s2 + $0x30] sm:$0xff]  ;;  %s5414_s22 = sld [smem:[#allocation56_spill]]  ;;  %vm454_vm1 = vcmask 523264   ;;  %vm802_vm2 = vcmask 588800  }
  0xc9   :  { %267 = vmatprep.subr.mxu0 %v4522_v1  ;;  %3600 = vmatprep.subr.mxu1 %v4522_v1  ;;  %v202_v5 = vld [vmem:[%s5370_s2 + $0x8] sm:$0xff]  ;;  %v203_v7 = vld [vmem:[%s5370_s2 + $0x10] sm:$0xff]  ;;  %v208_v8 = vld [vmem:[%s5370_s2 + $0x38] sm:$0xff] }
  0xca   :  { %268 = vmatpush1.msra.mxu0 %v4524_v2  ;;  %3601 = vmatpush1.msra.mxu1 %v4524_v2  ;;  %v204_v9 = vld [vmem:[%s5370_s2 + $0x18] sm:$0xff]  ;;  %v205_v10 = vld [vmem:[%s5370_s2 + $0x20] sm:$0xff]  ;;  %v209_v11 = vld [vmem:[#allocation8] sm:$0xff] }
  0xcb   :  { %3264 = vmatmul.mubr.msk.f32.vlgmr.msra.gmra.mrb[0].mxu0 %vm242_vm0, %v201_v3  ;;  %3269 = vmatmul.mubr.msk.f32.vlgmr.msra.gmra.mrb[0].mxu1 %vm242_vm0, %v206_v4  ;;  %v210_v13 = vld [vmem:[#allocation8 + $0x8] sm:$0xff]  ;;  %v211_v16 = vld [vmem:[#allocation8 + $0x10] sm:$0xff]  ;;  %v221_v17 = vld [vmem:[#allocation8 + $0x60] sm:$0xff] }
  0xcc   :  { %337 = vmatprep.mubr.f32.mxu0 %v4258_v0  ;;  %367 = vmatprep.mubr.f32.mxu1 %v4258_v0  ;;  %v212_v18 = vld [vmem:[#allocation8 + $0x18] sm:$0xff]  ;;  %v222_v19 = vld [vmem:[#allocation8 + $0x68] sm:$0xff]  ;;  %v380_v21 = vld [vmem:[#allocation10] sm:$0xff] }
  0xcd   :  { %v381_v25 = vld [vmem:[#allocation10 + $0x8] sm:$0xff]  ;;  %v213_v31 = vld [vmem:[#allocation8 + $0x20] sm:$0xff]  ;;  %v223_v33 = vld [vmem:[#allocation8 + $0x70] sm:$0xff] }
  0xce   :  { %v4573_v12 = vstv %s5414_s22  ;;  %v214_v35 = vld [vmem:[#allocation8 + $0x28] sm:$0xff]  ;;  %v224_v36 = vld [vmem:[#allocation8 + $0x78] sm:$0xff]  ;;  %v382_v39 = vld [vmem:[#allocation10 + $0x10] sm:$0xff] }
  0xcf   :  { %3265 = vmatmul.mubr.msk.f32.gmra.mrb[2].mxu0 %vm242_vm0, %v202_v5  ;;  %3270 = vmatmul.mubr.msk.f32.gmra.mrb[2].mxu1 %vm242_vm0, %v207_v6  ;;  %v226_v14 = vmul.f32 %v4573_v12, %v209_v11  ;;  %v227_v15 = vmul.f32 %v4573_v12, %v210_v13  ;;  %v228_v26 = vmul.f32 %v4573_v12, %v211_v16  ;;  %v219_v40 = vld [vmem:[#allocation8 + $0x50] sm:$0xff]  ;;  %v392_v42 = vld [vmem:[#allocation10 + $0x60] sm:$0xff]  ;;  %v383_v45 = vld [vmem:[#allocation10 + $0x18] sm:$0xff] }
  0xd0   :  { %343 = vmatprep.mubr.f32.mxu0 %v4258_v0  ;;  %373 = vmatprep.mubr.f32.mxu1 %v4258_v0  ;;  %v238_v28 = vmul.f32 %v4573_v12, %v221_v17  ;;  %v229_v30 = vmul.f32 %v4573_v12, %v212_v18  ;;  %v239_v32 = vmul.f32 %v4573_v12, %v222_v19  ;;  %v220_v47 = vld [vmem:[#allocation8 + $0x58] sm:$0xff]  ;;  %v393_v50 = vld [vmem:[#allocation10 + $0x68] sm:$0xff]  ;;  %v215_v54 = vld [vmem:[#allocation8 + $0x30] sm:$0xff] }
  0xd1   :  { %v230_v46 = vmul.f32 %v4573_v12, %v213_v31  ;;  %v240_v51 = vmul.f32 %v4573_v12, %v223_v33  ;;  %v231_v53 = vmul.f32 %v4573_v12, %v214_v35  ;;  %v241_v56 = vmul.f32 %v4573_v12, %v224_v36  ;;  %v216_v59 = vld [vmem:[#allocation8 + $0x38] sm:$0xff]  ;;  %v384_v63 = vld [vmem:[#allocation10 + $0x20] sm:$0xff]  ;;  %v394_v6 = vld [vmem:[#allocation10 + $0x70] sm:$0xff] }
  0xd2   :  { %v236_v58 = vmul.f32 %v4573_v12, %v219_v40  ;;  %v237_v3 = vmul.f32 %v4573_v12, %v220_v47  ;;  %v233_v16 = vmul.f32 %v4573_v12, %v216_v59  ;;  %v217_v17 = vld [vmem:[#allocation8 + $0x40] sm:$0xff] }
  0xd3   :  { %3266 = vmatmul.mubr.msk.f32.gmra.mrb[4].mxu0 %vm242_vm0, %v203_v7  ;;  %3271 = vmatmul.mubr.msk.f32.gmra.mrb[4].mxu1 %vm242_vm0, %v208_v8  ;;  %v234_v35 = vmul.f32 %v4573_v12, %v217_v17  ;;  %v435_v17 = vld [vmem:[#allocation11 + $0x28] sm:$0xff] }
  0xd4   :  { %349 = vmatprep.mubr.f32.mxu0 %v4258_v0  ;;  %543 = vmatprep.mubr.f32.mxu1 %v4258_v0 }
  0xd7   :  { %3267 = vmatmul.mubr.msk.f32.gmra.mrb[6].mxu0 %vm242_vm0, %v204_v9  ;;  %v385_v9 = vld [vmem:[#allocation10 + $0x28] sm:$0xff] }
  0xd8   :  { %355 = vmatprep.mubr.f32.mxu0 %v4258_v0 }
  0xdb   :  { %3268 = vmatmul.mubr.msk.f32.gmra.mrb[8].mxu0 %vm242_vm0, %v205_v10  ;;  %v232_v10 = vmul.f32 %v4573_v12, %v215_v54 }
  0xdc   :  { %963 = vmatprep.mubr.f32.mxu0 %v4258_v0 }
 0x19e   :  { %v333_v20 = vpop.f32.mrb[0].mxu0  ;;  %v363_v22 = vpop.f32.mrb[0].mxu1 }
 0x19f   :  { %v334_v23 = vadd.f32 %v333_v20, %v226_v14  ;;  %v335_v24 = vpop.f32.mrb[1].mxu0  ;;  %v4578_v27 = vpop.f32.mrb[1].mxu1  ;;  %v395_v14 = vld [vmem:[#allocation10 + $0x78] sm:$0xff]  ;;  %v364_v20 = vadd.f32 %v363_v22, %v236_v58 }
 0x1a0   :  { %v336_v29 = vadd.f32 %v335_v24, %v227_v15 }
 0x1a1   :  { %v396_v34 = vadd.f32 %v380_v21, %v334_v23  ;;  %v218_v23 = vld [vmem:[#allocation8 + $0x48] sm:$0xff] }
 0x1a2   :  { %v397_v37 = vadd.f32 %v381_v25, %v336_v29  ;;  %v339_v38 = vpop.f32.mrb[2].mxu0  ;;  %v369_v41 = vpop.f32.mrb[2].mxu1  ;;  %v390_v25 = vld [vmem:[#allocation10 + $0x50] sm:$0xff]  ;;  %v366_v29 = vadd.f32 %v4578_v27, %v237_v3  ;;  %v235_v36 = vmul.f32 %v4573_v12, %v218_v23  ;;  %v388_v27 = vld [vmem:[#allocation10 + $0x40] sm:$0xff] }
 0x1a3   :  { %v340_v43 = vadd.f32 %v339_v38, %v228_v26  ;;  %v341_v44 = vpop.f32.mrb[3].mxu0  ;;  %v370_v48 = vadd.f32 %v369_v41, %v238_v28  ;;  %v371_v49 = vpop.f32.mrb[3].mxu1  ;;  %3620 = vtanh.f32 %v396_v34  ;;  %v386_v28 = vld [vmem:[#allocation10 + $0x30] sm:$0xff]  ;;  %v387_v34 = vld [vmem:[#allocation10 + $0x38] sm:$0xff] }
 0x1a4   :  { %v342_v52 = vadd.f32 %v341_v44, %v229_v30  ;;  %v372_v55 = vadd.f32 %v371_v49, %v239_v32  ;;  %3622 = vtanh.f32 %v397_v37  ;;  %v391_v32 = vld [vmem:[#allocation10 + $0x58] sm:$0xff]  ;;  %v406_v37 = vadd.f32 %v390_v25, %v364_v20  ;;  %v438_v20 = vld [vmem:[#allocation13] sm:$0xff] }
 0x1a5   :  { %v398_v57 = vadd.f32 %v382_v39, %v340_v43  ;;  %v408_v60 = vadd.f32 %v392_v42, %v370_v48  ;;  %v407_v39 = vadd.f32 %v391_v32, %v366_v29  ;;  %v441_v29 = vld [vmem:[#allocation13 + $0x18] sm:$0xff] }
 0x1a6   :  { %v399_v61 = vadd.f32 %v383_v45, %v342_v52  ;;  %v345_v62 = vpop.f32.mrb[4].mxu0  ;;  %v409_v4 = vadd.f32 %v393_v50, %v372_v55  ;;  %v375_v5 = vpop.f32.mrb[4].mxu1  ;;  %v389_v45 = vld [vmem:[#allocation10 + $0x48] sm:$0xff] }
 0x1a7   :  { %3624 = vtanh.f32 %v398_v57  ;;  %v346_v7 = vadd.f32 %v345_v62, %v230_v46  ;;  %v347_v8 = vpop.f32.mrb[5].mxu0  ;;  %v376_v11 = vadd.f32 %v375_v5, %v240_v51  ;;  %v377_v13 = vpop.f32.mrb[5].mxu1 }
 0x1a8   :  { %3626 = vtanh.f32 %v399_v61  ;;  %v348_v15 = vadd.f32 %v347_v8, %v231_v53  ;;  %v378_v18 = vadd.f32 %v377_v13, %v241_v56  ;;  %v431_v13 = vld [vmem:[#allocation11 + $0x8] sm:$0xff] }
 0x1a9   :  { %v400_v19 = vadd.f32 %v384_v63, %v346_v7  ;;  %3628 = vtanh.f32 %v408_v60  ;;  %v410_v21 = vadd.f32 %v394_v6, %v376_v11  ;;  %v430_v11 = vld [vmem:[#allocation11] sm:$0xff] }
 0x1aa   :  { %v401_v24 = vadd.f32 %v385_v9, %v348_v15  ;;  %v351_v26 = vpop.f32.mrb[6].mxu0  ;;  %3630 = vtanh.f32 %v409_v4  ;;  %v411_v30 = vadd.f32 %v395_v14, %v378_v18  ;;  %v432_v14 = vld [vmem:[#allocation11 + $0x10] sm:$0xff]  ;;  %v433_v15 = vld [vmem:[#allocation11 + $0x18] sm:$0xff] }
 0x1ab   :  { %3632 = vtanh.f32 %v400_v19  ;;  %v352_v31 = vadd.f32 %v351_v26, %v232_v10  ;;  %v353_v33 = vpop.f32.mrb[7].mxu0  ;;  %v436_v18 = vld [vmem:[#allocation11 + $0x30] sm:$0xff]  ;;  %v437_v19 = vld [vmem:[#allocation11 + $0x38] sm:$0xff] }
 0x1ac   :  { %3634 = vtanh.f32 %v401_v24  ;;  %v354_v22 = vadd.f32 %v353_v33, %v233_v16  ;;  %v434_v16 = vld [vmem:[#allocation11 + $0x20] sm:$0xff] }
 0x1ad   :  { %v402_v38 = vadd.f32 %v386_v28, %v352_v31  ;;  %3636 = vtanh.f32 %v410_v21  ;;  %v3621_v42 = vpop.eup %3620  ;;  %v439_v21 = vld [vmem:[#allocation13 + $0x8] sm:$0xff]  ;;  %v440_v28 = vld [vmem:[#allocation13 + $0x10] sm:$0xff] }
 0x1ae   :  { %v403_v40 = vadd.f32 %v387_v34, %v354_v22  ;;  %v357_v41 = vpop.f32.mrb[8].mxu0  ;;  %3638 = vtanh.f32 %v411_v30  ;;  %v3623_v46 = vpop.eup %3622  ;;  %v442_v34 = vld [vmem:[#allocation13 + $0x20] sm:$0xff] }
 0x1af   :  { %3640 = vtanh.f32 %v402_v38  ;;  %v358_v43 = vadd.f32 %v357_v41, %v234_v35  ;;  %v359_v44 = vpop.f32.mrb[9].mxu0  ;;  %v443_v35 = vld [vmem:[#allocation13 + $0x28] sm:$0xff] }
 0x1b0   :  { %3642 = vtanh.f32 %v403_v40  ;;  %v360_v47 = vadd.f32 %v359_v44, %v235_v36  ;;  %v445_v40 = vld [vmem:[#allocation13 + $0x38] sm:$0xff]  ;;  %v446_v44 = vld [vmem:[#allocation13 + $0x40] sm:$0xff] }
 0x1b1   :  { %v3625_v48 = vpop.eup %3624  ;;  %3644 = vtanh.f32 %v406_v37  ;;  %v404_v49 = vadd.f32 %v388_v27, %v358_v43 }
 0x1b2   :  { %v3627_v50 = vpop.eup %3626  ;;  %3646 = vtanh.f32 %v407_v39  ;;  %v405_v51 = vadd.f32 %v389_v45, %v360_v47  ;;  %v3314_v52 = vpack.c.bf16 %v3625_v48, %v3621_v42  ;;  %v444_v39 = vld [vmem:[#allocation13 + $0x30] sm:$0xff] }
 0x1b3   :  { %v3629_v53 = vpop.eup %3628  ;;  %3648 = vtanh.f32 %v404_v49  ;;  %v3312_v54 = vpack.c.bf16 %v3627_v50, %v3623_v46  ;;  %v447_v46 = vld [vmem:[#allocation13 + $0x48] sm:$0xff] }
 0x1b4   :  { %v3631_v55 = vpop.eup %3630  ;;  %3650 = vtanh.f32 %v405_v51 }
 0x1b5   :  { %v3633_v56 = vpop.eup %3632  ;;  %3313 = vmatprep.subr.bf16.mxu1 %v3312_v54  ;;  %v448_v54 = vld [vmem:[#allocation13 + $0x50] sm:$0xff] }
 0x1b6   :  { %v3635_v57 = vpop.eup %3634  ;;  %3315 = vmatpush1.bf16.msra.mxu1 %v3314_v52 }
 0x1b7   :  { %v3637_v58 = vpop.eup %3636 }
 0x1b8   :  { %v3639_v59 = vpop.eup %3638  ;;  %v3326_v60 = vpack.c.bf16 %v3637_v58, %v3629_v53 }
 0x1b9   :  { %v3641_v61 = vpop.eup %3640  ;;  %v3324_v62 = vpack.c.bf16 %v3639_v59, %v3631_v55 }
 0x1ba   :  { %v3643_v63 = vpop.eup %3642  ;;  %v3318_v3 = vpack.c.bf16 %v3641_v61, %v3633_v56  ;;  %v449_v56 = vld [vmem:[#allocation13 + $0x58] sm:$0xff] }
 0x1bb   :  { %v3645_v4 = vpop.eup %3644  ;;  %v3316_v5 = vpack.c.bf16 %v3643_v63, %v3635_v57 }
 0x1bc   :  { %v3647_v6 = vpop.eup %3646 }
 0x1bd   :  { %v3649_v7 = vpop.eup %3648  ;;  %3317 = vmatprep.subr.bf16.mxu1 %v3316_v5 }
 0x1be   :  { %v3651_v8 = vpop.eup %3650  ;;  %3319 = vmatpush1.bf16.msra.mxu1 %v3318_v3  ;;  %v3322_v9 = vpack.c.bf16 %v3645_v4, %v3649_v7  ;;  %v451_v3 = vld [vmem:[#allocation13 + $0x68] sm:$0xff] }
 0x1bf   :  { %v3320_v10 = vpack.c.bf16 %v3647_v6, %v3651_v8 }
 0x1c1   :  { %3321 = vmatprep.subr.bf16.mxu1 %v3320_v10 }
 0x1c2   :  { %3323 = vmatpush1.bf16.msra.mxu1 %v3322_v9 }
 0x1c3   :  { %3325 = vmatprep.subr.bf16.mxu1 %v3324_v62  ;;  %v450_v62 = vld [vmem:[#allocation13 + $0x60] sm:$0xff] }
 0x1c6   :  { %3327 = vmatpush1.bf16.msra.mxu1 %v3326_v60 }
 0x1c9   :  { %3272 = vmatmul.mubr.msk.f32.vlgmr.msra.gmra.mrb[6].mxu1 %vm454_vm1, %v430_v11  ;;  %v452_v11 = vld [vmem:[#allocation13 + $0x70] sm:$0xff] }
 0x1ca   :  { %549 = vmatprep.mubr.f32.mxu1 %v4258_v0 }
 0x1cd   :  { %3273 = vmatmul.mubr.msk.f32.gmra.mrb[8].mxu1 %vm454_vm1, %v431_v13 }
 0x1ce   :  { %555 = vmatprep.mubr.f32.mxu1 %v4258_v0 }
 0x1d1   :  { %3274 = vmatmul.mubr.msk.f32.gmra.mrb[10].mxu1 %vm454_vm1, %v432_v14  ;;  %v453_v14 = vld [vmem:[#allocation13 + $0x78] sm:$0xff] }
 0x1d2   :  { %561 = vmatprep.mubr.f32.mxu1 %v4258_v0 }
 0x1d5   :  { %3275 = vmatmul.mubr.msk.f32.gmra.mrb[12].mxu1 %vm454_vm1, %v433_v15 }
 0x1d6   :  { %567 = vmatprep.mubr.f32.mxu1 %v4258_v0 }
 0x1d9   :  { %3276 = vmatmul.mubr.msk.f32.gmra.mrb[14].mxu1 %vm454_vm1, %v434_v16 }
 0x1da   :  { %573 = vmatprep.mubr.f32.mxu1 %v4258_v0 }
 0x1dd   :  { %3277 = vmatmul.mubr.msk.f32.gmra.mrb[16].mxu1 %vm454_vm1, %v435_v17 }
 0x1de   :  { %579 = vmatprep.mubr.f32.mxu1 %v4258_v0 }
 0x1e1   :  { %3278 = vmatmul.mubr.msk.f32.gmra.mrb[18].mxu1 %vm454_vm1, %v436_v18 }
 0x1e2   :  { %585 = vmatprep.mubr.f32.mxu1 %v4258_v0 }
 0x1e5   :  { %3279 = vmatmul.mubr.msk.f32.gmra.mrb[20].mxu1 %vm454_vm1, %v437_v19 }
 0x29c   :  { %v545_v23 = vpop.f32.mrb[6].mxu1 }
 0x29d   :  { %v546_v24 = vadd.f32 %v545_v23, %v438_v20  ;;  %v547_v25 = vpop.f32.mrb[7].mxu1 }
 0x29e   :  { %v548_v26 = vadd.f32 %v547_v25, %v439_v21 }
 0x29f   :  { %3652 = vtanh.f32 %v546_v24 }
 0x2a0   :  { %v551_v30 = vpop.f32.mrb[8].mxu1  ;;  %3654 = vtanh.f32 %v548_v26 }
 0x2a1   :  { %v552_v31 = vadd.f32 %v551_v30, %v440_v28  ;;  %v553_v32 = vpop.f32.mrb[9].mxu1 }
 0x2a2   :  { %v554_v33 = vadd.f32 %v553_v32, %v441_v29 }
 0x2a3   :  { %3656 = vtanh.f32 %v552_v31 }
 0x2a4   :  { %3658 = vtanh.f32 %v554_v33  ;;  %v557_v22 = vpop.f32.mrb[10].mxu1 }
 0x2a5   :  { %v558_v36 = vadd.f32 %v557_v22, %v442_v34  ;;  %v559_v37 = vpop.f32.mrb[11].mxu1  ;;  %v624_v34 = vld [vmem:[%s5375_s7] sm:$0xff] }
 0x2a6   :  { %v560_v38 = vadd.f32 %v559_v37, %v443_v35  ;;  %v625_v35 = vld [vmem:[%s5375_s7 + $0x8] sm:$0xff]  ;;  %v628_v22 = vld [vmem:[%s5375_s7 + $0x20] sm:$0xff]  ;;  %v630_v37 = vld [vmem:[%s5375_s7 + $0x30] sm:$0xff] }
 0x2a7   :  { %3660 = vtanh.f32 %v558_v36  ;;  %v629_v36 = vld [vmem:[%s5375_s7 + $0x28] sm:$0xff] }
 0x2a8   :  { %v563_v41 = vpop.f32.mrb[12].mxu1  ;;  %3662 = vtanh.f32 %v560_v38  ;;  %v631_v38 = vld [vmem:[%s5375_s7 + $0x38] sm:$0xff] }
 0x2a9   :  { %v564_v27 = vadd.f32 %v563_v41, %v444_v39  ;;  %v565_v42 = vpop.f32.mrb[13].mxu1  ;;  %v3653_v45 = vpop.eup %3652  ;;  %v632_v39 = vld [vmem:[%s5375_s7 + $0x40] sm:$0xff]  ;;  %v634_v41 = vld [vmem:[%s5375_s7 + $0x50] sm:$0xff] }
 0x2aa   :  { %v566_v43 = vadd.f32 %v565_v42, %v445_v40  ;;  %v3655_v47 = vpop.eup %3654  ;;  %v633_v40 = vld [vmem:[%s5375_s7 + $0x48] sm:$0xff]  ;;  %v636_v42 = vld [vmem:[%s5375_s7 + $0x60] sm:$0xff] }
 0x2ab   :  { %3664 = vtanh.f32 %v564_v27  ;;  %v635_v27 = vld [vmem:[%s5375_s7 + $0x58] sm:$0xff] }
 0x2ac   :  { %3666 = vtanh.f32 %v566_v43  ;;  %v569_v48 = vpop.f32.mrb[14].mxu1  ;;  %v637_v43 = vld [vmem:[%s5375_s7 + $0x68] sm:$0xff] }
 0x2ad   :  { %v3657_v49 = vpop.eup %3656  ;;  %v570_v50 = vadd.f32 %v569_v48, %v446_v44  ;;  %v571_v51 = vpop.f32.mrb[15].mxu1  ;;  %v638_v44 = vld [vmem:[%s5375_s7 + $0x70] sm:$0xff] }
 0x2ae   :  { %v3659_v52 = vpop.eup %3658  ;;  %v572_v53 = vadd.f32 %v571_v51, %v447_v46  ;;  %v3330_v55 = vpack.c.bf16 %v3657_v49, %v3653_v45  ;;  %v639_v45 = vld [vmem:[%s5375_s7 + $0x78] sm:$0xff]  ;;  %v640_v46 = vld [vmem:[%s5375_s7 + $0x80] sm:$0xff]  ;;  %v642_v48 = vld [vmem:[%s5375_s7 + $0x90] sm:$0xff] }
 0x2af   :  { %v3328_v57 = vpack.c.bf16 %v3659_v52, %v3655_v47  ;;  %3668 = vtanh.f32 %v570_v50  ;;  %v641_v47 = vld [vmem:[%s5375_s7 + $0x88] sm:$0xff]  ;;  %v643_v49 = vld [vmem:[%s5375_s7 + $0x98] sm:$0xff]  ;;  %v644_v50 = vld [vmem:[%s5375_s7 + $0xa0] sm:$0xff] }
 0x2b0   :  { %v575_v58 = vpop.f32.mrb[16].mxu1  ;;  %3670 = vtanh.f32 %v572_v53  ;;  %v645_v51 = vld [vmem:[%s5375_s7 + $0xa8] sm:$0xff]  ;;  %v646_v52 = vld [vmem:[%s5375_s7 + $0xb0] sm:$0xff]  ;;  %v647_v53 = vld [vmem:[%s5375_s7 + $0xb8] sm:$0xff] }
 0x2b1   :  { %v576_v59 = vadd.f32 %v575_v58, %v448_v54  ;;  %v577_v60 = vpop.f32.mrb[17].mxu1  ;;  %3329 = vmatprep.subr.bf16.mxu0 %v3328_v57  ;;  %v3661_v63 = vpop.eup %3660  ;;  %v648_v54 = vld [vmem:[%s5375_s7 + $0xc0] sm:$0xff]  ;;  %v651_v57 = vld [vmem:[%s5375_s7 + $0xd8] sm:$0xff] }
 0x2b2   :  { %v578_v61 = vadd.f32 %v577_v60, %v449_v56  ;;  %3331 = vmatpush1.bf16.msra.mxu0 %v3330_v55  ;;  %v3663_v4 = vpop.eup %3662  ;;  %v649_v55 = vld [vmem:[%s5375_s7 + $0xc8] sm:$0xff]  ;;  %v650_v56 = vld [vmem:[%s5375_s7 + $0xd0] sm:$0xff]  ;;  %v652_v58 = vld [vmem:[%s5375_s7 + $0xe0] sm:$0xff] }
 0x2b3   :  { %3672 = vtanh.f32 %v576_v59  ;;  %v653_v59 = vld [vmem:[%s5375_s7 + $0xe8] sm:$0xff]  ;;  %v654_v60 = vld [vmem:[%s5375_s7 + $0xf0] sm:$0xff] }
 0x2b4   :  { %3674 = vtanh.f32 %v578_v61  ;;  %v581_v5 = vpop.f32.mrb[18].mxu1  ;;  %v655_v61 = vld [vmem:[%s5375_s7 + $0xf8] sm:$0xff] }
 0x2b5   :  { %v3665_v6 = vpop.eup %3664  ;;  %v582_v7 = vadd.f32 %v581_v5, %v450_v62  ;;  %v583_v8 = vpop.f32.mrb[19].mxu1  ;;  %v674_v62 = vld [vmem:[#allocation14] sm:$0xff]  ;;  %v676_v5 = vld [vmem:[#allocation14 + $0x10] sm:$0xff] }
 0x2b6   :  { %v3667_v9 = vpop.eup %3666  ;;  %v584_v10 = vadd.f32 %v583_v8, %v451_v3  ;;  %v3334_v13 = vpack.c.bf16 %v3665_v6, %v3661_v63  ;;  %v675_v63 = vld [vmem:[#allocation14 + $0x8] sm:$0xff]  ;;  %v738_v3 = vmul.f32 %v674_v62, %v4573_v12  ;;  %v677_v6 = vld [vmem:[#allocation14 + $0x18] sm:$0xff]  ;;  %v1156_v8 = vld [vmem:[#allocation16] sm:$0xff] }
 0x2b7   :  { %v3332_v15 = vpack.c.bf16 %v3667_v9, %v3663_v4  ;;  %3676 = vtanh.f32 %v582_v7  ;;  %v739_v4 = vmul.f32 %v675_v63, %v4573_v12  ;;  %v1165_v62 = vld [vmem:[#allocation16 + $0x48] sm:$0xff] }
 0x2b8   :  { %v587_v16 = vpop.f32.mrb[20].mxu1  ;;  %3678 = vtanh.f32 %v584_v10 }
 0x2b9   :  { %v588_v17 = vadd.f32 %v587_v16, %v452_v11  ;;  %v589_v18 = vpop.f32.mrb[21].mxu1  ;;  %3333 = vmatprep.subr.bf16.mxu0 %v3332_v15  ;;  %v3669_v20 = vpop.eup %3668  ;;  %v1157_v11 = vld [vmem:[#allocation16 + $0x8] sm:$0xff]  ;;  %v678_v15 = vld [vmem:[#allocation14 + $0x20] sm:$0xff] }
 0x2ba   :  { %v590_v19 = vadd.f32 %v589_v18, %v453_v14  ;;  %3335 = vmatpush1.bf16.msra.mxu0 %v3334_v13  ;;  %v3671_v21 = vpop.eup %3670  ;;  %v741_v14 = vmul.f32 %v677_v6, %v4573_v12 }
 0x2bb   :  { %3680 = vtanh.f32 %v588_v17  ;;  %v679_v17 = vld [vmem:[#allocation14 + $0x28] sm:$0xff] }
 0x2bc   :  { %3682 = vtanh.f32 %v590_v19 }
 0x2bd   :  { %v3673_v23 = vpop.eup %3672 }
 0x2be   :  { %v3675_v24 = vpop.eup %3674  ;;  %v3338_v25 = vpack.c.bf16 %v3673_v23, %v3669_v20  ;;  %v1158_v20 = vld [vmem:[#allocation16 + $0x10] sm:$0xff] }
 0x2bf   :  { %v3336_v26 = vpack.c.bf16 %v3675_v24, %v3671_v21  ;;  %v1159_v24 = vld [vmem:[#allocation16 + $0x18] sm:$0xff] }
 0x2c1   :  { %3337 = vmatprep.subr.bf16.mxu0 %v3336_v26  ;;  %v3677_v28 = vpop.eup %3676 }
 0x2c2   :  { %3339 = vmatpush1.bf16.msra.mxu0 %v3338_v25  ;;  %v3679_v29 = vpop.eup %3678  ;;  %v742_v25 = vmul.f32 %v678_v15, %v4573_v12 }
 0x2c5   :  { %v3681_v30 = vpop.eup %3680 }
 0x2c6   :  { %v3683_v31 = vpop.eup %3682  ;;  %v3342_v32 = vpack.c.bf16 %v3681_v30, %v3677_v28  ;;  %v743_v28 = vmul.f32 %v679_v17, %v4573_v12 }
 0x2c7   :  { %v3340_v33 = vpack.c.bf16 %v3683_v31, %v3679_v29  ;;  %v680_v29 = vld [vmem:[#allocation14 + $0x30] sm:$0xff]  ;;  %v681_v31 = vld [vmem:[#allocation14 + $0x38] sm:$0xff] }
 0x2c9   :  { %3341 = vmatprep.subr.bf16.mxu0 %v3340_v33 }
 0x2ca   :  { %3343 = vmatpush1.bf16.msra.mxu0 %v3342_v32 }
 0x2cb   :  { %915 = vmatprep.subr.mxu0 %v4522_v1  ;;  %v626_v1 = vld [vmem:[%s5375_s7 + $0x10] sm:$0xff] }
 0x2ce   :  { %916 = vmatpush1.msra.mxu0 %v4524_v2  ;;  %v627_v2 = vld [vmem:[%s5375_s7 + $0x18] sm:$0xff] }
 0x2cf   :  { %3280 = vmatmul.mubr.msk.f32.vlgmr.msra.gmra.mrb[10].mxu0 %vm802_vm2, %v624_v34  ;;  %v1160_v34 = vld [vmem:[#allocation16 + $0x20] sm:$0xff] }
 0x2d0   :  { %969 = vmatprep.mubr.f32.mxu0 %v4258_v0 }
 0x2d3   :  { %3281 = vmatmul.mubr.msk.f32.gmra.mrb[12].mxu0 %vm802_vm2, %v625_v35 }
 0x2d4   :  { %975 = vmatprep.mubr.f32.mxu0 %v4258_v0 }
 0x2d7   :  { %3282 = vmatmul.mubr.msk.f32.gmra.mrb[14].mxu0 %vm802_vm2, %v626_v1 }
 0x2d8   :  { %981 = vmatprep.mubr.f32.mxu0 %v4258_v0 }
 0x2db   :  { %3283 = vmatmul.mubr.msk.f32.gmra.mrb[16].mxu0 %vm802_vm2, %v627_v2  ;;  %v1161_v2 = vld [vmem:[#allocation16 + $0x28] sm:$0xff] }
 0x2dc   :  { %987 = vmatprep.mubr.f32.mxu0 %v4258_v0 }
 0x2df   :  { %3284 = vmatmul.mubr.msk.f32.gmra.mrb[18].mxu0 %vm802_vm2, %v628_v22  ;;  %v744_v22 = vmul.f32 %v680_v29, %v4573_v12 }
 0x2e0   :  { %993 = vmatprep.mubr.f32.mxu0 %v4258_v0 }
 0x2e3   :  { %3285 = vmatmul.mubr.msk.f32.gmra.mrb[20].mxu0 %vm802_vm2, %v629_v36 }
 0x2e4   :  { %999 = vmatprep.mubr.f32.mxu0 %v4258_v0 }
 0x2e7   :  { %3286 = vmatmul.mubr.msk.f32.gmra.mrb[22].mxu0 %vm802_vm2, %v630_v37  ;;  %v745_v37 = vmul.f32 %v681_v31, %v4573_v12  ;;  %v1543_v31 = vld [vmem:[%s5378_s10 + $0x18] sm:$0xff] }
 0x2e8   :  { %1005 = vmatprep.mubr.f32.mxu0 %v4258_v0 }
 0x2eb   :  { %3287 = vmatmul.mubr.msk.f32.gmra.mrb[24].mxu0 %vm802_vm2, %v631_v38  ;;  %v682_v38 = vld [vmem:[#allocation14 + $0x40] sm:$0xff] }
 0x2ec   :  { %1011 = vmatprep.mubr.f32.mxu0 %v4258_v0 }
 0x2ef   :  { %3288 = vmatmul.mubr.msk.f32.gmra.mrb[26].mxu0 %vm802_vm2, %v632_v39 }
 0x2f0   :  { %1017 = vmatprep.mubr.f32.mxu0 %v4258_v0 }
 0x2f3   :  { %3289 = vmatmul.mubr.msk.f32.gmra.mrb[28].mxu0 %vm802_vm2, %v633_v40  ;;  %v683_v40 = vld [vmem:[#allocation14 + $0x48] sm:$0xff] }
 0x2f4   :  { %1023 = vmatprep.mubr.f32.mxu0 %v4258_v0 }
 0x2f7   :  { %3290 = vmatmul.mubr.msk.f32.gmra.mrb[30].mxu0 %vm802_vm2, %v634_v41 }
 0x2f8   :  { %1029 = vmatprep.mubr.f32.mxu0 %v4258_v0 }
 0x2fb   :  { %3291 = vmatmul.mubr.msk.f32.gmra.mrb[32].mxu0 %vm802_vm2, %v635_v27 }
 0x2fc   :  { %1035 = vmatprep.mubr.f32.mxu0 %v4258_v0 }
 0x2ff   :  { %3292 = vmatmul.mubr.msk.f32.gmra.mrb[34].mxu0 %vm802_vm2, %v636_v42  ;;  %v1162_v42 = vld [vmem:[#allocation16 + $0x30] sm:$0xff] }
 0x300   :  { %1041 = vmatprep.mubr.f32.mxu0 %v4258_v0 }
 0x303   :  { %3293 = vmatmul.mubr.msk.f32.gmra.mrb[36].mxu0 %vm802_vm2, %v637_v43 }
 0x304   :  { %1047 = vmatprep.mubr.f32.mxu0 %v4258_v0 }
 0x307   :  { %3294 = vmatmul.mubr.msk.f32.gmra.mrb[38].mxu0 %vm802_vm2, %v638_v44 }
 0x308   :  { %1053 = vmatprep.mubr.f32.mxu0 %v4258_v0 }
 0x30b   :  { %3295 = vmatmul.mubr.msk.f32.gmra.mrb[40].mxu0 %vm802_vm2, %v639_v45  ;;  %v1163_v45 = vld [vmem:[#allocation16 + $0x38] sm:$0xff] }
 0x30c   :  { %1059 = vmatprep.mubr.f32.mxu0 %v4258_v0 }
 0x30f   :  { %3296 = vmatmul.mubr.msk.f32.gmra.mrb[42].mxu0 %vm802_vm2, %v640_v46  ;;  %v746_v46 = vmul.f32 %v682_v38, %v4573_v12 }
 0x310   :  { %1065 = vmatprep.mubr.f32.mxu0 %v4258_v0 }
 0x313   :  { %3297 = vmatmul.mubr.msk.f32.gmra.mrb[44].mxu0 %vm802_vm2, %v641_v47 }
 0x314   :  { %1071 = vmatprep.mubr.f32.mxu0 %v4258_v0 }
 0x317   :  { %3298 = vmatmul.mubr.msk.f32.gmra.mrb[46].mxu0 %vm802_vm2, %v642_v48  ;;  %v747_v48 = vmul.f32 %v683_v40, %v4573_v12 }
 0x318   :  { %1077 = vmatprep.mubr.f32.mxu0 %v4258_v0 }
 0x31b   :  { %3299 = vmatmul.mubr.msk.f32.gmra.mrb[48].mxu0 %vm802_vm2, %v643_v49  ;;  %v684_v49 = vld [vmem:[#allocation14 + $0x50] sm:$0xff] }
 0x31c   :  { %1083 = vmatprep.mubr.f32.mxu0 %v4258_v0  ;;  %v748_v63 = vmul.f32 %v684_v49, %v4573_v12 }
 0x31f   :  { %3300 = vmatmul.mubr.msk.f32.gmra.mrb[50].mxu0 %vm802_vm2, %v644_v50 }
 0x320   :  { %1089 = vmatprep.mubr.f32.mxu0 %v4258_v0 }
 0x323   :  { %3301 = vmatmul.mubr.msk.f32.gmra.mrb[52].mxu0 %vm802_vm2, %v645_v51 }
 0x324   :  { %1095 = vmatprep.mubr.f32.mxu0 %v4258_v0 }
 0x327   :  { %3302 = vmatmul.mubr.msk.f32.gmra.mrb[54].mxu0 %vm802_vm2, %v646_v52  ;;  %v685_v52 = vld [vmem:[#allocation14 + $0x58] sm:$0xff] }
 0x328   :  { %1101 = vmatprep.mubr.f32.mxu0 %v4258_v0 }
 0x32b   :  { %3303 = vmatmul.mubr.msk.f32.gmra.mrb[56].mxu0 %vm802_vm2, %v647_v53 }
 0x32c   :  { %1107 = vmatprep.mubr.f32.mxu0 %v4258_v0 }
 0x32f   :  { %3304 = vmatmul.mubr.msk.f32.gmra.mrb[58].mxu0 %vm802_vm2, %v648_v54 }
 0x330   :  { %1113 = vmatprep.mubr.f32.mxu0 %v4258_v0 }
 0x333   :  { %3305 = vmatmul.mubr.msk.f32.gmra.mrb[60].mxu0 %vm802_vm2, %v649_v55 }
 0x334   :  { %1119 = vmatprep.mubr.f32.mxu0 %v4258_v0 }
 0x337   :  { %3306 = vmatmul.mubr.msk.f32.gmra.mrb[62].mxu0 %vm802_vm2, %v650_v56  ;;  %v1164_v56 = vld [vmem:[#allocation16 + $0x40] sm:$0xff] }
 0x338   :  { %1125 = vmatprep.mubr.f32.mxu0 %v4258_v0 }
 0x33b   :  { %3307 = vmatmul.mubr.msk.f32.gmra.mrb[64].mxu0 %vm802_vm2, %v651_v57  ;;  %v686_v57 = vld [vmem:[#allocation14 + $0x60] sm:$0xff] }
 0x33c   :  { %1131 = vmatprep.mubr.f32.mxu0 %v4258_v0 }
 0x33f   :  { %3308 = vmatmul.mubr.msk.f32.gmra.mrb[66].mxu0 %vm802_vm2, %v652_v58 }
 0x340   :  { %1137 = vmatprep.mubr.f32.mxu0 %v4258_v0 }
 0x343   :  { %3309 = vmatmul.mubr.msk.f32.gmra.mrb[68].mxu0 %vm802_vm2, %v653_v59  ;;  %v1733_v59 = vld [vmem:[#allocation17 + $0x8] sm:$0xff] }
 0x344   :  { %1143 = vmatprep.mubr.f32.mxu0 %v4258_v0  ;;  %1988 = vmatprep.mubr.f32.mxu1 %v1733_v59 }
 0x347   :  { %3310 = vmatmul.mubr.msk.f32.gmra.mrb[70].mxu0 %vm802_vm2, %v654_v60 }
 0x348   :  { %1149 = vmatprep.mubr.f32.mxu0 %v4258_v0  ;;  %v740_v0 = vmul.f32 %v676_v5, %v4573_v12  ;;  %v749_v5 = vmul.f32 %v685_v52, %v4573_v12 }
 0x34b   :  { %3311 = vmatmul.mubr.msk.f32.gmra.mrb[72].mxu0 %vm802_vm2, %v655_v61 }
 0x34c   :  { %2245 = vmatprep.mubr.f32.mxu0 %v1733_v59 }
 0x3a2   :  { %v965_v7 = vpop.f32.mrb[10].mxu0 }
 0x3a3   :  { %v966_v9 = vadd.f32 %v965_v7, %v738_v3  ;;  %v967_v10 = vpop.f32.mrb[11].mxu0 }
 0x3a4   :  { %v968_v13 = vadd.f32 %v967_v10, %v739_v4 }
 0x3a5   :  { %v1220_v16 = vadd.f32 %v1156_v8, %v966_v9  ;;  %v750_v8 = vmul.f32 %v686_v57, %v4573_v12  ;;  %v687_v9 = vld [vmem:[#allocation14 + $0x68] sm:$0xff] }
 0x3a6   :  { %v1221_v18 = vadd.f32 %v1157_v11, %v968_v13  ;;  %v971_v19 = vpop.f32.mrb[12].mxu0 }
 0x3a7   :  { %3684 = vtanh.f32 %v1220_v16  ;;  %v972_v21 = vadd.f32 %v971_v19, %v740_v0  ;;  %v973_v23 = vpop.f32.mrb[13].mxu0  ;;  %v688_v16 = vld [vmem:[#allocation14 + $0x70] sm:$0xff] }
 0x3a8   :  { %3686 = vtanh.f32 %v1221_v18  ;;  %v974_v26 = vadd.f32 %v973_v23, %v741_v14  ;;  %v1166_v14 = vld [vmem:[#allocation16 + $0x50] sm:$0xff]  ;;  %v1167_v23 = vld [vmem:[#allocation16 + $0x58] sm:$0xff] }
 0x3a9   :  { %v1222_v30 = vadd.f32 %v1158_v20, %v972_v21  ;;  %v1540_v19 = vld [vmem:[%s5378_s10] sm:$0xff] }
 0x3aa   :  { %v1223_v32 = vadd.f32 %v1159_v24, %v974_v26  ;;  %v977_v33 = vpop.f32.mrb[14].mxu0  ;;  %v1541_v26 = vld [vmem:[%s5378_s10 + $0x8] sm:$0xff] }
 0x3ab   :  { %3688 = vtanh.f32 %v1222_v30  ;;  %v978_v35 = vadd.f32 %v977_v33, %v742_v25  ;;  %v979_v1 = vpop.f32.mrb[15].mxu0  ;;  %v751_v30 = vmul.f32 %v687_v9, %v4573_v12 }
 0x3ac   :  { %3690 = vtanh.f32 %v1223_v32  ;;  %v980_v36 = vadd.f32 %v979_v1, %v743_v28  ;;  %v1542_v28 = vld [vmem:[%s5378_s10 + $0x10] sm:$0xff]  ;;  %v689_v1 = vld [vmem:[#allocation14 + $0x78] sm:$0xff] }
 0x3ad   :  { %v1224_v39 = vadd.f32 %v1160_v34, %v978_v35  ;;  %v752_v35 = vmul.f32 %v688_v16, %v4573_v12  ;;  %v753_v49 = vmul.f32 %v689_v1, %v4573_v12 }
 0x3ae   :  { %v1225_v41 = vadd.f32 %v1161_v2, %v980_v36  ;;  %v983_v27 = vpop.f32.mrb[16].mxu0 }
 0x3af   :  { %3692 = vtanh.f32 %v1224_v39  ;;  %v984_v43 = vadd.f32 %v983_v27, %v744_v22  ;;  %v985_v44 = vpop.f32.mrb[17].mxu0  ;;  %v1168_v39 = vld [vmem:[#allocation16 + $0x60] sm:$0xff] }
 0x3b0   :  { %3694 = vtanh.f32 %v1225_v41  ;;  %v986_v47 = vadd.f32 %v985_v44, %v745_v37  ;;  %v690_v27 = vld [vmem:[#allocation14 + $0x80] sm:$0xff] }
 0x3b1   :  { %v3685_v50 = vpop.eup %3684  ;;  %v1226_v51 = vadd.f32 %v1162_v42, %v984_v43 }
 0x3b2   :  { %v3687_v53 = vpop.eup %3686  ;;  %v1227_v54 = vadd.f32 %v1163_v45, %v986_v47  ;;  %v989_v55 = vpop.f32.mrb[18].mxu0  ;;  %v1412_v58 = vmul.f32 %v3685_v50, %v3685_v50  ;;  %v1169_v45 = vld [vmem:[#allocation16 + $0x68] sm:$0xff] }
 0x3b3   :  { %3696 = vtanh.f32 %v1226_v51  ;;  %v990_v60 = vadd.f32 %v989_v55, %v746_v46  ;;  %v991_v61 = vpop.f32.mrb[19].mxu0  ;;  %v1413_v3 = vmul.f32 %v3687_v53, %v3687_v53  ;;  %v691_v55 = vld [vmem:[#allocation14 + $0x88] sm:$0xff] }
 0x3b4   :  { %3698 = vtanh.f32 %v1227_v54  ;;  %v992_v4 = vadd.f32 %v991_v61, %v747_v48  ;;  %v1476_v10 = vsub.f32 1.0, %v1412_v58  ;;  %v754_v54 = vmul.f32 %v690_v27, %v4573_v12 }
 0x3b5   :  { %v3689_v6 = vpop.eup %3688  ;;  %v1228_v7 = vadd.f32 %v1164_v56, %v990_v60  ;;  %v1477_v17 = vsub.f32 1.0, %v1413_v3  ;;  %v1170_v60 = vld [vmem:[#allocation16 + $0x70] sm:$0xff] }
 0x3b6   :  { %v3691_v11 = vpop.eup %3690  ;;  %v1229_v0 = vadd.f32 %v1165_v62, %v992_v4  ;;  %v995_v13 = vpop.f32.mrb[20].mxu0  ;;  %v3346_v15 = vpack.c.bf16 %v3689_v6, %v3685_v50  ;;  %v1414_v18 = vmul.f32 %v3689_v6, %v3689_v6  ;;  %v1604_v22 = vmul.f32 %v1540_v19, %v1476_v10  ;;  %v692_v62 = vld [vmem:[#allocation14 + $0x90] sm:$0xff]  ;;  %v1545_v10 = vld [vmem:[%s5378_s10 + $0x28] sm:$0xff] }
 0x3b7   :  { %3700 = vtanh.f32 %v1228_v7  ;;  %v996_v20 = vadd.f32 %v995_v13, %v748_v63  ;;  %v997_v21 = vpop.f32.mrb[21].mxu0  ;;  %v3344_v24 = vpack.c.bf16 %v3691_v11, %v3687_v53  ;;  %v1415_v25 = vmul.f32 %v3691_v11, %v3691_v11  ;;  %v1544_v4 = vld [vmem:[%s5378_s10 + $0x20] sm:$0xff]  ;;  %v1171_v7 = vld [vmem:[#allocation16 + $0x78] sm:$0xff]  ;;  %v1546_v11 = vld [vmem:[%s5378_s10 + $0x30] sm:$0xff] }
 0x3b8   :  { %3702 = vtanh.f32 %v1229_v0  ;;  %v998_v29 = vadd.f32 %v997_v21, %v749_v5  ;;  %v1478_v32 = vsub.f32 1.0, %v1414_v18  ;;  %v1605_v40 = vmul.f32 %v1541_v26, %v1477_v17  ;;  %v693_v19 = vld [vmem:[#allocation14 + $0x98] sm:$0xff]  ;;  %v1172_v26 = vld [vmem:[#allocation16 + $0x80] sm:$0xff] }
 0x3b9   :  { %v4796_v33 = vpop.eup %3692  ;;  %v1230_v34 = vadd.f32 %v1166_v14, %v996_v20  ;;  %3345 = vmatprep.subr.bf16.mxu1 %v3344_v24  ;;  %v1479_v2 = vsub.f32 1.0, %v1415_v25  ;;  %v755_v13 = vmul.f32 %v691_v55, %v4573_v12  ;;  %v1547_v14 = vld [vmem:[%s5378_s10 + $0x38] sm:$0xff]  ;;  %v756_v18 = vmul.f32 %v692_v62, %v4573_v12 }
 0x3ba   :  { %v3695_v36 = vpop.eup %3694  ;;  %v1231_v37 = vadd.f32 %v1167_v23, %v998_v29  ;;  %v1001_v38 = vpop.f32.mrb[22].mxu0  ;;  %3347 = vmatpush1.bf16.msra.mxu1 %v3346_v15  ;;  %v1606_v41 = vmul.f32 %v1542_v28, %v1478_v32  ;;  %v1416_v42 = vmul.f32 %v4796_v33, %v4796_v33 }
 0x3bb   :  { %3704 = vtanh.f32 %v1230_v34  ;;  %v1002_v43 = vadd.f32 %v1001_v38, %v750_v8  ;;  %v1003_v44 = vpop.f32.mrb[23].mxu0  ;;  %v1607_v46 = vmul.f32 %v1543_v31, %v1479_v2  ;;  %v1417_v47 = vmul.f32 %v3695_v36, %v3695_v36  ;;  %v1173_v34 = vld [vmem:[#allocation16 + $0x88] sm:$0xff] }
 0x3bc   :  { %3706 = vtanh.f32 %v1231_v37  ;;  %v1004_v48 = vadd.f32 %v1003_v44, %v751_v30  ;;  %v3410_v50 = vpack.c.bf16 %v1606_v41, %v1604_v22  ;;  %v1480_v56 = vsub.f32 1.0, %v1416_v42  ;;  %v694_v30 = vld [vmem:[#allocation14 + $0xa0] sm:$0xff]  ;;  %v695_v41 = vld [vmem:[#allocation14 + $0xa8] sm:$0xff] }
 0x3bd   :  { %v3697_v51 = vpop.eup %3696  ;;  %v1232_v52 = vadd.f32 %v1168_v39, %v1002_v43  ;;  %v3408_v53 = vpack.c.bf16 %v1607_v46, %v1605_v40  ;;  %v1481_v63 = vsub.f32 1.0, %v1417_v47  ;;  %v757_v22 = vmul.f32 %v693_v19, %v4573_v12  ;;  %v696_v47 = vld [vmem:[#allocation14 + $0xb0] sm:$0xff] }
 0x3be   :  { %v3699_v57 = vpop.eup %3698  ;;  %v1233_v58 = vadd.f32 %v1169_v45, %v1004_v48  ;;  %v1007_v59 = vpop.f32.mrb[24].mxu0  ;;  %v3350_v61 = vpack.c.bf16 %v3697_v51, %v4796_v33  ;;  %v1418_v3 = vmul.f32 %v3697_v51, %v3697_v51  ;;  %v1608_v21 = vmul.f32 %v1544_v4, %v1480_v56  ;;  %v1174_v45 = vld [vmem:[#allocation16 + $0x90] sm:$0xff]  ;;  %v1549_v56 = vld [vmem:[%s5378_s10 + $0x48] sm:$0xff] }
 0x3bf   :  { %3708 = vtanh.f32 %v1232_v52  ;;  %v1008_v5 = vadd.f32 %v1007_v59, %v752_v35  ;;  %v1009_v6 = vpop.f32.mrb[25].mxu0  ;;  %3409 = vmatprep.subr.bf16.mxu0 %v3408_v53  ;;  %v3348_v8 = vpack.c.bf16 %v3699_v57, %v3695_v36  ;;  %v1419_v9 = vmul.f32 %v3699_v57, %v3699_v57  ;;  %v1175_v53 = vld [vmem:[#allocation16 + $0x98] sm:$0xff]  ;;  %v1550_v57 = vld [vmem:[%s5378_s10 + $0x50] sm:$0xff] }
 0x3c0   :  { %3710 = vtanh.f32 %v1233_v58  ;;  %v1010_v0 = vadd.f32 %v1009_v6, %v753_v49  ;;  %3411 = vmatpush1.bf16.msra.mxu0 %v3410_v50  ;;  %v1482_v15 = vsub.f32 1.0, %v1418_v3  ;;  %v1609_v28 = vmul.f32 %v1545_v10, %v1481_v63  ;;  %v1548_v50 = vld [vmem:[%s5378_s10 + $0x40] sm:$0xff]  ;;  %v697_v4 = vld [vmem:[#allocation14 + $0xb8] sm:$0xff]  ;;  %v1176_v10 = vld [vmem:[#allocation16 + $0xa0] sm:$0xff] }
 0x3c1   :  { %v4817_v16 = vpop.eup %3700  ;;  %v1234_v17 = vadd.f32 %v1170_v60, %v1008_v5  ;;  %3349 = vmatprep.subr.bf16.mxu1 %v3348_v8  ;;  %v1483_v20 = vsub.f32 1.0, %v1419_v9  ;;  %v758_v40 = vmul.f32 %v694_v30, %v4573_v12  ;;  %v759_v59 = vmul.f32 %v695_v41, %v4573_v12  ;;  %v1551_v60 = vld [vmem:[%s5378_s10 + $0x58] sm:$0xff] }
 0x3c2   :  { %v3703_v23 = vpop.eup %3702  ;;  %v1235_v24 = vadd.f32 %v1171_v7, %v1010_v0  ;;  %v1013_v25 = vpop.f32.mrb[26].mxu0  ;;  %3351 = vmatpush1.bf16.msra.mxu1 %v3350_v61  ;;  %v1610_v29 = vmul.f32 %v1546_v11, %v1482_v15  ;;  %v1420_v31 = vmul.f32 %v4817_v16, %v4817_v16  ;;  %v760_v3 = vmul.f32 %v696_v47, %v4573_v12 }
 0x3c3   :  { %3712 = vtanh.f32 %v1234_v17  ;;  %v1014_v32 = vadd.f32 %v1013_v25, %v754_v54  ;;  %v1015_v33 = vpop.f32.mrb[27].mxu0  ;;  %v1611_v35 = vmul.f32 %v1547_v14, %v1483_v20  ;;  %v1421_v1 = vmul.f32 %v3703_v23, %v3703_v23  ;;  %v1177_v17 = vld [vmem:[#allocation16 + $0xa8] sm:$0xff] }
 0x3c4   :  { %3714 = vtanh.f32 %v1235_v24  ;;  %v1016_v2 = vadd.f32 %v1015_v33, %v755_v13  ;;  %v3414_v36 = vpack.c.bf16 %v1610_v29, %v1608_v21  ;;  %v1484_v27 = vsub.f32 1.0, %v1420_v31  ;;  %v698_v13 = vld [vmem:[#allocation14 + $0xc0] sm:$0xff]  ;;  %v699_v29 = vld [vmem:[#allocation14 + $0xc8] sm:$0xff] }
 0x3c5   :  { %v3705_v37 = vpop.eup %3704  ;;  %v1236_v38 = vadd.f32 %v1172_v26, %v1014_v32  ;;  %v3412_v39 = vpack.c.bf16 %v1611_v35, %v1609_v28  ;;  %v1485_v48 = vsub.f32 1.0, %v1421_v1  ;;  %v761_v21 = vmul.f32 %v697_v4, %v4573_v12  ;;  %v700_v1 = vld [vmem:[#allocation14 + $0xd0] sm:$0xff] }
 0x3c6   :  { %v3707_v42 = vpop.eup %3706  ;;  %v1237_v43 = vadd.f32 %v1173_v34, %v1016_v2  ;;  %v1019_v44 = vpop.f32.mrb[28].mxu0  ;;  %v3354_v46 = vpack.c.bf16 %v3705_v37, %v4817_v16  ;;  %v1422_v49 = vmul.f32 %v3705_v37, %v3705_v37  ;;  %v1612_v6 = vmul.f32 %v1548_v50, %v1484_v27  ;;  %v1178_v34 = vld [vmem:[#allocation16 + $0xb0] sm:$0xff]  ;;  %v1553_v27 = vld [vmem:[%s5378_s10 + $0x68] sm:$0xff] }
 0x3c7   :  { %3716 = vtanh.f32 %v1236_v38  ;;  %v1020_v51 = vadd.f32 %v1019_v44, %v756_v18  ;;  %v1021_v52 = vpop.f32.mrb[29].mxu0  ;;  %3413 = vmatprep.subr.bf16.mxu0 %v3412_v39  ;;  %v3352_v54 = vpack.c.bf16 %v3707_v42, %v3703_v23  ;;  %v1423_v55 = vmul.f32 %v3707_v42, %v3707_v42  ;;  %v1179_v39 = vld [vmem:[#allocation16 + $0xb8] sm:$0xff]  ;;  %v1554_v42 = vld [vmem:[%s5378_s10 + $0x70] sm:$0xff] }
 0x3c8   :  { %3718 = vtanh.f32 %v1237_v43  ;;  %v1022_v58 = vadd.f32 %v1021_v52, %v757_v22  ;;  %3415 = vmatpush1.bf16.msra.mxu0 %v3414_v36  ;;  %v1486_v61 = vsub.f32 1.0, %v1422_v49  ;;  %v1613_v11 = vmul.f32 %v1549_v56, %v1485_v48  ;;  %v1552_v36 = vld [vmem:[%s5378_s10 + $0x60] sm:$0xff]  ;;  %v701_v50 = vld [vmem:[#allocation14 + $0xd8] sm:$0xff]  ;;  %v1180_v56 = vld [vmem:[#allocation16 + $0xc0] sm:$0xff] }
 0x3c9   :  { %v4838_v62 = vpop.eup %3708  ;;  %v1238_v63 = vadd.f32 %v1174_v45, %v1020_v51  ;;  %3353 = vmatprep.subr.bf16.mxu1 %v3352_v54  ;;  %v1487_v5 = vsub.f32 1.0, %v1423_v55  ;;  %v762_v28 = vmul.f32 %v698_v13, %v4573_v12  ;;  %v763_v44 = vmul.f32 %v699_v29, %v4573_v12  ;;  %v1555_v45 = vld [vmem:[%s5378_s10 + $0x78] sm:$0xff] }
 0x3ca   :  { %v3711_v7 = vpop.eup %3710  ;;  %v1239_v8 = vadd.f32 %v1175_v53, %v1022_v58  ;;  %v1025_v9 = vpop.f32.mrb[30].mxu0  ;;  %3355 = vmatpush1.bf16.msra.mxu1 %v3354_v46  ;;  %v1614_v0 = vmul.f32 %v1550_v57, %v1486_v61  ;;  %v1424_v14 = vmul.f32 %v4838_v62, %v4838_v62  ;;  %v764_v49 = vmul.f32 %v700_v1, %v4573_v12 }
 0x3cb   :  { %3720 = vtanh.f32 %v1238_v63  ;;  %v1026_v15 = vadd.f32 %v1025_v9, %v758_v40  ;;  %v1027_v16 = vpop.f32.mrb[31].mxu0  ;;  %v1615_v18 = vmul.f32 %v1551_v60, %v1487_v5  ;;  %v1425_v19 = vmul.f32 %v3711_v7, %v3711_v7  ;;  %v1181_v63 = vld [vmem:[#allocation16 + $0xc8] sm:$0xff] }
 0x3cc   :  { %3722 = vtanh.f32 %v1239_v8  ;;  %v1028_v20 = vadd.f32 %v1027_v16, %v759_v59  ;;  %v3418_v23 = vpack.c.bf16 %v1614_v0, %v1612_v6  ;;  %v1488_v30 = vsub.f32 1.0, %v1424_v14  ;;  %v702_v59 = vld [vmem:[#allocation14 + $0xe0] sm:$0xff]  ;;  %v703_v0 = vld [vmem:[#allocation14 + $0xe8] sm:$0xff] }
 0x3cd   :  { %v3713_v24 = vpop.eup %3712  ;;  %v1240_v25 = vadd.f32 %v1176_v10, %v1026_v15  ;;  %v3416_v26 = vpack.c.bf16 %v1615_v18, %v1613_v11  ;;  %v1489_v2 = vsub.f32 1.0, %v1425_v19  ;;  %v765_v6 = vmul.f32 %v701_v50, %v4573_v12  ;;  %v704_v19 = vld [vmem:[#allocation14 + $0xf0] sm:$0xff] }
 0x3ce   :  { %v3715_v31 = vpop.eup %3714  ;;  %v1241_v32 = vadd.f32 %v1177_v17, %v1028_v20  ;;  %v1031_v33 = vpop.f32.mrb[32].mxu0  ;;  %v3358_v35 = vpack.c.bf16 %v3713_v24, %v4838_v62  ;;  %v1426_v22 = vmul.f32 %v3713_v24, %v3713_v24  ;;  %v1616_v52 = vmul.f32 %v1552_v36, %v1488_v30  ;;  %v1182_v17 = vld [vmem:[#allocation16 + $0xd0] sm:$0xff]  ;;  %v1557_v30 = vld [vmem:[%s5378_s10 + $0x88] sm:$0xff] }
 0x3cf   :  { %3724 = vtanh.f32 %v1240_v25  ;;  %v1032_v37 = vadd.f32 %v1031_v33, %v760_v3  ;;  %v1033_v38 = vpop.f32.mrb[33].mxu0  ;;  %3417 = vmatprep.subr.bf16.mxu0 %v3416_v26  ;;  %v3356_v40 = vpack.c.bf16 %v3715_v31, %v3711_v7  ;;  %v1427_v41 = vmul.f32 %v3715_v31, %v3715_v31  ;;  %v1183_v26 = vld [vmem:[#allocation16 + $0xd8] sm:$0xff]  ;;  %v1558_v31 = vld [vmem:[%s5378_s10 + $0x90] sm:$0xff] }
 0x3d0   :  { %3726 = vtanh.f32 %v1241_v32  ;;  %v1034_v43 = vadd.f32 %v1033_v38, %v761_v21  ;;  %3419 = vmatpush1.bf16.msra.mxu0 %v3418_v23  ;;  %v1490_v46 = vsub.f32 1.0, %v1426_v22  ;;  %v1617_v57 = vmul.f32 %v1553_v27, %v1489_v2  ;;  %v1556_v23 = vld [vmem:[%s5378_s10 + $0x80] sm:$0xff]  ;;  %v705_v36 = vld [vmem:[#allocation14 + $0xf8] sm:$0xff]  ;;  %v1184_v27 = vld [vmem:[#allocation16 + $0xe0] sm:$0xff] }
 0x3d1   :  { %v4859_v47 = vpop.eup %3716  ;;  %v1242_v48 = vadd.f32 %v1178_v34, %v1032_v37  ;;  %3357 = vmatprep.subr.bf16.mxu1 %v3356_v40  ;;  %v1491_v51 = vsub.f32 1.0, %v1427_v41  ;;  %v766_v11 = vmul.f32 %v702_v59, %v4573_v12  ;;  %v767_v33 = vmul.f32 %v703_v0, %v4573_v12  ;;  %v1559_v34 = vld [vmem:[%s5378_s10 + $0x98] sm:$0xff] }
 0x3d2   :  { %v3719_v53 = vpop.eup %3718  ;;  %v1243_v54 = vadd.f32 %v1179_v39, %v1034_v43  ;;  %v1037_v55 = vpop.f32.mrb[34].mxu0  ;;  %3359 = vmatpush1.bf16.msra.mxu1 %v3358_v35  ;;  %v1618_v58 = vmul.f32 %v1554_v42, %v1490_v46  ;;  %v1428_v60 = vmul.f32 %v4859_v47, %v4859_v47  ;;  %v768_v22 = vmul.f32 %v704_v19, %v4573_v12 }
 0x3d3   :  { %3728 = vtanh.f32 %v1242_v48  ;;  %v1038_v61 = vadd.f32 %v1037_v55, %v762_v28  ;;  %v1039_v62 = vpop.f32.mrb[35].mxu0  ;;  %v1619_v3 = vmul.f32 %v1555_v45, %v1491_v51  ;;  %v1429_v4 = vmul.f32 %v3719_v53, %v3719_v53  ;;  %v1185_v48 = vld [vmem:[#allocation16 + $0xe8] sm:$0xff] }
 0x3d4   :  { %3730 = vtanh.f32 %v1243_v54  ;;  %v1040_v5 = vadd.f32 %v1039_v62, %v763_v44  ;;  %v3422_v7 = vpack.c.bf16 %v1618_v58, %v1616_v52  ;;  %v1492_v13 = vsub.f32 1.0, %v1428_v60  ;;  %v706_v44 = vld [vmem:[#allocation14 + $0x100] sm:$0xff]  ;;  %v707_v58 = vld [vmem:[#allocation14 + $0x108] sm:$0xff] }
 0x3d5   :  { %v3721_v8 = vpop.eup %3720  ;;  %v1244_v9 = vadd.f32 %v1180_v56, %v1038_v61  ;;  %v3420_v10 = vpack.c.bf16 %v1619_v3, %v1617_v57  ;;  %v1493_v20 = vsub.f32 1.0, %v1429_v4  ;;  %v769_v52 = vmul.f32 %v705_v36, %v4573_v12  ;;  %v708_v4 = vld [vmem:[#allocation14 + $0x110] sm:$0xff] }
 0x3d6   :  { %v3723_v14 = vpop.eup %3722  ;;  %v1245_v15 = vadd.f32 %v1181_v63, %v1040_v5  ;;  %v1043_v16 = vpop.f32.mrb[36].mxu0  ;;  %v3362_v18 = vpack.c.bf16 %v3721_v8, %v4859_v47  ;;  %v1430_v21 = vmul.f32 %v3721_v8, %v3721_v8  ;;  %v1620_v38 = vmul.f32 %v1556_v23, %v1492_v13  ;;  %v1186_v63 = vld [vmem:[#allocation16 + $0xf0] sm:$0xff]  ;;  %v1561_v13 = vld [vmem:[%s5378_s10 + $0xa8] sm:$0xff] }
 0x3d7   :  { %3732 = vtanh.f32 %v1244_v9  ;;  %v1044_v24 = vadd.f32 %v1043_v16, %v764_v49  ;;  %v1045_v25 = vpop.f32.mrb[37].mxu0  ;;  %3421 = vmatprep.subr.bf16.mxu0 %v3420_v10  ;;  %v3360_v28 = vpack.c.bf16 %v3723_v14, %v3719_v53  ;;  %v1431_v29 = vmul.f32 %v3723_v14, %v3723_v14  ;;  %v1187_v10 = vld [vmem:[#allocation16 + $0xf8] sm:$0xff]  ;;  %v1562_v14 = vld [vmem:[%s5378_s10 + $0xb0] sm:$0xff] }
 0x3d8   :  { %3734 = vtanh.f32 %v1245_v15  ;;  %v1046_v32 = vadd.f32 %v1045_v25, %v765_v6  ;;  %3423 = vmatpush1.bf16.msra.mxu0 %v3422_v7  ;;  %v1494_v35 = vsub.f32 1.0, %v1430_v21  ;;  %v1621_v42 = vmul.f32 %v1557_v30, %v1493_v20  ;;  %v1560_v7 = vld [vmem:[%s5378_s10 + $0xa0] sm:$0xff]  ;;  %v709_v23 = vld [vmem:[#allocation14 + $0x118] sm:$0xff]  ;;  %v1188_v30 = vld [vmem:[#allocation16 + $0x100] sm:$0xff] }
 0x3d9   :  { %v4880_v1 = vpop.eup %3724  ;;  %v1246_v2 = vadd.f32 %v1182_v17, %v1044_v24  ;;  %3361 = vmatprep.subr.bf16.mxu1 %v3360_v28  ;;  %v1495_v37 = vsub.f32 1.0, %v1431_v29  ;;  %v770_v57 = vmul.f32 %v706_v44, %v4573_v12  ;;  %v771_v16 = vmul.f32 %v707_v58, %v4573_v12  ;;  %v1563_v17 = vld [vmem:[%s5378_s10 + $0xb8] sm:$0xff] }
 0x3da   :  { %v3727_v39 = vpop.eup %3726  ;;  %v1247_v40 = vadd.f32 %v1183_v26, %v1046_v32  ;;  %v1049_v41 = vpop.f32.mrb[38].mxu0  ;;  %3363 = vmatpush1.bf16.msra.mxu1 %v3362_v18  ;;  %v1622_v43 = vmul.f32 %v1558_v31, %v1494_v35  ;;  %v1432_v45 = vmul.f32 %v4880_v1, %v4880_v1  ;;  %v772_v21 = vmul.f32 %v708_v4, %v4573_v12 }
 0x3db   :  { %3736 = vtanh.f32 %v1246_v2  ;;  %v1050_v46 = vadd.f32 %v1049_v41, %v766_v11  ;;  %v1051_v47 = vpop.f32.mrb[39].mxu0  ;;  %v1623_v49 = vmul.f32 %v1559_v34, %v1495_v37  ;;  %v1433_v50 = vmul.f32 %v3727_v39, %v3727_v39  ;;  %v1189_v2 = vld [vmem:[#allocation16 + $0x108] sm:$0xff] }
 0x3dc   :  { %3738 = vtanh.f32 %v1247_v40  ;;  %v1052_v51 = vadd.f32 %v1051_v47, %v767_v33  ;;  %v3426_v53 = vpack.c.bf16 %v1622_v43, %v1620_v38  ;;  %v1496_v59 = vsub.f32 1.0, %v1432_v45  ;;  %v710_v33 = vld [vmem:[#allocation14 + $0x120] sm:$0xff]  ;;  %v711_v43 = vld [vmem:[#allocation14 + $0x128] sm:$0xff] }
 0x3dd   :  { %v3729_v54 = vpop.eup %3728  ;;  %v1248_v55 = vadd.f32 %v1184_v27, %v1050_v46  ;;  %v3424_v56 = vpack.c.bf16 %v1623_v49, %v1621_v42  ;;  %v1497_v5 = vsub.f32 1.0, %v1433_v50  ;;  %v773_v38 = vmul.f32 %v709_v23, %v4573_v12  ;;  %v712_v50 = vld [vmem:[#allocation14 + $0x130] sm:$0xff] }
 0x3de   :  { %v3731_v60 = vpop.eup %3730  ;;  %v1249_v61 = vadd.f32 %v1185_v48, %v1052_v51  ;;  %v1055_v62 = vpop.f32.mrb[40].mxu0  ;;  %v3366_v3 = vpack.c.bf16 %v3729_v54, %v4880_v1  ;;  %v1434_v6 = vmul.f32 %v3729_v54, %v3729_v54  ;;  %v1624_v25 = vmul.f32 %v1560_v7, %v1496_v59  ;;  %v1190_v48 = vld [vmem:[#allocation16 + $0x110] sm:$0xff]  ;;  %v1565_v59 = vld [vmem:[%s5378_s10 + $0xc8] sm:$0xff] }
 0x3df   :  { %3740 = vtanh.f32 %v1248_v55  ;;  %v1056_v8 = vadd.f32 %v1055_v62, %v768_v22  ;;  %v1057_v9 = vpop.f32.mrb[41].mxu0  ;;  %3425 = vmatprep.subr.bf16.mxu0 %v3424_v56  ;;  %v3364_v11 = vpack.c.bf16 %v3731_v60, %v3727_v39  ;;  %v1435_v0 = vmul.f32 %v3731_v60, %v3731_v60  ;;  %v1191_v56 = vld [vmem:[#allocation16 + $0x118] sm:$0xff]  ;;  %v1566_v60 = vld [vmem:[%s5378_s10 + $0xd0] sm:$0xff] }
 0x3e0   :  { %3742 = vtanh.f32 %v1249_v61  ;;  %v1058_v15 = vadd.f32 %v1057_v9, %v769_v52  ;;  %3427 = vmatpush1.bf16.msra.mxu0 %v3426_v53  ;;  %v1498_v18 = vsub.f32 1.0, %v1434_v6  ;;  %v1625_v31 = vmul.f32 %v1561_v13, %v1497_v5  ;;  %v1564_v53 = vld [vmem:[%s5378_s10 + $0xc0] sm:$0xff]  ;;  %v713_v7 = vld [vmem:[#allocation14 + $0x138] sm:$0xff]  ;;  %v1192_v13 = vld [vmem:[#allocation16 + $0x120] sm:$0xff] }
 0x3e1   :  { %v4901_v19 = vpop.eup %3732  ;;  %v1250_v20 = vadd.f32 %v1186_v63, %v1056_v8  ;;  %3365 = vmatprep.subr.bf16.mxu1 %v3364_v11  ;;  %v1499_v24 = vsub.f32 1.0, %v1435_v0  ;;  %v774_v42 = vmul.f32 %v710_v33, %v4573_v12  ;;  %v775_v62 = vmul.f32 %v711_v43, %v4573_v12  ;;  %v1567_v63 = vld [vmem:[%s5378_s10 + $0xd8] sm:$0xff] }
 0x3e2   :  { %v3735_v26 = vpop.eup %3734  ;;  %v1251_v28 = vadd.f32 %v1187_v10, %v1058_v15  ;;  %v1061_v29 = vpop.f32.mrb[42].mxu0  ;;  %3367 = vmatpush1.bf16.msra.mxu1 %v3366_v3  ;;  %v1626_v32 = vmul.f32 %v1562_v14, %v1498_v18  ;;  %v1436_v34 = vmul.f32 %v4901_v19, %v4901_v19  ;;  %v776_v6 = vmul.f32 %v712_v50, %v4573_v12 }
 0x3e3   :  { %3744 = vtanh.f32 %v1250_v20  ;;  %v1062_v35 = vadd.f32 %v1061_v29, %v770_v57  ;;  %v1063_v1 = vpop.f32.mrb[43].mxu0  ;;  %v1627_v22 = vmul.f32 %v1563_v17, %v1499_v24  ;;  %v1437_v36 = vmul.f32 %v3735_v26, %v3735_v26  ;;  %v1193_v20 = vld [vmem:[#allocation16 + $0x128] sm:$0xff] }
 0x3e4   :  { %3746 = vtanh.f32 %v1251_v28  ;;  %v1064_v37 = vadd.f32 %v1063_v1, %v771_v16  ;;  %v3430_v39 = vpack.c.bf16 %v1626_v32, %v1624_v25  ;;  %v1500_v44 = vsub.f32 1.0, %v1436_v34  ;;  %v714_v16 = vld [vmem:[#allocation14 + $0x140] sm:$0xff]  ;;  %v715_v32 = vld [vmem:[#allocation14 + $0x148] sm:$0xff] }
 0x3e5   :  { %v3737_v40 = vpop.eup %3736  ;;  %v1252_v41 = vadd.f32 %v1188_v30, %v1062_v35  ;;  %v3428_v27 = vpack.c.bf16 %v1627_v22, %v1625_v31  ;;  %v1501_v51 = vsub.f32 1.0, %v1437_v36  ;;  %v777_v25 = vmul.f32 %v713_v7, %v4573_v12  ;;  %v716_v36 = vld [vmem:[#allocation14 + $0x150] sm:$0xff] }
 0x3e6   :  { %v3739_v45 = vpop.eup %3738  ;;  %v1253_v46 = vadd.f32 %v1189_v2, %v1064_v37  ;;  %v1067_v47 = vpop.f32.mrb[44].mxu0  ;;  %v3370_v49 = vpack.c.bf16 %v3737_v40, %v4901_v19  ;;  %v1438_v52 = vmul.f32 %v3737_v40, %v3737_v40  ;;  %v1628_v9 = vmul.f32 %v1564_v53, %v1500_v44  ;;  %v1194_v2 = vld [vmem:[#allocation16 + $0x130] sm:$0xff]  ;;  %v1569_v44 = vld [vmem:[%s5378_s10 + $0xe8] sm:$0xff] }
 0x3e7   :  { %3748 = vtanh.f32 %v1252_v41  ;;  %v1068_v54 = vadd.f32 %v1067_v47, %v772_v21  ;;  %v1069_v55 = vpop.f32.mrb[45].mxu0  ;;  %3429 = vmatprep.subr.bf16.mxu0 %v3428_v27  ;;  %v3368_v57 = vpack.c.bf16 %v3739_v45, %v3735_v26  ;;  %v1439_v58 = vmul.f32 %v3739_v45, %v3739_v45  ;;  %v1195_v27 = vld [vmem:[#allocation16 + $0x138] sm:$0xff]  ;;  %v1570_v45 = vld [vmem:[%s5378_s10 + $0xf0] sm:$0xff] }
 0x3e8   :  { %3750 = vtanh.f32 %v1253_v46  ;;  %v1070_v61 = vadd.f32 %v1069_v55, %v773_v38  ;;  %3431 = vmatpush1.bf16.msra.mxu0 %v3430_v39  ;;  %v1502_v3 = vsub.f32 1.0, %v1438_v52  ;;  %v1629_v14 = vmul.f32 %v1565_v59, %v1501_v51  ;;  %v1568_v39 = vld [vmem:[%s5378_s10 + $0xe0] sm:$0xff]  ;;  %v717_v53 = vld [vmem:[#allocation14 + $0x158] sm:$0xff]  ;;  %v1196_v59 = vld [vmem:[#allocation16 + $0x140] sm:$0xff] }
 0x3e9   :  { %v4922_v4 = vpop.eup %3740  ;;  %v1254_v5 = vadd.f32 %v1190_v48, %v1068_v54  ;;  %3369 = vmatprep.subr.bf16.mxu1 %v3368_v57  ;;  %v1503_v8 = vsub.f32 1.0, %v1439_v58  ;;  %v778_v31 = vmul.f32 %v714_v16, %v4573_v12  ;;  %v779_v47 = vmul.f32 %v715_v32, %v4573_v12  ;;  %v1571_v48 = vld [vmem:[%s5378_s10 + $0xf8] sm:$0xff] }
 0x3ea   :  { %v3743_v10 = vpop.eup %3742  ;;  %v1255_v11 = vadd.f32 %v1191_v56, %v1070_v61  ;;  %v1073_v0 = vpop.f32.mrb[46].mxu0  ;;  %3371 = vmatpush1.bf16.msra.mxu1 %v3370_v49  ;;  %v1630_v15 = vmul.f32 %v1566_v60, %v1502_v3  ;;  %v1440_v17 = vmul.f32 %v4922_v4, %v4922_v4  ;;  %v780_v52 = vmul.f32 %v716_v36, %v4573_v12 }
 0x3eb   :  { %3752 = vtanh.f32 %v1254_v5  ;;  %v1074_v18 = vadd.f32 %v1073_v0, %v774_v42  ;;  %v1075_v19 = vpop.f32.mrb[47].mxu0  ;;  %v1631_v21 = vmul.f32 %v1567_v63, %v1503_v8  ;;  %v1441_v23 = vmul.f32 %v3743_v10, %v3743_v10  ;;  %v1197_v5 = vld [vmem:[#allocation16 + $0x148] sm:$0xff] }
 0x3ec   :  { %3754 = vtanh.f32 %v1255_v11  ;;  %v1076_v24 = vadd.f32 %v1075_v19, %v775_v62  ;;  %v3434_v26 = vpack.c.bf16 %v1630_v15, %v1628_v9  ;;  %v1504_v33 = vsub.f32 1.0, %v1440_v17  ;;  %v718_v62 = vld [vmem:[#allocation14 + $0x160] sm:$0xff]  ;;  %v719_v15 = vld [vmem:[#allocation14 + $0x168] sm:$0xff] }
 0x3ed   :  { %v3745_v28 = vpop.eup %3744  ;;  %v1256_v29 = vadd.f32 %v1192_v13, %v1074_v18  ;;  %v3432_v30 = vpack.c.bf16 %v1631_v21, %v1629_v14  ;;  %v1505_v37 = vsub.f32 1.0, %v1441_v23  ;;  %v781_v9 = vmul.f32 %v717_v53, %v4573_v12  ;;  %v720_v23 = vld [vmem:[#allocation14 + $0x170] sm:$0xff] }
 0x3ee   :  { %v3747_v34 = vpop.eup %3746  ;;  %v1257_v35 = vadd.f32 %v1193_v20, %v1076_v24  ;;  %v1079_v1 = vpop.f32.mrb[48].mxu0  ;;  %v3374_v22 = vpack.c.bf16 %v3745_v28, %v4922_v4  ;;  %v1442_v38 = vmul.f32 %v3745_v28, %v3745_v28  ;;  %v1632_v55 = vmul.f32 %v1568_v39, %v1504_v33  ;;  %v1198_v20 = vld [vmem:[#allocation16 + $0x150] sm:$0xff]  ;;  %v1573_v33 = vld [vmem:[%s5378_s10 + $0x108] sm:$0xff] }
 0x3ef   :  { %3756 = vtanh.f32 %v1256_v29  ;;  %v1080_v40 = vadd.f32 %v1079_v1, %v776_v6  ;;  %v1081_v41 = vpop.f32.mrb[49].mxu0  ;;  %3433 = vmatprep.subr.bf16.mxu0 %v3432_v30  ;;  %v3372_v42 = vpack.c.bf16 %v3747_v34, %v3743_v10  ;;  %v1443_v43 = vmul.f32 %v3747_v34, %v3747_v34  ;;  %v1199_v30 = vld [vmem:[#allocation16 + $0x158] sm:$0xff]  ;;  %v1574_v34 = vld [vmem:[%s5378_s10 + $0x110] sm:$0xff] }
 0x3f0   :  { %3758 = vtanh.f32 %v1257_v35  ;;  %v1082_v46 = vadd.f32 %v1081_v41, %v777_v25  ;;  %3435 = vmatpush1.bf16.msra.mxu0 %v3434_v26  ;;  %v1506_v49 = vsub.f32 1.0, %v1442_v38  ;;  %v1633_v60 = vmul.f32 %v1569_v44, %v1505_v37  ;;  %v1572_v26 = vld [vmem:[%s5378_s10 + $0x100] sm:$0xff]  ;;  %v721_v39 = vld [vmem:[#allocation14 + $0x178] sm:$0xff]  ;;  %v1200_v44 = vld [vmem:[#allocation16 + $0x160] sm:$0xff] }
 0x3f1   :  { %v4943_v50 = vpop.eup %3748  ;;  %v1258_v51 = vadd.f32 %v1194_v2, %v1080_v40  ;;  %3373 = vmatprep.subr.bf16.mxu1 %v3372_v42  ;;  %v1507_v54 = vsub.f32 1.0, %v1443_v43  ;;  %v782_v14 = vmul.f32 %v718_v62, %v4573_v12  ;;  %v783_v1 = vmul.f32 %v719_v15, %v4573_v12  ;;  %v1575_v2 = vld [vmem:[%s5378_s10 + $0x118] sm:$0xff] }
 0x3f2   :  { %v3751_v56 = vpop.eup %3750  ;;  %v1259_v57 = vadd.f32 %v1195_v27, %v1082_v46  ;;  %v1085_v58 = vpop.f32.mrb[50].mxu0  ;;  %3375 = vmatpush1.bf16.msra.mxu1 %v3374_v22  ;;  %v1634_v61 = vmul.f32 %v1570_v45, %v1506_v49  ;;  %v1444_v63 = vmul.f32 %v4943_v50, %v4943_v50  ;;  %v784_v38 = vmul.f32 %v720_v23, %v4573_v12 }
 0x3f3   :  { %3760 = vtanh.f32 %v1258_v51  ;;  %v1086_v3 = vadd.f32 %v1085_v58, %v778_v31  ;;  %v1087_v4 = vpop.f32.mrb[51].mxu0  ;;  %v1635_v6 = vmul.f32 %v1571_v48, %v1507_v54  ;;  %v1445_v7 = vmul.f32 %v3751_v56, %v3751_v56  ;;  %v1201_v51 = vld [vmem:[#allocation16 + $0x168] sm:$0xff] }
 0x3f4   :  { %3762 = vtanh.f32 %v1259_v57  ;;  %v1088_v8 = vadd.f32 %v1087_v4, %v779_v47  ;;  %v3438_v10 = vpack.c.bf16 %v1634_v61, %v1632_v55  ;;  %v1508_v16 = vsub.f32 1.0, %v1444_v63  ;;  %v722_v47 = vld [vmem:[#allocation14 + $0x180] sm:$0xff]  ;;  %v723_v61 = vld [vmem:[#allocation14 + $0x188] sm:$0xff] }
 0x3f5   :  { %v3753_v11 = vpop.eup %3752  ;;  %v1260_v0 = vadd.f32 %v1196_v59, %v1086_v3  ;;  %v3436_v13 = vpack.c.bf16 %v1635_v6, %v1633_v60  ;;  %v1509_v24 = vsub.f32 1.0, %v1445_v7  ;;  %v785_v55 = vmul.f32 %v721_v39, %v4573_v12  ;;  %v724_v7 = vld [vmem:[#allocation14 + $0x190] sm:$0xff] }
 0x3f6   :  { %v3755_v17 = vpop.eup %3754  ;;  %v1261_v18 = vadd.f32 %v1197_v5, %v1088_v8  ;;  %v1091_v19 = vpop.f32.mrb[52].mxu0  ;;  %v3378_v21 = vpack.c.bf16 %v3753_v11, %v4943_v50  ;;  %v1446_v25 = vmul.f32 %v3753_v11, %v3753_v11  ;;  %v1636_v41 = vmul.f32 %v1572_v26, %v1508_v16  ;;  %v1202_v5 = vld [vmem:[#allocation16 + $0x170] sm:$0xff]  ;;  %v1577_v16 = vld [vmem:[%s5378_s10 + $0x128] sm:$0xff] }
 0x3f7   :  { %3764 = vtanh.f32 %v1260_v0  ;;  %v1092_v28 = vadd.f32 %v1091_v19, %v780_v52  ;;  %v1093_v29 = vpop.f32.mrb[53].mxu0  ;;  %3437 = vmatprep.subr.bf16.mxu0 %v3436_v13  ;;  %v3376_v31 = vpack.c.bf16 %v3755_v17, %v3751_v56  ;;  %v1447_v32 = vmul.f32 %v3755_v17, %v3755_v17  ;;  %v1203_v13 = vld [vmem:[#allocation16 + $0x178] sm:$0xff]  ;;  %v1578_v17 = vld [vmem:[%s5378_s10 + $0x130] sm:$0xff] }
 0x3f8   :  { %3766 = vtanh.f32 %v1261_v18  ;;  %v1094_v35 = vadd.f32 %v1093_v29, %v781_v9  ;;  %3439 = vmatpush1.bf16.msra.mxu0 %v3438_v10  ;;  %v1510_v22 = vsub.f32 1.0, %v1446_v25  ;;  %v1637_v45 = vmul.f32 %v1573_v33, %v1509_v24  ;;  %v1576_v10 = vld [vmem:[%s5378_s10 + $0x120] sm:$0xff]  ;;  %v725_v26 = vld [vmem:[#allocation14 + $0x198] sm:$0xff]  ;;  %v1204_v33 = vld [vmem:[#allocation16 + $0x180] sm:$0xff] }
 0x3f9   :  { %v4964_v36 = vpop.eup %3756  ;;  %v1262_v37 = vadd.f32 %v1198_v20, %v1092_v28  ;;  %3377 = vmatprep.subr.bf16.mxu1 %v3376_v31  ;;  %v1511_v40 = vsub.f32 1.0, %v1447_v32  ;;  %v786_v60 = vmul.f32 %v722_v47, %v4573_v12  ;;  %v787_v19 = vmul.f32 %v723_v61, %v4573_v12  ;;  %v1579_v20 = vld [vmem:[%s5378_s10 + $0x138] sm:$0xff] }
 0x3fa   :  { %v3759_v27 = vpop.eup %3758  ;;  %v1263_v42 = vadd.f32 %v1199_v30, %v1094_v35  ;;  %v1097_v43 = vpop.f32.mrb[54].mxu0  ;;  %3379 = vmatpush1.bf16.msra.mxu1 %v3378_v21  ;;  %v1638_v46 = vmul.f32 %v1574_v34, %v1510_v22  ;;  %v1448_v48 = vmul.f32 %v4964_v36, %v4964_v36  ;;  %v788_v25 = vmul.f32 %v724_v7, %v4573_v12 }
 0x3fb   :  { %3768 = vtanh.f32 %v1262_v37  ;;  %v1098_v49 = vadd.f32 %v1097_v43, %v782_v14  ;;  %v1099_v50 = vpop.f32.mrb[55].mxu0  ;;  %v1639_v52 = vmul.f32 %v1575_v2, %v1511_v40  ;;  %v1449_v53 = vmul.f32 %v3759_v27, %v3759_v27  ;;  %v1205_v37 = vld [vmem:[#allocation16 + $0x188] sm:$0xff] }
 0x3fc   :  { %3770 = vtanh.f32 %v1263_v42  ;;  %v1100_v54 = vadd.f32 %v1099_v50, %v783_v1  ;;  %v3442_v56 = vpack.c.bf16 %v1638_v46, %v1636_v41  ;;  %v1512_v62 = vsub.f32 1.0, %v1448_v48  ;;  %v726_v1 = vld [vmem:[#allocation14 + $0x1a0] sm:$0xff]  ;;  %v727_v46 = vld [vmem:[#allocation14 + $0x1a8] sm:$0xff] }
 0x3fd   :  { %v3761_v57 = vpop.eup %3760  ;;  %v1264_v58 = vadd.f32 %v1200_v44, %v1098_v49  ;;  %v3440_v59 = vpack.c.bf16 %v1639_v52, %v1637_v45  ;;  %v1513_v8 = vsub.f32 1.0, %v1449_v53  ;;  %v789_v41 = vmul.f32 %v725_v26, %v4573_v12  ;;  %v728_v53 = vld [vmem:[#allocation14 + $0x1b0] sm:$0xff] }
 0x3fe   :  { %v3763_v63 = vpop.eup %3762  ;;  %v1265_v3 = vadd.f32 %v1201_v51, %v1100_v54  ;;  %v1103_v4 = vpop.f32.mrb[56].mxu0  ;;  %v3382_v6 = vpack.c.bf16 %v3761_v57, %v4964_v36  ;;  %v1450_v9 = vmul.f32 %v3761_v57, %v3761_v57  ;;  %v1640_v29 = vmul.f32 %v1576_v10, %v1512_v62  ;;  %v1206_v51 = vld [vmem:[#allocation16 + $0x190] sm:$0xff]  ;;  %v1581_v62 = vld [vmem:[%s5378_s10 + $0x148] sm:$0xff] }
 0x3ff   :  { %3772 = vtanh.f32 %v1264_v58  ;;  %v1104_v11 = vadd.f32 %v1103_v4, %v784_v38  ;;  %v1105_v0 = vpop.f32.mrb[57].mxu0  ;;  %3441 = vmatprep.subr.bf16.mxu0 %v3440_v59  ;;  %v3380_v14 = vpack.c.bf16 %v3763_v63, %v3759_v27  ;;  %v1451_v15 = vmul.f32 %v3763_v63, %v3763_v63  ;;  %v1207_v59 = vld [vmem:[#allocation16 + $0x198] sm:$0xff]  ;;  %v1582_v63 = vld [vmem:[%s5378_s10 + $0x150] sm:$0xff] }
 0x400   :  { %3774 = vtanh.f32 %v1265_v3  ;;  %v1106_v18 = vadd.f32 %v1105_v0, %v785_v55  ;;  %3443 = vmatpush1.bf16.msra.mxu0 %v3442_v56  ;;  %v1514_v21 = vsub.f32 1.0, %v1450_v9  ;;  %v1641_v34 = vmul.f32 %v1577_v16, %v1513_v8  ;;  %v1580_v56 = vld [vmem:[%s5378_s10 + $0x140] sm:$0xff]  ;;  %v729_v10 = vld [vmem:[#allocation14 + $0x1b8] sm:$0xff]  ;;  %v1208_v16 = vld [vmem:[#allocation16 + $0x1a0] sm:$0xff] }
 0x401   :  { %v4985_v23 = vpop.eup %3764  ;;  %v1266_v24 = vadd.f32 %v1202_v5, %v1104_v11  ;;  %3381 = vmatprep.subr.bf16.mxu1 %v3380_v14  ;;  %v1515_v28 = vsub.f32 1.0, %v1451_v15  ;;  %v790_v45 = vmul.f32 %v726_v1, %v4573_v12  ;;  %v791_v4 = vmul.f32 %v727_v46, %v4573_v12  ;;  %v1583_v5 = vld [vmem:[%s5378_s10 + $0x158] sm:$0xff] }
 0x402   :  { %v3767_v30 = vpop.eup %3766  ;;  %v1267_v31 = vadd.f32 %v1203_v13, %v1106_v18  ;;  %v1109_v32 = vpop.f32.mrb[58].mxu0  ;;  %3383 = vmatpush1.bf16.msra.mxu1 %v3382_v6  ;;  %v1642_v35 = vmul.f32 %v1578_v17, %v1514_v21  ;;  %v1452_v2 = vmul.f32 %v4985_v23, %v4985_v23  ;;  %v792_v9 = vmul.f32 %v728_v53, %v4573_v12 }
 0x403   :  { %3776 = vtanh.f32 %v1266_v24  ;;  %v1110_v22 = vadd.f32 %v1109_v32, %v786_v60  ;;  %v1111_v36 = vpop.f32.mrb[59].mxu0  ;;  %v1643_v38 = vmul.f32 %v1579_v20, %v1515_v28  ;;  %v1453_v39 = vmul.f32 %v3767_v30, %v3767_v30  ;;  %v1209_v24 = vld [vmem:[#allocation16 + $0x1a8] sm:$0xff] }
 0x404   :  { %3778 = vtanh.f32 %v1267_v31  ;;  %v1112_v40 = vadd.f32 %v1111_v36, %v787_v19  ;;  %v3446_v27 = vpack.c.bf16 %v1642_v35, %v1640_v29  ;;  %v1516_v47 = vsub.f32 1.0, %v1452_v2  ;;  %v730_v19 = vld [vmem:[#allocation14 + $0x1c0] sm:$0xff]  ;;  %v731_v35 = vld [vmem:[#allocation14 + $0x1c8] sm:$0xff] }
 0x405   :  { %v3769_v42 = vpop.eup %3768  ;;  %v1268_v43 = vadd.f32 %v1204_v33, %v1110_v22  ;;  %v3444_v44 = vpack.c.bf16 %v1643_v38, %v1641_v34  ;;  %v1517_v54 = vsub.f32 1.0, %v1453_v39  ;;  %v793_v29 = vmul.f32 %v729_v10, %v4573_v12  ;;  %v732_v39 = vld [vmem:[#allocation14 + $0x1d0] sm:$0xff] }
 0x406   :  { %v3771_v48 = vpop.eup %3770  ;;  %v1269_v49 = vadd.f32 %v1205_v37, %v1112_v40  ;;  %v1115_v50 = vpop.f32.mrb[60].mxu0  ;;  %v3386_v52 = vpack.c.bf16 %v3769_v42, %v4985_v23  ;;  %v1454_v55 = vmul.f32 %v3769_v42, %v3769_v42  ;;  %v1644_v0 = vmul.f32 %v1580_v56, %v1516_v47  ;;  %v1210_v37 = vld [vmem:[#allocation16 + $0x1b0] sm:$0xff]  ;;  %v1585_v47 = vld [vmem:[%s5378_s10 + $0x168] sm:$0xff] }
 0x407   :  { %3780 = vtanh.f32 %v1268_v43  ;;  %v1116_v57 = vadd.f32 %v1115_v50, %v788_v25  ;;  %v1117_v58 = vpop.f32.mrb[61].mxu0  ;;  %3445 = vmatprep.subr.bf16.mxu0 %v3444_v44  ;;  %v3384_v60 = vpack.c.bf16 %v3771_v48, %v3767_v30  ;;  %v1455_v61 = vmul.f32 %v3771_v48, %v3771_v48  ;;  %v1211_v44 = vld [vmem:[#allocation16 + $0x1b8] sm:$0xff]  ;;  %v1586_v48 = vld [vmem:[%s5378_s10 + $0x170] sm:$0xff] }
 0x408   :  { %3782 = vtanh.f32 %v1269_v49  ;;  %v1118_v3 = vadd.f32 %v1117_v58, %v789_v41  ;;  %3447 = vmatpush1.bf16.msra.mxu0 %v3446_v27  ;;  %v1518_v6 = vsub.f32 1.0, %v1454_v55  ;;  %v1645_v17 = vmul.f32 %v1581_v62, %v1517_v54  ;;  %v1584_v27 = vld [vmem:[%s5378_s10 + $0x160] sm:$0xff]  ;;  %v733_v56 = vld [vmem:[#allocation14 + $0x1d8] sm:$0xff]  ;;  %v1212_v62 = vld [vmem:[#allocation16 + $0x1c0] sm:$0xff] }
 0x409   :  { %v5006_v7 = vpop.eup %3772  ;;  %v1270_v8 = vadd.f32 %v1206_v51, %v1116_v57  ;;  %3385 = vmatprep.subr.bf16.mxu1 %v3384_v60  ;;  %v1519_v11 = vsub.f32 1.0, %v1455_v61  ;;  %v794_v34 = vmul.f32 %v730_v19, %v4573_v12  ;;  %v795_v50 = vmul.f32 %v731_v35, %v4573_v12  ;;  %v1587_v51 = vld [vmem:[%s5378_s10 + $0x178] sm:$0xff] }
 0x40a   :  { %v3775_v13 = vpop.eup %3774  ;;  %v1271_v14 = vadd.f32 %v1207_v59, %v1118_v3  ;;  %v1121_v15 = vpop.f32.mrb[62].mxu0  ;;  %3387 = vmatpush1.bf16.msra.mxu1 %v3386_v52  ;;  %v1646_v18 = vmul.f32 %v1582_v63, %v1518_v6  ;;  %v1456_v20 = vmul.f32 %v5006_v7, %v5006_v7  ;;  %v796_v55 = vmul.f32 %v732_v39, %v4573_v12 }
 0x40b   :  { %3784 = vtanh.f32 %v1270_v8  ;;  %v1122_v21 = vadd.f32 %v1121_v15, %v790_v45  ;;  %v1123_v23 = vpop.f32.mrb[63].mxu0  ;;  %v1647_v25 = vmul.f32 %v1583_v5, %v1519_v11  ;;  %v1457_v26 = vmul.f32 %v3775_v13, %v3775_v13  ;;  %v1213_v8 = vld [vmem:[#allocation16 + $0x1c8] sm:$0xff] }
 0x40c   :  { %3786 = vtanh.f32 %v1271_v14  ;;  %v1124_v28 = vadd.f32 %v1123_v23, %v791_v4  ;;  %v3450_v30 = vpack.c.bf16 %v1646_v18, %v1644_v0  ;;  %v1520_v1 = vsub.f32 1.0, %v1456_v20  ;;  %v734_v4 = vld [vmem:[#allocation14 + $0x1e0] sm:$0xff]  ;;  %v735_v18 = vld [vmem:[#allocation14 + $0x1e8] sm:$0xff] }
 0x40d   :  { %v3777_v31 = vpop.eup %3776  ;;  %v1272_v32 = vadd.f32 %v1208_v16, %v1122_v21  ;;  %v3448_v33 = vpack.c.bf16 %v1647_v25, %v1645_v17  ;;  %v1521_v40 = vsub.f32 1.0, %v1457_v26  ;;  %v797_v0 = vmul.f32 %v733_v56, %v4573_v12  ;;  %v736_v26 = vld [vmem:[#allocation14 + $0x1f0] sm:$0xff] }
 0x40e   :  { %v3779_v2 = vpop.eup %3778  ;;  %v1273_v22 = vadd.f32 %v1209_v24, %v1124_v28  ;;  %v1127_v36 = vpop.f32.mrb[64].mxu0  ;;  %v3390_v38 = vpack.c.bf16 %v3777_v31, %v5006_v7  ;;  %v1458_v41 = vmul.f32 %v3777_v31, %v3777_v31  ;;  %v1648_v58 = vmul.f32 %v1584_v27, %v1520_v1  ;;  %v1214_v24 = vld [vmem:[#allocation16 + $0x1d0] sm:$0xff]  ;;  %v1589_v1 = vld [vmem:[%s5378_s10 + $0x188] sm:$0xff] }
 0x40f   :  { %3788 = vtanh.f32 %v1272_v32  ;;  %v1128_v42 = vadd.f32 %v1127_v36, %v792_v9  ;;  %v1129_v43 = vpop.f32.mrb[65].mxu0  ;;  %3449 = vmatprep.subr.bf16.mxu0 %v3448_v33  ;;  %v3388_v45 = vpack.c.bf16 %v3779_v2, %v3775_v13  ;;  %v1459_v46 = vmul.f32 %v3779_v2, %v3779_v2  ;;  %v1215_v33 = vld [vmem:[#allocation16 + $0x1d8] sm:$0xff]  ;;  %v1590_v2 = vld [vmem:[%s5378_s10 + $0x190] sm:$0xff] }
 0x410   :  { %3790 = vtanh.f32 %v1273_v22  ;;  %v1130_v49 = vadd.f32 %v1129_v43, %v793_v29  ;;  %3451 = vmatpush1.bf16.msra.mxu0 %v3450_v30  ;;  %v1522_v52 = vsub.f32 1.0, %v1458_v41  ;;  %v1649_v63 = vmul.f32 %v1585_v47, %v1521_v40  ;;  %v1588_v30 = vld [vmem:[%s5378_s10 + $0x180] sm:$0xff]  ;;  %v737_v27 = vld [vmem:[#allocation14 + $0x1f8] sm:$0xff]  ;;  %v1216_v47 = vld [vmem:[#allocation16 + $0x1e0] sm:$0xff] }
 0x411   :  { %v5027_v53 = vpop.eup %3780  ;;  %v1274_v54 = vadd.f32 %v1210_v37, %v1128_v42  ;;  %3389 = vmatprep.subr.bf16.mxu1 %v3388_v45  ;;  %v1523_v57 = vsub.f32 1.0, %v1459_v46  ;;  %v798_v17 = vmul.f32 %v734_v4, %v4573_v12  ;;  %v799_v36 = vmul.f32 %v735_v18, %v4573_v12  ;;  %v1591_v37 = vld [vmem:[%s5378_s10 + $0x198] sm:$0xff] }
 0x412   :  { %v3783_v59 = vpop.eup %3782  ;;  %v1275_v60 = vadd.f32 %v1211_v44, %v1130_v49  ;;  %v1133_v61 = vpop.f32.mrb[66].mxu0  ;;  %3391 = vmatpush1.bf16.msra.mxu1 %v3390_v38  ;;  %v1650_v3 = vmul.f32 %v1586_v48, %v1522_v52  ;;  %v1460_v5 = vmul.f32 %v5027_v53, %v5027_v53  ;;  %v800_v41 = vmul.f32 %v736_v26, %v4573_v12 }
 0x413   :  { %3792 = vtanh.f32 %v1274_v54  ;;  %v1134_v6 = vadd.f32 %v1133_v61, %v794_v34  ;;  %v1135_v7 = vpop.f32.mrb[67].mxu0  ;;  %v1651_v9 = vmul.f32 %v1587_v51, %v1523_v57  ;;  %v1461_v10 = vmul.f32 %v3783_v59, %v3783_v59 }
 0x414   :  { %3794 = vtanh.f32 %v1275_v60  ;;  %v1136_v11 = vadd.f32 %v1135_v7, %v795_v50  ;;  %v3454_v13 = vpack.c.bf16 %v1650_v3, %v1648_v58  ;;  %v1524_v19 = vsub.f32 1.0, %v1460_v5  ;;  %v1218_v5 = vld [vmem:[#allocation16 + $0x1f0] sm:$0xff] }
 0x415   :  { %v3785_v14 = vpop.eup %3784  ;;  %v1276_v15 = vadd.f32 %v1212_v62, %v1134_v6  ;;  %v3452_v16 = vpack.c.bf16 %v1651_v9, %v1649_v63  ;;  %v1525_v28 = vsub.f32 1.0, %v1461_v10  ;;  %v801_v57 = vmul.f32 %v737_v27, %v4573_v12  ;;  %v1592_v12 = vld [vmem:[%s5378_s10 + $0x1a0] sm:$0xff]  ;;  %v1599_v27 = vld [vmem:[%s5378_s10 + $0x1d8] sm:$0xff] }
 0x416   :  { %v3787_v20 = vpop.eup %3786  ;;  %v1277_v21 = vadd.f32 %v1213_v8, %v1136_v11  ;;  %v1139_v23 = vpop.f32.mrb[68].mxu0  ;;  %v3394_v25 = vpack.c.bf16 %v3785_v14, %v5027_v53  ;;  %v1462_v29 = vmul.f32 %v3785_v14, %v3785_v14  ;;  %v1652_v43 = vmul.f32 %v1588_v30, %v1524_v19  ;;  %v1217_v53 = vld [vmem:[#allocation16 + $0x1e8] sm:$0xff]  ;;  %v1219_v11 = vld [vmem:[#allocation16 + $0x1f8] sm:$0xff]  ;;  %v1594_v14 = vld [vmem:[%s5378_s10 + $0x1b0] sm:$0xff] }
 0x417   :  { %3796 = vtanh.f32 %v1276_v15  ;;  %v1140_v31 = vadd.f32 %v1139_v23, %v796_v55  ;;  %v1141_v32 = vpop.f32.mrb[69].mxu0  ;;  %3453 = vmatprep.subr.bf16.mxu0 %v3452_v16  ;;  %v3392_v34 = vpack.c.bf16 %v3787_v20, %v3783_v59  ;;  %v1463_v35 = vmul.f32 %v3787_v20, %v3787_v20  ;;  %v1593_v16 = vld [vmem:[%s5378_s10 + $0x1a8] sm:$0xff] }
 0x418   :  { %3798 = vtanh.f32 %v1277_v21  ;;  %v1142_v22 = vadd.f32 %v1141_v32, %v797_v0  ;;  %3455 = vmatpush1.bf16.msra.mxu0 %v3454_v13  ;;  %v1526_v38 = vsub.f32 1.0, %v1462_v29  ;;  %v1653_v48 = vmul.f32 %v1589_v1, %v1525_v28 }
 0x419   :  { %v3789_v39 = vpop.eup %3788  ;;  %v1278_v40 = vadd.f32 %v1214_v24, %v1140_v31  ;;  %3393 = vmatprep.subr.bf16.mxu1 %v3392_v34  ;;  %v1527_v42 = vsub.f32 1.0, %v1463_v35 }
 0x41a   :  { %v3791_v44 = vpop.eup %3790  ;;  %v1279_v45 = vadd.f32 %v1215_v33, %v1142_v22  ;;  %v1145_v46 = vpop.f32.mrb[70].mxu0  ;;  %3395 = vmatpush1.bf16.msra.mxu1 %v3394_v25  ;;  %v1654_v49 = vmul.f32 %v1590_v2, %v1526_v38  ;;  %v1464_v50 = vmul.f32 %v3789_v39, %v3789_v39 }
 0x41b   :  { %3800 = vtanh.f32 %v1278_v40  ;;  %v1146_v51 = vadd.f32 %v1145_v46, %v798_v17  ;;  %v1147_v52 = vpop.f32.mrb[71].mxu0  ;;  %v1655_v54 = vmul.f32 %v1591_v37, %v1527_v42  ;;  %v1465_v55 = vmul.f32 %v3791_v44, %v3791_v44  ;;  %v1595_v17 = vld [vmem:[%s5378_s10 + $0x1b8] sm:$0xff]  ;;  %v1598_v40 = vld [vmem:[%s5378_s10 + $0x1d0] sm:$0xff] }
 0x41c   :  { %3802 = vtanh.f32 %v1279_v45  ;;  %v1148_v56 = vadd.f32 %v1147_v52, %v799_v36  ;;  %v3458_v58 = vpack.c.bf16 %v1654_v49, %v1652_v43  ;;  %v1528_v62 = vsub.f32 1.0, %v1464_v50 }
 0x41d   :  { %v3793_v59 = vpop.eup %3792  ;;  %v1280_v60 = vadd.f32 %v1216_v47, %v1146_v51  ;;  %v3456_v61 = vpack.c.bf16 %v1655_v54, %v1653_v48  ;;  %v1529_v7 = vsub.f32 1.0, %v1465_v55 }
 0x41e   :  { %v3795_v63 = vpop.eup %3794  ;;  %v1281_v3 = vadd.f32 %v1217_v53, %v1148_v56  ;;  %v1151_v4 = vpop.f32.mrb[72].mxu0  ;;  %v3398_v6 = vpack.c.bf16 %v3793_v59, %v3789_v39  ;;  %v1466_v8 = vmul.f32 %v3793_v59, %v3793_v59  ;;  %v1656_v25 = vmul.f32 %v1592_v12, %v1528_v62  ;;  %v1596_v39 = vld [vmem:[%s5378_s10 + $0x1c0] sm:$0xff] }
 0x41f   :  { %3804 = vtanh.f32 %v1280_v60  ;;  %v1152_v9 = vadd.f32 %v1151_v4, %v800_v41  ;;  %v1153_v10 = vpop.f32.mrb[73].mxu0  ;;  %3457 = vmatprep.subr.bf16.mxu0 %v3456_v61  ;;  %v3396_v0 = vpack.c.bf16 %v3795_v63, %v3791_v44  ;;  %v1467_v13 = vmul.f32 %v3795_v63, %v3795_v63  ;;  %v1597_v41 = vld [vmem:[%s5378_s10 + $0x1c8] sm:$0xff]  ;;  %v1600_v62 = vld [vmem:[%s5378_s10 + $0x1e0] sm:$0xff]  ;;  %v1602_v63 = vld [vmem:[%s5378_s10 + $0x1f0] sm:$0xff] }
 0x420   :  { %3806 = vtanh.f32 %v1281_v3  ;;  %v1154_v15 = vadd.f32 %v1153_v10, %v801_v57  ;;  %3459 = vmatpush1.bf16.msra.mxu0 %v3458_v58  ;;  %v1530_v18 = vsub.f32 1.0, %v1466_v8  ;;  %v1657_v29 = vmul.f32 %v1593_v16, %v1529_v7  ;;  %v1601_v3 = vld [vmem:[%s5378_s10 + $0x1e8] sm:$0xff]  ;;  %v1603_v4 = vld [vmem:[%s5378_s10 + $0x1f8] sm:$0xff]  ;;  %v1732_v7 = vld [vmem:[#allocation17] sm:$0xff]  ;;  %s4259_s10 = smov [#allocation23]  }
 0x421   :  { %v3797_v19 = vpop.eup %3796  ;;  %v1282_v20 = vadd.f32 %v1218_v5, %v1152_v9  ;;  %3397 = vmatprep.subr.bf16.mxu1 %v3396_v0  ;;  %v1531_v21 = vsub.f32 1.0, %v1467_v13  ;;  %v1735_v0 = vld [vmem:[#allocation17 + $0x18] sm:$0xff]  ;;  %v1736_v16 = vld [vmem:[#allocation17 + $0x20] sm:$0xff]  ;;  %s3236_s1 = sshll.u32 %s4259_s10, 4  ;;  %s3237_s1 = int_to_ptr.vmem [resolvable:$true] %s3236_s1 }
 0x422   :  { %v3799_v23 = vpop.eup %3798  ;;  %v1283_v24 = vadd.f32 %v1219_v11, %v1154_v15  ;;  %3399 = vmatpush1.bf16.msra.mxu1 %v3398_v6  ;;  %v1658_v26 = vmul.f32 %v1594_v14, %v1530_v18  ;;  %v1468_v28 = vmul.f32 %v3797_v19, %v3797_v19  ;;  %v1734_v14 = vld [vmem:[#allocation17 + $0x10] sm:$0xff]  ;;  %v1737_v15 = vld [vmem:[#allocation17 + $0x28] sm:$0xff]  ;;  %s4183_s22 = scalar_lea.vmem %s3237_s1, 256  ;;  %p4188_p5 = scmp.lt.s32.totalorder %s3237_s1, %s3237_s1 }
 0x423   :  { %3808 = vtanh.f32 %v1282_v20  ;;  %v1659_v30 = vmul.f32 %v1595_v17, %v1531_v21  ;;  %v1469_v31 = vmul.f32 %v3799_v23, %v3799_v23  ;;  %v1739_v17 = vld [vmem:[#allocation17 + $0x38] sm:$0xff]  ;;  %v1738_v18 = vld [vmem:[#allocation17 + $0x30] sm:$0xff]  ;;  %v1740_v20 = vld [vmem:[#allocation17 + $0x40] sm:$0xff]  ;;  %p4184_p4 = scmp.ne.s32.totalorder %s3237_s1, %s4183_s22  ;;  %p4189_p6 = scmp.lt.s32.totalorder %s4183_s22, %s4183_s22 }
 0x424   :  { %3810 = vtanh.f32 %v1283_v24  ;;  %v3462_v32 = vpack.c.bf16 %v1658_v26, %v1656_v25  ;;  %v1532_v22 = vsub.f32 1.0, %v1468_v28  ;;  %v1743_v21 = vld [vmem:[#allocation17 + $0x58] sm:$0xff]  ;;  %v1745_v24 = vld [vmem:[#allocation17 + $0x68] sm:$0xff]  ;;  %v1744_v25 = vld [vmem:[#allocation17 + $0x60] sm:$0xff] }
 0x425   :  { %v3801_v33 = vpop.eup %3800  ;;  %v3460_v34 = vpack.c.bf16 %v1659_v30, %v1657_v29  ;;  %v1533_v38 = vsub.f32 1.0, %v1469_v31  ;;  %v1747_v26 = vld [vmem:[#allocation17 + $0x78] sm:$0xff]  ;;  %v1746_v28 = vld [vmem:[#allocation17 + $0x70] sm:$0xff]  ;;  %v1749_v29 = vld [vmem:[#allocation17 + $0x88] sm:$0xff]  ;;  %p4190_p7 = por %p4189_p6, %p4188_p5 }
 0x426   :  { %v3803_v35 = vpop.eup %3802  ;;  %v3402_v1 = vpack.c.bf16 %v3801_v33, %v3797_v19  ;;  %v1470_v2 = vmul.f32 %v3801_v33, %v3801_v33  ;;  %v1660_v46 = vmul.f32 %v1596_v39, %v1532_v22  ;;  %v1741_v19 = vld [vmem:[#allocation17 + $0x48] sm:$0xff]  ;;  %v1748_v30 = vld [vmem:[#allocation17 + $0x80] sm:$0xff]  ;;  %v1751_v31 = vld [vmem:[#allocation17 + $0x98] sm:$0xff] }
 0x427   :  { %3461 = vmatprep.subr.bf16.mxu0 %v3460_v34  ;;  %v3400_v36 = vpack.c.bf16 %v3803_v35, %v3799_v23  ;;  %v1471_v37 = vmul.f32 %v3803_v35, %v3803_v35  ;;  %v1661_v49 = vmul.f32 %v1597_v41, %v1533_v38  ;;  %v1742_v23 = vld [vmem:[#allocation17 + $0x50] sm:$0xff]  ;;  %v1753_v33 = vld [vmem:[#allocation17 + $0xa8] sm:$0xff]  ;;  %v1752_v34 = vld [vmem:[#allocation17 + $0xa0] sm:$0xff]  ;;  %p4191_p8 = pnand %p4190_p7, %p4184_p4 }
 0x428   :  { %3463 = vmatpush1.bf16.msra.mxu0 %v3462_v32  ;;  %v1534_v42 = vsub.f32 1.0, %v1470_v2  ;;  %v1750_v32 = vld [vmem:[#allocation17 + $0x90] sm:$0xff]  ;;  %v1755_v35 = vld [vmem:[#allocation17 + $0xb8] sm:$0xff]  ;;  %v1757_v2 = vld [vmem:[#allocation17 + $0xc8] sm:$0xff] }
 0x429   :  { %v3805_v43 = vpop.eup %3804  ;;  %3401 = vmatprep.subr.bf16.mxu1 %v3400_v36  ;;  %v1535_v44 = vsub.f32 1.0, %v1471_v37  ;;  %v1756_v22 = vld [vmem:[#allocation17 + $0xc0] sm:$0xff]  ;;  %v1759_v36 = vld [vmem:[#allocation17 + $0xd8] sm:$0xff]  ;;  %v1758_v37 = vld [vmem:[#allocation17 + $0xd0] sm:$0xff] }
 0x42a   :  { %v3807_v45 = vpop.eup %3806  ;;  %3403 = vmatpush1.bf16.msra.mxu1 %v3402_v1  ;;  %v1662_v47 = vmul.f32 %v1598_v40, %v1534_v42  ;;  %v1472_v48 = vmul.f32 %v3805_v43, %v3805_v43  ;;  %v1754_v1 = vld [vmem:[#allocation17 + $0xb0] sm:$0xff]  ;;  %v1761_v38 = vld [vmem:[#allocation17 + $0xe8] sm:$0xff]  ;;  %v1760_v39 = vld [vmem:[#allocation17 + $0xe0] sm:$0xff] }
 0x42b   :  { %v1663_v50 = vmul.f32 %v1599_v27, %v1535_v44  ;;  %v1473_v51 = vmul.f32 %v3807_v45, %v3807_v45  ;;  %v1763_v40 = vld [vmem:[#allocation17 + $0xf8] sm:$0xff]  ;;  %v1762_v41 = vld [vmem:[#allocation17 + $0xf0] sm:$0xff]  ;;  %v1765_v27 = vld [vmem:[#allocation17 + $0x108] sm:$0xff] }
 0x42c   :  { %v3466_v52 = vpack.c.bf16 %v1662_v47, %v1660_v46  ;;  %v1536_v58 = vsub.f32 1.0, %v1472_v48  ;;  %v1764_v42 = vld [vmem:[#allocation17 + $0x100] sm:$0xff]  ;;  %v1766_v44 = vld [vmem:[#allocation17 + $0x110] sm:$0xff]  ;;  %v1771_v47 = vld [vmem:[#allocation17 + $0x138] sm:$0xff] }
 0x42d   :  { %v3809_v53 = vpop.eup %3808  ;;  %v3464_v54 = vpack.c.bf16 %v1663_v50, %v1661_v49  ;;  %v1537_v61 = vsub.f32 1.0, %v1473_v51  ;;  %v1768_v46 = vld [vmem:[#allocation17 + $0x120] sm:$0xff]  ;;  %v1770_v48 = vld [vmem:[#allocation17 + $0x130] sm:$0xff]  ;;  %v1773_v49 = vld [vmem:[#allocation17 + $0x148] sm:$0xff] }
 0x42e   :  { %v3811_v55 = vpop.eup %3810  ;;  %v3406_v56 = vpack.c.bf16 %v3809_v53, %v3805_v43  ;;  %v1474_v57 = vmul.f32 %v3809_v53, %v3809_v53  ;;  %v1664_v8 = vmul.f32 %v1600_v62, %v1536_v58  ;;  %v1767_v43 = vld [vmem:[#allocation17 + $0x118] sm:$0xff]  ;;  %v1772_v50 = vld [vmem:[#allocation17 + $0x140] sm:$0xff]  ;;  %v1777_v53 = vld [vmem:[#allocation17 + $0x168] sm:$0xff] }
 0x42f   :  { %3465 = vmatprep.subr.bf16.mxu0 %v3464_v54  ;;  %v3404_v59 = vpack.c.bf16 %v3811_v55, %v3807_v45  ;;  %v1475_v60 = vmul.f32 %v3811_v55, %v3811_v55  ;;  %v1665_v10 = vmul.f32 %v1601_v3, %v1537_v61  ;;  %v1769_v45 = vld [vmem:[#allocation17 + $0x128] sm:$0xff]  ;;  %v1775_v51 = vld [vmem:[#allocation17 + $0x158] sm:$0xff]  ;;  %v1776_v54 = vld [vmem:[#allocation17 + $0x160] sm:$0xff] }
 0x430   :  { %3467 = vmatpush1.bf16.msra.mxu0 %v3466_v52  ;;  %v1538_v5 = vsub.f32 1.0, %v1474_v57  ;;  %v1774_v52 = vld [vmem:[#allocation17 + $0x150] sm:$0xff]  ;;  %v1779_v55 = vld [vmem:[#allocation17 + $0x178] sm:$0xff]  ;;  %v1781_v57 = vld [vmem:[#allocation17 + $0x188] sm:$0xff] }
 0x431   :  { %3405 = vmatprep.subr.bf16.mxu1 %v3404_v59  ;;  %v1539_v6 = vsub.f32 1.0, %v1475_v60  ;;  %v1780_v58 = vld [vmem:[#allocation17 + $0x180] sm:$0xff]  ;;  %v1783_v59 = vld [vmem:[#allocation17 + $0x198] sm:$0xff]  ;;  %v1782_v60 = vld [vmem:[#allocation17 + $0x190] sm:$0xff] }
 0x432   :  { %3407 = vmatpush1.bf16.msra.mxu1 %v3406_v56  ;;  %v1666_v9 = vmul.f32 %v1602_v63, %v1538_v5  ;;  %v1778_v56 = vld [vmem:[#allocation17 + $0x170] sm:$0xff]  ;;  %v1785_v61 = vld [vmem:[#allocation17 + $0x1a8] sm:$0xff]  ;;  %v1784_v62 = vld [vmem:[#allocation17 + $0x1a0] sm:$0xff] }
 0x433   :  { %v1667_v11 = vmul.f32 %v1603_v4, %v1539_v6  ;;  %v1787_v63 = vld [vmem:[#allocation17 + $0x1b8] sm:$0xff]  ;;  %v1786_v3 = vld [vmem:[#allocation17 + $0x1b0] sm:$0xff]  ;;  %v1789_v4 = vld [vmem:[#allocation17 + $0x1c8] sm:$0xff] }
 0x434   :  { %v3470_v13 = vpack.c.bf16 %v1666_v9, %v1664_v8  ;;  %v1788_v5 = vld [vmem:[#allocation17 + $0x1c0] sm:$0xff]  ;;  %v1791_v6 = vld [vmem:[#allocation17 + $0x1d8] sm:$0xff]  ;;  %v1793_v8 = vld [vmem:[#allocation17 + $0x1e8] sm:$0xff] }
 0x435   :  { %1989 = vmatmul.mubr.f32.vlgmr.msra.gmra.mrb[22].mxu1 %v1732_v7  ;;  %v3468_v12 = vpack.c.bf16 %v1667_v11, %v1665_v10  ;;  %v1792_v9 = vld [vmem:[#allocation17 + $0x1e0] sm:$0xff]  ;;  %v1795_v10 = vld [vmem:[#allocation17 + $0x1f8] sm:$0xff]  ;;  %v1794_v11 = vld [vmem:[#allocation17 + $0x1f0] sm:$0xff] }
 0x436   :  { %1994 = vmatprep.mubr.f32.mxu1 %v1735_v0 }
 0x437   :  { %3469 = vmatprep.subr.bf16.mxu0 %v3468_v12 }
 0x438   :  { %3471 = vmatpush1.bf16.msra.mxu0 %v3470_v13  ;;  %v2439_v13 = vld [vmem:[#allocation19 + $0x8] sm:$0xff] }
 0x439   :  { %1995 = vmatmul.mubr.f32.gmra.mrb[24].mxu1 %v1734_v14 }
 0x43a   :  { %2000 = vmatprep.mubr.f32.mxu1 %v1737_v15 }
 0x43b   :  { %2246 = vmatmul.mubr.f32.vlgmr.msra.gmra.mrb[74].mxu0 %v1732_v7  ;;  %v1790_v7 = vld [vmem:[#allocation17 + $0x1d0] sm:$0xff] }
 0x43c   :  { %2251 = vmatprep.mubr.f32.mxu0 %v1735_v0  ;;  %v2438_v0 = vld [vmem:[#allocation19] sm:$0xff] }
 0x43d   :  { %2001 = vmatmul.mubr.f32.gmra.mrb[26].mxu1 %v1736_v16 }
 0x43e   :  { %2006 = vmatprep.mubr.f32.mxu1 %v1739_v17 }
 0x43f   :  { %2252 = vmatmul.mubr.f32.gmra.mrb[76].mxu0 %v1734_v14 }
 0x440   :  { %2257 = vmatprep.mubr.f32.mxu0 %v1737_v15 }
 0x441   :  { %2007 = vmatmul.mubr.f32.gmra.mrb[28].mxu1 %v1738_v18 }
 0x442   :  { %2012 = vmatprep.mubr.f32.mxu1 %v1741_v19 }
 0x443   :  { %2258 = vmatmul.mubr.f32.gmra.mrb[78].mxu0 %v1736_v16 }
 0x444   :  { %2263 = vmatprep.mubr.f32.mxu0 %v1739_v17  ;;  %v2440_v17 = vld [vmem:[#allocation19 + $0x10] sm:$0xff] }
 0x445   :  { %2013 = vmatmul.mubr.f32.gmra.mrb[30].mxu1 %v1740_v20 }
 0x446   :  { %2018 = vmatprep.mubr.f32.mxu1 %v1743_v21 }
 0x447   :  { %2264 = vmatmul.mubr.f32.gmra.mrb[80].mxu0 %v1738_v18  ;;  %v2441_v18 = vld [vmem:[#allocation19 + $0x18] sm:$0xff] }
 0x448   :  { %2269 = vmatprep.mubr.f32.mxu0 %v1741_v19 }
 0x449   :  { %2019 = vmatmul.mubr.f32.gmra.mrb[32].mxu1 %v1742_v23 }
 0x44a   :  { %2024 = vmatprep.mubr.f32.mxu1 %v1745_v24 }
 0x44b   :  { %2270 = vmatmul.mubr.f32.gmra.mrb[82].mxu0 %v1740_v20 }
 0x44c   :  { %2275 = vmatprep.mubr.f32.mxu0 %v1743_v21 }
 0x44d   :  { %2025 = vmatmul.mubr.f32.gmra.mrb[34].mxu1 %v1744_v25 }
 0x44e   :  { %2030 = vmatprep.mubr.f32.mxu1 %v1747_v26 }
 0x44f   :  { %2276 = vmatmul.mubr.f32.gmra.mrb[84].mxu0 %v1742_v23 }
 0x450   :  { %2281 = vmatprep.mubr.f32.mxu0 %v1745_v24  ;;  %v2442_v24 = vld [vmem:[#allocation19 + $0x20] sm:$0xff] }
 0x451   :  { %2031 = vmatmul.mubr.f32.gmra.mrb[36].mxu1 %v1746_v28 }
 0x452   :  { %2036 = vmatprep.mubr.f32.mxu1 %v1749_v29 }
 0x453   :  { %2282 = vmatmul.mubr.f32.gmra.mrb[86].mxu0 %v1744_v25 }
 0x454   :  { %2287 = vmatprep.mubr.f32.mxu0 %v1747_v26  ;;  %v2443_v26 = vld [vmem:[#allocation19 + $0x28] sm:$0xff] }
 0x455   :  { %2037 = vmatmul.mubr.f32.gmra.mrb[38].mxu1 %v1748_v30 }
 0x456   :  { %2042 = vmatprep.mubr.f32.mxu1 %v1751_v31 }
 0x457   :  { %2288 = vmatmul.mubr.f32.gmra.mrb[88].mxu0 %v1746_v28 }
 0x458   :  { %2293 = vmatprep.mubr.f32.mxu0 %v1749_v29 }
 0x459   :  { %2043 = vmatmul.mubr.f32.gmra.mrb[40].mxu1 %v1750_v32 }
 0x45a   :  { %2048 = vmatprep.mubr.f32.mxu1 %v1753_v33 }
 0x45b   :  { %2294 = vmatmul.mubr.f32.gmra.mrb[90].mxu0 %v1748_v30 }
 0x45c   :  { %2299 = vmatprep.mubr.f32.mxu0 %v1751_v31 }
 0x45d   :  { %2049 = vmatmul.mubr.f32.gmra.mrb[42].mxu1 %v1752_v34 }
 0x45e   :  { %2054 = vmatprep.mubr.f32.mxu1 %v1755_v35 }
 0x45f   :  { %2300 = vmatmul.mubr.f32.gmra.mrb[92].mxu0 %v1750_v32 }
 0x460   :  { %2305 = vmatprep.mubr.f32.mxu0 %v1753_v33  ;;  %v2444_v33 = vld [vmem:[#allocation19 + $0x30] sm:$0xff] }
 0x461   :  { %2055 = vmatmul.mubr.f32.gmra.mrb[44].mxu1 %v1754_v1 }
 0x462   :  { %2060 = vmatprep.mubr.f32.mxu1 %v1757_v2 }
 0x463   :  { %2306 = vmatmul.mubr.f32.gmra.mrb[94].mxu0 %v1752_v34 }
 0x464   :  { %2311 = vmatprep.mubr.f32.mxu0 %v1755_v35  ;;  %v2445_v35 = vld [vmem:[#allocation19 + $0x38] sm:$0xff] }
 0x465   :  { %2061 = vmatmul.mubr.f32.gmra.mrb[46].mxu1 %v1756_v22 }
 0x466   :  { %2066 = vmatprep.mubr.f32.mxu1 %v1759_v36 }
 0x467   :  { %2312 = vmatmul.mubr.f32.gmra.mrb[96].mxu0 %v1754_v1 }
 0x468   :  { %2317 = vmatprep.mubr.f32.mxu0 %v1757_v2 }
 0x469   :  { %2067 = vmatmul.mubr.f32.gmra.mrb[48].mxu1 %v1758_v37 }
 0x46a   :  { %2072 = vmatprep.mubr.f32.mxu1 %v1761_v38 }
 0x46b   :  { %2318 = vmatmul.mubr.f32.gmra.mrb[98].mxu0 %v1756_v22 }
 0x46c   :  { %2323 = vmatprep.mubr.f32.mxu0 %v1759_v36 }
 0x46d   :  { %2073 = vmatmul.mubr.f32.gmra.mrb[50].mxu1 %v1760_v39 }
 0x46e   :  { %2078 = vmatprep.mubr.f32.mxu1 %v1763_v40 }
 0x46f   :  { %2324 = vmatmul.mubr.f32.gmra.mrb[100].mxu0 %v1758_v37 }
 0x470   :  { %2329 = vmatprep.mubr.f32.mxu0 %v1761_v38 }
 0x471   :  { %2079 = vmatmul.mubr.f32.gmra.mrb[52].mxu1 %v1762_v41 }
 0x472   :  { %2084 = vmatprep.mubr.f32.mxu1 %v1765_v27 }
 0x473   :  { %2330 = vmatmul.mubr.f32.gmra.mrb[102].mxu0 %v1760_v39 }
 0x474   :  { %2335 = vmatprep.mubr.f32.mxu0 %v1763_v40  ;;  %v2446_v40 = vld [vmem:[#allocation19 + $0x40] sm:$0xff] }
 0x475   :  { %2085 = vmatmul.mubr.f32.gmra.mrb[54].mxu1 %v1764_v42 }
 0x476   :  { %2090 = vmatprep.mubr.f32.mxu1 %v1767_v43 }
 0x477   :  { %2336 = vmatmul.mubr.f32.gmra.mrb[104].mxu0 %v1762_v41 }
 0x478   :  { %2341 = vmatprep.mubr.f32.mxu0 %v1765_v27 }
 0x479   :  { %2091 = vmatmul.mubr.f32.gmra.mrb[56].mxu1 %v1766_v44 }
 0x47a   :  { %2096 = vmatprep.mubr.f32.mxu1 %v1769_v45 }
 0x47b   :  { %2342 = vmatmul.mubr.f32.gmra.mrb[106].mxu0 %v1764_v42  ;;  %v2447_v42 = vld [vmem:[#allocation19 + $0x48] sm:$0xff] }
 0x47c   :  { %2347 = vmatprep.mubr.f32.mxu0 %v1767_v43 }
 0x47d   :  { %2097 = vmatmul.mubr.f32.gmra.mrb[58].mxu1 %v1768_v46 }
 0x47e   :  { %2102 = vmatprep.mubr.f32.mxu1 %v1771_v47 }
 0x47f   :  { %2348 = vmatmul.mubr.f32.gmra.mrb[108].mxu0 %v1766_v44 }
 0x480   :  { %2353 = vmatprep.mubr.f32.mxu0 %v1769_v45 }
 0x481   :  { %2103 = vmatmul.mubr.f32.gmra.mrb[60].mxu1 %v1770_v48 }
 0x482   :  { %2108 = vmatprep.mubr.f32.mxu1 %v1773_v49 }
 0x483   :  { %2354 = vmatmul.mubr.f32.gmra.mrb[110].mxu0 %v1768_v46 }
 0x484   :  { %2359 = vmatprep.mubr.f32.mxu0 %v1771_v47  ;;  %v2951_v47 = vld [vmem:[#allocation20 + $0x8] sm:$0xff] }
 0x485   :  { %2109 = vmatmul.mubr.f32.gmra.mrb[62].mxu1 %v1772_v50 }
 0x486   :  { %2114 = vmatprep.mubr.f32.mxu1 %v1775_v51 }
 0x487   :  { %2360 = vmatmul.mubr.f32.gmra.mrb[112].mxu0 %v1770_v48 }
 0x488   :  { %2365 = vmatprep.mubr.f32.mxu0 %v1773_v49 }
 0x489   :  { %2115 = vmatmul.mubr.f32.gmra.mrb[64].mxu1 %v1774_v52 }
 0x48a   :  { %2120 = vmatprep.mubr.f32.mxu1 %v1777_v53 }
 0x48b   :  { %2366 = vmatmul.mubr.f32.gmra.mrb[114].mxu0 %v1772_v50 }
 0x48c   :  { %2371 = vmatprep.mubr.f32.mxu0 %v1775_v51 }
 0x48d   :  { %2121 = vmatmul.mubr.f32.gmra.mrb[66].mxu1 %v1776_v54 }
 0x48e   :  { %2126 = vmatprep.mubr.f32.mxu1 %v1779_v55 }
 0x48f   :  { %2372 = vmatmul.mubr.f32.gmra.mrb[116].mxu0 %v1774_v52 }
 0x490   :  { %2377 = vmatprep.mubr.f32.mxu0 %v1777_v53 }
 0x491   :  { %2127 = vmatmul.mubr.f32.gmra.mrb[68].mxu1 %v1778_v56 }
 0x492   :  { %2132 = vmatprep.mubr.f32.mxu1 %v1781_v57 }
 0x493   :  { %2378 = vmatmul.mubr.f32.gmra.mrb[118].mxu0 %v1776_v54 }
 0x494   :  { %2383 = vmatprep.mubr.f32.mxu0 %v1779_v55  ;;  %v2448_v55 = vld [vmem:[#allocation19 + $0x50] sm:$0xff] }
 0x495   :  { %2133 = vmatmul.mubr.f32.gmra.mrb[70].mxu1 %v1780_v58 }
 0x496   :  { %2138 = vmatprep.mubr.f32.mxu1 %v1783_v59 }
 0x497   :  { %2384 = vmatmul.mubr.f32.gmra.mrb[120].mxu0 %v1778_v56 }
 0x498   :  { %2389 = vmatprep.mubr.f32.mxu0 %v1781_v57 }
 0x499   :  { %2139 = vmatmul.mubr.f32.gmra.mrb[72].mxu1 %v1782_v60 }
 0x49a   :  { %2144 = vmatprep.mubr.f32.mxu1 %v1785_v61 }
 0x49b   :  { %2390 = vmatmul.mubr.f32.gmra.mrb[122].mxu0 %v1780_v58 }
 0x49c   :  { %2395 = vmatprep.mubr.f32.mxu0 %v1783_v59 }
 0x49d   :  { %2145 = vmatmul.mubr.f32.gmra.mrb[74].mxu1 %v1784_v62 }
 0x49e   :  { %2150 = vmatprep.mubr.f32.mxu1 %v1787_v63 }
 0x49f   :  { %2396 = vmatmul.mubr.f32.gmra.mrb[124].mxu0 %v1782_v60  ;;  %v2449_v60 = vld [vmem:[#allocation19 + $0x58] sm:$0xff] }
 0x4a0   :  { %2401 = vmatprep.mubr.f32.mxu0 %v1785_v61 }
 0x4a1   :  { %2151 = vmatmul.mubr.f32.gmra.mrb[76].mxu1 %v1786_v3 }
 0x4a2   :  { %2156 = vmatprep.mubr.f32.mxu1 %v1789_v4 }
 0x4a3   :  { %2402 = vmatmul.mubr.f32.gmra.mrb[126].mxu0 %v1784_v62 }
 0x4a4   :  { %2407 = vmatprep.mubr.f32.mxu0 %v1787_v63 }
 0x4a5   :  { %2157 = vmatmul.mubr.f32.gmra.mrb[78].mxu1 %v1788_v5 }
 0x4a6   :  { %2162 = vmatprep.mubr.f32.mxu1 %v1791_v6 }
 0x4a7   :  { %2408 = vmatmul.mubr.f32.gmra.mrb[128].mxu0 %v1786_v3 }
 0x4a8   :  { %2413 = vmatprep.mubr.f32.mxu0 %v1789_v4 }
 0x4a9   :  { %2163 = vmatmul.mubr.f32.gmra.mrb[80].mxu1 %v1790_v7 }
 0x4aa   :  { %2168 = vmatprep.mubr.f32.mxu1 %v1793_v8 }
 0x4ab   :  { %2414 = vmatmul.mubr.f32.gmra.mrb[130].mxu0 %v1788_v5 }
 0x4ac   :  { %2419 = vmatprep.mubr.f32.mxu0 %v1791_v6 }
 0x4ad   :  { %2169 = vmatmul.mubr.f32.gmra.mrb[82].mxu1 %v1792_v9 }
 0x4ae   :  { %2174 = vmatprep.mubr.f32.mxu1 %v1795_v10 }
 0x4af   :  { %2420 = vmatmul.mubr.f32.gmra.mrb[132].mxu0 %v1790_v7 }
 0x4b0   :  { %2425 = vmatprep.mubr.f32.mxu0 %v1793_v8 }
 0x4b1   :  { %2175 = vmatmul.mubr.f32.gmra.mrb[84].mxu1 %v1794_v11 }
 0x4b2   :  { %3144 = vmatprep.mubr.f32.mxu1 %v2951_v47 }
 0x4b3   :  { %2426 = vmatmul.mubr.f32.gmra.mrb[134].mxu0 %v1792_v9 }
 0x4b4   :  { %2431 = vmatprep.mubr.f32.mxu0 %v1795_v10 }
 0x4b7   :  { %2432 = vmatmul.mubr.f32.gmra.mrb[136].mxu0 %v1794_v11 }
 0x508   :  { %v1990_v12 = vpop.f32.mrb[22].mxu1 }
 0x509   :  { %v2502_v14 = vadd.f32 %v2438_v0, %v1990_v12  ;;  %v1992_v15 = vpop.f32.mrb[23].mxu1  ;;  %v2450_v0 = vld [vmem:[#allocation19 + $0x60] sm:$0xff] }
 0x50a   :  { %v2503_v16 = vadd.f32 %v2439_v13, %v1992_v15  ;;  %v2451_v15 = vld [vmem:[#allocation19 + $0x68] sm:$0xff] }
 0x50b   :  { %3812 = vtanh.f32 %v2502_v14 }
 0x50c   :  { %3814 = vtanh.f32 %v2503_v16  ;;  %v1996_v19 = vpop.f32.mrb[24].mxu1 }
 0x50d   :  { %v2504_v20 = vadd.f32 %v2440_v17, %v1996_v19  ;;  %v1998_v21 = vpop.f32.mrb[25].mxu1 }
 0x50e   :  { %v2505_v23 = vadd.f32 %v2441_v18, %v1998_v21  ;;  %v2247_v25 = vpop.f32.mrb[74].mxu0 }
 0x50f   :  { %3816 = vtanh.f32 %v2504_v20  ;;  %v2249_v28 = vpop.f32.mrb[75].mxu0 }
 0x510   :  { %3818 = vtanh.f32 %v2505_v23  ;;  %v2002_v29 = vpop.f32.mrb[26].mxu1 }
 0x511   :  { %v2506_v30 = vadd.f32 %v2442_v24, %v2002_v29  ;;  %v2004_v31 = vpop.f32.mrb[27].mxu1 }
 0x512   :  { %v2507_v32 = vadd.f32 %v2443_v26, %v2004_v31  ;;  %v2253_v34 = vpop.f32.mrb[76].mxu0  ;;  %v2452_v31 = vld [vmem:[#allocation19 + $0x70] sm:$0xff] }
 0x513   :  { %3820 = vtanh.f32 %v2506_v30  ;;  %v2255_v1 = vpop.f32.mrb[77].mxu0 }
 0x514   :  { %3822 = vtanh.f32 %v2507_v32  ;;  %v2008_v2 = vpop.f32.mrb[28].mxu1 }
 0x515   :  { %v3813_v22 = vpop.eup %3812  ;;  %v2508_v36 = vadd.f32 %v2444_v33, %v2008_v2  ;;  %v2010_v37 = vpop.f32.mrb[29].mxu1 }
 0x516   :  { %v3815_v38 = vpop.eup %3814  ;;  %v2509_v39 = vadd.f32 %v2445_v35, %v2010_v37  ;;  %v2694_v41 = vmul.f32 %v3813_v22, %v3813_v22  ;;  %v2259_v27 = vpop.f32.mrb[78].mxu0 }
 0x517   :  { %3824 = vtanh.f32 %v2508_v36  ;;  %v2695_v43 = vmul.f32 %v3815_v38, %v3815_v38  ;;  %v2261_v44 = vpop.f32.mrb[79].mxu0 }
 0x518   :  { %3826 = vtanh.f32 %v2509_v39  ;;  %v2014_v45 = vpop.f32.mrb[30].mxu1  ;;  %v2758_v46 = vsub.f32 1.0, %v2694_v41 }
 0x519   :  { %v3817_v48 = vpop.eup %3816  ;;  %v2510_v49 = vadd.f32 %v2446_v40, %v2014_v45  ;;  %v2016_v50 = vpop.f32.mrb[31].mxu1  ;;  %v2759_v51 = vsub.f32 1.0, %v2695_v43 }
 0x51a   :  { %v3819_v52 = vpop.eup %3818  ;;  %v2511_v53 = vadd.f32 %v2447_v42, %v2016_v50  ;;  %v5086_v54 = vmul.f32 %v2758_v46, %v2247_v25  ;;  %v2696_v56 = vmul.f32 %v3817_v48, %v3817_v48  ;;  %v3474_v57 = vpack.c.bf16 %v3817_v48, %v3813_v22  ;;  %v2265_v58 = vpop.f32.mrb[80].mxu0  ;;  %v2454_v46 = vld [vmem:[#allocation19 + $0x80] sm:$0xff] }
 0x51b   :  { %3828 = vtanh.f32 %v2510_v49  ;;  %v5088_v59 = vmul.f32 %v2759_v51, %v2249_v28  ;;  %v3472_v61 = vpack.c.bf16 %v3819_v52, %v3815_v38  ;;  %v2697_v62 = vmul.f32 %v3819_v52, %v3819_v52  ;;  %v2267_v63 = vpop.f32.mrb[81].mxu0  ;;  %v2455_v49 = vld [vmem:[#allocation19 + $0x88] sm:$0xff] }
 0x51c   :  { %3830 = vtanh.f32 %v2511_v53  ;;  %v2020_v3 = vpop.f32.mrb[32].mxu1  ;;  %v2760_v4 = vsub.f32 1.0, %v2696_v56 }
 0x51d   :  { %v3821_v5 = vpop.eup %3820  ;;  %v2512_v6 = vadd.f32 %v2448_v55, %v2020_v3  ;;  %v2022_v7 = vpop.f32.mrb[33].mxu1  ;;  %3473 = vmatprep.subr.bf16.mxu1 %v3472_v61  ;;  %v2761_v8 = vsub.f32 1.0, %v2697_v62 }
 0x51e   :  { %v3823_v9 = vpop.eup %3822  ;;  %v2513_v10 = vadd.f32 %v2449_v60, %v2022_v7  ;;  %v5090_v11 = vmul.f32 %v2760_v4, %v2253_v34  ;;  %3475 = vmatpush1.bf16.msra.mxu1 %v3474_v57  ;;  %v2698_v13 = vmul.f32 %v3821_v5, %v3821_v5  ;;  %v2271_v12 = vpop.f32.mrb[82].mxu0  ;;  %v2456_v4 = vld [vmem:[#allocation19 + $0x90] sm:$0xff] }
 0x51f   :  { %3832 = vtanh.f32 %v2512_v6  ;;  %v5092_v14 = vmul.f32 %v2761_v8, %v2255_v1  ;;  %v2699_v16 = vmul.f32 %v3823_v9, %v3823_v9  ;;  %v2273_v17 = vpop.f32.mrb[83].mxu0  ;;  %v2453_v1 = vld [vmem:[#allocation19 + $0x78] sm:$0xff] }
 0x520   :  { %3834 = vtanh.f32 %v2513_v10  ;;  %v2026_v19 = vpop.f32.mrb[34].mxu1  ;;  %v2762_v20 = vsub.f32 1.0, %v2698_v13 }
 0x521   :  { %v3825_v21 = vpop.eup %3824  ;;  %v2514_v24 = vadd.f32 %v2450_v0, %v2026_v19  ;;  %v2028_v25 = vpop.f32.mrb[35].mxu1  ;;  %v2763_v26 = vsub.f32 1.0, %v2699_v16 }
 0x522   :  { %v3827_v28 = vpop.eup %3826  ;;  %v2515_v29 = vadd.f32 %v2451_v15, %v2028_v25  ;;  %v5098_v30 = vmul.f32 %v2762_v20, %v2259_v27  ;;  %v2700_v32 = vmul.f32 %v3825_v21, %v3825_v21  ;;  %v3478_v33 = vpack.c.bf16 %v3825_v21, %v3821_v5  ;;  %v2277_v34 = vpop.f32.mrb[84].mxu0 }
 0x523   :  { %3836 = vtanh.f32 %v2514_v24  ;;  %v5100_v35 = vmul.f32 %v2763_v26, %v2261_v44  ;;  %v3476_v2 = vpack.c.bf16 %v3827_v28, %v3823_v9  ;;  %v2701_v22 = vmul.f32 %v3827_v28, %v3827_v28  ;;  %v2279_v36 = vpop.f32.mrb[85].mxu0  ;;  %v2457_v9 = vld [vmem:[#allocation19 + $0x98] sm:$0xff]  ;;  %v2458_v28 = vld [vmem:[#allocation19 + $0xa0] sm:$0xff] }
 0x524   :  { %3838 = vtanh.f32 %v2515_v29  ;;  %v2032_v37 = vpop.f32.mrb[36].mxu1  ;;  %v2764_v38 = vsub.f32 1.0, %v2700_v32  ;;  %v2459_v32 = vld [vmem:[#allocation19 + $0xa8] sm:$0xff] }
 0x525   :  { %v3829_v39 = vpop.eup %3828  ;;  %v2516_v40 = vadd.f32 %v2452_v31, %v2032_v37  ;;  %v2034_v41 = vpop.f32.mrb[37].mxu1  ;;  %3477 = vmatprep.subr.bf16.mxu1 %v3476_v2  ;;  %v2765_v27 = vsub.f32 1.0, %v2701_v22 }
 0x526   :  { %v3831_v42 = vpop.eup %3830  ;;  %v2517_v43 = vadd.f32 %v2453_v1, %v2034_v41  ;;  %v5102_v45 = vmul.f32 %v2764_v38, %v2265_v58  ;;  %3479 = vmatpush1.bf16.msra.mxu1 %v3478_v33  ;;  %v2702_v44 = vmul.f32 %v3829_v39, %v3829_v39  ;;  %v2283_v47 = vpop.f32.mrb[86].mxu0 }
 0x527   :  { %3840 = vtanh.f32 %v2516_v40  ;;  %v5104_v48 = vmul.f32 %v2765_v27, %v2267_v63  ;;  %v2703_v50 = vmul.f32 %v3831_v42, %v3831_v42  ;;  %v2285_v51 = vpop.f32.mrb[87].mxu0 }
 0x528   :  { %3842 = vtanh.f32 %v2517_v43  ;;  %v2038_v53 = vpop.f32.mrb[38].mxu1  ;;  %v2766_v55 = vsub.f32 1.0, %v2702_v44  ;;  %v2460_v43 = vld [vmem:[#allocation19 + $0xb0] sm:$0xff] }
 0x529   :  { %v3833_v56 = vpop.eup %3832  ;;  %v2518_v58 = vadd.f32 %v2454_v46, %v2038_v53  ;;  %v2040_v60 = vpop.f32.mrb[39].mxu1  ;;  %v2767_v61 = vsub.f32 1.0, %v2703_v50  ;;  %v2461_v53 = vld [vmem:[#allocation19 + $0xb8] sm:$0xff] }
 0x52a   :  { %v3835_v62 = vpop.eup %3834  ;;  %v2519_v3 = vadd.f32 %v2455_v49, %v2040_v60  ;;  %v5110_v63 = vmul.f32 %v2766_v55, %v2271_v12  ;;  %v2704_v5 = vmul.f32 %v3833_v56, %v3833_v56  ;;  %v3482_v6 = vpack.c.bf16 %v3833_v56, %v3829_v39  ;;  %v2289_v7 = vpop.f32.mrb[88].mxu0 }
 0x52b   :  { %3844 = vtanh.f32 %v2518_v58  ;;  %v5112_v8 = vmul.f32 %v2767_v61, %v2273_v17  ;;  %v3480_v10 = vpack.c.bf16 %v3835_v62, %v3831_v42  ;;  %v2705_v0 = vmul.f32 %v3835_v62, %v3835_v62  ;;  %v2291_v13 = vpop.f32.mrb[89].mxu0 }
 0x52c   :  { %3846 = vtanh.f32 %v2519_v3  ;;  %v2044_v15 = vpop.f32.mrb[40].mxu1  ;;  %v2768_v16 = vsub.f32 1.0, %v2704_v5 }
 0x52d   :  { %v3837_v19 = vpop.eup %3836  ;;  %v2520_v20 = vadd.f32 %v2456_v4, %v2044_v15  ;;  %v2046_v21 = vpop.f32.mrb[41].mxu1  ;;  %3481 = vmatprep.subr.bf16.mxu1 %v3480_v10  ;;  %v2769_v12 = vsub.f32 1.0, %v2705_v0  ;;  %v2462_v10 = vld [vmem:[#allocation19 + $0xc0] sm:$0xff] }
 0x52e   :  { %v3839_v24 = vpop.eup %3838  ;;  %v2521_v25 = vadd.f32 %v2457_v9, %v2046_v21  ;;  %v5114_v26 = vmul.f32 %v2768_v16, %v2277_v34  ;;  %3483 = vmatpush1.bf16.msra.mxu1 %v3482_v6  ;;  %v2706_v17 = vmul.f32 %v3837_v19, %v3837_v19  ;;  %v2295_v29 = vpop.f32.mrb[90].mxu0  ;;  %v2463_v16 = vld [vmem:[#allocation19 + $0xc8] sm:$0xff] }
 0x52f   :  { %3848 = vtanh.f32 %v2520_v20  ;;  %v5116_v31 = vmul.f32 %v2769_v12, %v2279_v36  ;;  %v2707_v33 = vmul.f32 %v3839_v24, %v3839_v24  ;;  %v2297_v1 = vpop.f32.mrb[91].mxu0 }
 0x530   :  { %3850 = vtanh.f32 %v2521_v25  ;;  %v2050_v22 = vpop.f32.mrb[42].mxu1  ;;  %v2770_v37 = vsub.f32 1.0, %v2706_v17 }
 0x531   :  { %v3841_v38 = vpop.eup %3840  ;;  %v2522_v39 = vadd.f32 %v2458_v28, %v2050_v22  ;;  %v2052_v40 = vpop.f32.mrb[43].mxu1  ;;  %v2771_v41 = vsub.f32 1.0, %v2707_v33 }
 0x532   :  { %v3843_v27 = vpop.eup %3842  ;;  %v2523_v42 = vadd.f32 %v2459_v32, %v2052_v40  ;;  %v5122_v36 = vmul.f32 %v2770_v37, %v2283_v47  ;;  %v2708_v46 = vmul.f32 %v3841_v38, %v3841_v38  ;;  %v3486_v44 = vpack.c.bf16 %v3841_v38, %v3837_v19  ;;  %v2301_v49 = vpop.f32.mrb[92].mxu0  ;;  %v2464_v37 = vld [vmem:[#allocation19 + $0xd0] sm:$0xff] }
 0x533   :  { %3852 = vtanh.f32 %v2522_v39  ;;  %v5124_v50 = vmul.f32 %v2771_v41, %v2285_v51  ;;  %v3484_v55 = vpack.c.bf16 %v3843_v27, %v3839_v24  ;;  %v2709_v56 = vmul.f32 %v3843_v27, %v3843_v27  ;;  %v2303_v58 = vpop.f32.mrb[93].mxu0  ;;  %v2465_v27 = vld [vmem:[#allocation19 + $0xd8] sm:$0xff] }
 0x534   :  { %3854 = vtanh.f32 %v2523_v42  ;;  %v2056_v60 = vpop.f32.mrb[44].mxu1  ;;  %v2772_v61 = vsub.f32 1.0, %v2708_v46 }
 0x535   :  { %v3845_v62 = vpop.eup %3844  ;;  %v2524_v3 = vadd.f32 %v2460_v43, %v2056_v60  ;;  %v2058_v4 = vpop.f32.mrb[45].mxu1  ;;  %3485 = vmatprep.subr.bf16.mxu1 %v3484_v55  ;;  %v2773_v47 = vsub.f32 1.0, %v2709_v56 }
 0x536   :  { %v3847_v5 = vpop.eup %3846  ;;  %v2525_v6 = vadd.f32 %v2461_v53, %v2058_v4  ;;  %v5126_v9 = vmul.f32 %v2772_v61, %v2289_v7  ;;  %3487 = vmatpush1.bf16.msra.mxu1 %v3486_v44  ;;  %v2710_v51 = vmul.f32 %v3845_v62, %v3845_v62  ;;  %v2307_v0 = vpop.f32.mrb[94].mxu0 }
 0x537   :  { %3856 = vtanh.f32 %v2524_v3  ;;  %v5128_v15 = vmul.f32 %v2773_v47, %v2291_v13  ;;  %v2711_v19 = vmul.f32 %v3847_v5, %v3847_v5  ;;  %v2309_v20 = vpop.f32.mrb[95].mxu0 }
 0x538   :  { %3858 = vtanh.f32 %v2525_v6  ;;  %v2062_v12 = vpop.f32.mrb[46].mxu1  ;;  %v2774_v24 = vsub.f32 1.0, %v2710_v51  ;;  %v2467_v6 = vld [vmem:[#allocation19 + $0xe8] sm:$0xff] }
 0x539   :  { %v3849_v25 = vpop.eup %3848  ;;  %v2526_v28 = vadd.f32 %v2462_v10, %v2062_v12  ;;  %v2064_v17 = vpop.f32.mrb[47].mxu1  ;;  %v2775_v32 = vsub.f32 1.0, %v2711_v19 }
 0x53a   :  { %v3851_v33 = vpop.eup %3850  ;;  %v2527_v22 = vadd.f32 %v2463_v16, %v2064_v17  ;;  %v5134_v13 = vmul.f32 %v2774_v24, %v2295_v29  ;;  %v2712_v38 = vmul.f32 %v3849_v25, %v3849_v25  ;;  %v3490_v39 = vpack.c.bf16 %v3849_v25, %v3845_v62  ;;  %v2313_v40 = vpop.f32.mrb[96].mxu0  ;;  %v2466_v62 = vld [vmem:[#allocation19 + $0xe0] sm:$0xff] }
 0x53b   :  { %3860 = vtanh.f32 %v2526_v28  ;;  %v5136_v41 = vmul.f32 %v2775_v32, %v2297_v1  ;;  %v3488_v42 = vpack.c.bf16 %v3851_v33, %v3847_v5  ;;  %v2713_v43 = vmul.f32 %v3851_v33, %v3851_v33  ;;  %v2315_v46 = vpop.f32.mrb[97].mxu0 }
 0x53c   :  { %3862 = vtanh.f32 %v2527_v22  ;;  %v2068_v44 = vpop.f32.mrb[48].mxu1  ;;  %v2776_v53 = vsub.f32 1.0, %v2712_v38  ;;  %v2468_v22 = vld [vmem:[#allocation19 + $0xf0] sm:$0xff] }
 0x53d   :  { %v3853_v55 = vpop.eup %3852  ;;  %v2528_v56 = vadd.f32 %v2464_v37, %v2068_v44  ;;  %v2070_v60 = vpop.f32.mrb[49].mxu1  ;;  %3489 = vmatprep.subr.bf16.mxu1 %v3488_v42  ;;  %v2777_v29 = vsub.f32 1.0, %v2713_v43  ;;  %v2469_v42 = vld [vmem:[#allocation19 + $0xf8] sm:$0xff] }
 0x53e   :  { %v3855_v61 = vpop.eup %3854  ;;  %v2529_v3 = vadd.f32 %v2465_v27, %v2070_v60  ;;  %v5138_v4 = vmul.f32 %v2776_v53, %v2301_v49  ;;  %3491 = vmatpush1.bf16.msra.mxu1 %v3490_v39  ;;  %v2714_v1 = vmul.f32 %v3853_v55, %v3853_v55  ;;  %v2319_v47 = vpop.f32.mrb[98].mxu0 }
 0x53f   :  { %3864 = vtanh.f32 %v2528_v56  ;;  %v5140_v5 = vmul.f32 %v2777_v29, %v2303_v58  ;;  %v2715_v10 = vmul.f32 %v3855_v61, %v3855_v61  ;;  %v2321_v51 = vpop.f32.mrb[99].mxu0 }
 0x540   :  { %3866 = vtanh.f32 %v2529_v3  ;;  %v2074_v19 = vpop.f32.mrb[50].mxu1  ;;  %v2778_v12 = vsub.f32 1.0, %v2714_v1 }
 0x541   :  { %v3857_v24 = vpop.eup %3856  ;;  %v2530_v25 = vadd.f32 %v2466_v62, %v2074_v19  ;;  %v2076_v28 = vpop.f32.mrb[51].mxu1  ;;  %v2779_v17 = vsub.f32 1.0, %v2715_v10 }
 0x542   :  { %v3859_v32 = vpop.eup %3858  ;;  %v2531_v33 = vadd.f32 %v2467_v6, %v2076_v28  ;;  %v5146_v58 = vmul.f32 %v2778_v12, %v2307_v0  ;;  %v2716_v37 = vmul.f32 %v3857_v24, %v3857_v24  ;;  %v3494_v38 = vpack.c.bf16 %v3857_v24, %v3853_v55  ;;  %v2325_v39 = vpop.f32.mrb[100].mxu0  ;;  %v2470_v55 = vld [vmem:[#allocation19 + $0x100] sm:$0xff]  ;;  %v2471_v12 = vld [vmem:[#allocation19 + $0x108] sm:$0xff] }
 0x543   :  { %3868 = vtanh.f32 %v2530_v25  ;;  %v5148_v27 = vmul.f32 %v2779_v17, %v2309_v20  ;;  %v3492_v43 = vpack.c.bf16 %v3859_v32, %v3855_v61  ;;  %v2717_v44 = vmul.f32 %v3859_v32, %v3859_v32  ;;  %v2327_v53 = vpop.f32.mrb[101].mxu0 }
 0x544   :  { %3870 = vtanh.f32 %v2531_v33  ;;  %v2080_v56 = vpop.f32.mrb[52].mxu1  ;;  %v2780_v60 = vsub.f32 1.0, %v2716_v37 }
 0x545   :  { %v3861_v29 = vpop.eup %3860  ;;  %v2532_v3 = vadd.f32 %v2468_v22, %v2080_v56  ;;  %v2082_v62 = vpop.f32.mrb[53].mxu1  ;;  %3493 = vmatprep.subr.bf16.mxu1 %v3492_v43  ;;  %v2781_v0 = vsub.f32 1.0, %v2717_v44  ;;  %v2472_v44 = vld [vmem:[#allocation19 + $0x110] sm:$0xff] }
 0x546   :  { %v3863_v1 = vpop.eup %3862  ;;  %v2533_v6 = vadd.f32 %v2469_v42, %v2082_v62  ;;  %v5150_v10 = vmul.f32 %v2780_v60, %v2313_v40  ;;  %3495 = vmatpush1.bf16.msra.mxu1 %v3494_v38  ;;  %v2718_v20 = vmul.f32 %v3861_v29, %v3861_v29  ;;  %v2331_v19 = vpop.f32.mrb[102].mxu0 }
 0x547   :  { %3872 = vtanh.f32 %v2532_v3  ;;  %v5152_v61 = vmul.f32 %v2781_v0, %v2315_v46  ;;  %v2719_v24 = vmul.f32 %v3863_v1, %v3863_v1  ;;  %v2333_v25 = vpop.f32.mrb[103].mxu0  ;;  %v2473_v0 = vld [vmem:[#allocation19 + $0x118] sm:$0xff] }
 0x548   :  { %3874 = vtanh.f32 %v2533_v6  ;;  %v2086_v17 = vpop.f32.mrb[54].mxu1  ;;  %v2782_v32 = vsub.f32 1.0, %v2718_v20 }
 0x549   :  { %v3865_v33 = vpop.eup %3864  ;;  %v2534_v22 = vadd.f32 %v2470_v55, %v2086_v17  ;;  %v2088_v37 = vpop.f32.mrb[55].mxu1  ;;  %v2783_v38 = vsub.f32 1.0, %v2719_v24 }
 0x54a   :  { %v3867_v42 = vpop.eup %3866  ;;  %v2535_v43 = vadd.f32 %v2471_v12, %v2088_v37  ;;  %v5158_v46 = vmul.f32 %v2782_v32, %v2319_v47  ;;  %v2720_v56 = vmul.f32 %v3865_v33, %v3865_v33  ;;  %v3498_v60 = vpack.c.bf16 %v3865_v33, %v3861_v29  ;;  %v2337_v3 = vpop.f32.mrb[104].mxu0  ;;  %v2474_v29 = vld [vmem:[#allocation19 + $0x120] sm:$0xff] }
 0x54b   :  { %3876 = vtanh.f32 %v2534_v22  ;;  %v5160_v62 = vmul.f32 %v2783_v38, %v2321_v51  ;;  %v3496_v6 = vpack.c.bf16 %v3867_v42, %v3863_v1  ;;  %v2721_v20 = vmul.f32 %v3867_v42, %v3867_v42  ;;  %v2339_v28 = vpop.f32.mrb[105].mxu0  ;;  %v2475_v22 = vld [vmem:[#allocation19 + $0x128] sm:$0xff] }
 0x54c   :  { %3878 = vtanh.f32 %v2535_v43  ;;  %v2092_v40 = vpop.f32.mrb[56].mxu1  ;;  %v2784_v55 = vsub.f32 1.0, %v2720_v56 }
 0x54d   :  { %v3869_v17 = vpop.eup %3868  ;;  %v2536_v24 = vadd.f32 %v2472_v44, %v2092_v40  ;;  %v2094_v16 = vpop.f32.mrb[57].mxu1  ;;  %3497 = vmatprep.subr.bf16.mxu1 %v3496_v6  ;;  %v2785_v47 = vsub.f32 1.0, %v2721_v20  ;;  %v2477_v40 = vld [vmem:[#allocation19 + $0x138] sm:$0xff] }
 0x54e   :  { %v3871_v12 = vpop.eup %3870  ;;  %v2537_v32 = vadd.f32 %v2473_v0, %v2094_v16  ;;  %v5162_v37 = vmul.f32 %v2784_v55, %v2325_v39  ;;  %3499 = vmatpush1.bf16.msra.mxu1 %v3498_v60  ;;  %v2722_v51 = vmul.f32 %v3869_v17, %v3869_v17  ;;  %v2343_v33 = vpop.f32.mrb[106].mxu0  ;;  %v2476_v55 = vld [vmem:[#allocation19 + $0x130] sm:$0xff] }
 0x54f   :  { %3880 = vtanh.f32 %v2536_v24  ;;  %v5164_v1 = vmul.f32 %v2785_v47, %v2327_v53  ;;  %v2723_v38 = vmul.f32 %v3871_v12, %v3871_v12  ;;  %v2345_v42 = vpop.f32.mrb[107].mxu0 }
 0x550   :  { %3882 = vtanh.f32 %v2537_v32  ;;  %v2098_v43 = vpop.f32.mrb[58].mxu1  ;;  %v2786_v44 = vsub.f32 1.0, %v2722_v51 }
 0x551   :  { %v3873_v56 = vpop.eup %3872  ;;  %v2538_v39 = vadd.f32 %v2474_v29, %v2098_v43  ;;  %v2100_v60 = vpop.f32.mrb[59].mxu1  ;;  %v2787_v0 = vsub.f32 1.0, %v2723_v38 }
 0x552   :  { %v3875_v6 = vpop.eup %3874  ;;  %v2539_v20 = vadd.f32 %v2475_v22, %v2100_v60  ;;  %v5170_v53 = vmul.f32 %v2786_v44, %v2331_v19  ;;  %v2724_v24 = vmul.f32 %v3873_v56, %v3873_v56  ;;  %v3502_v47 = vpack.c.bf16 %v3873_v56, %v3869_v17  ;;  %v2349_v32 = vpop.f32.mrb[108].mxu0  ;;  %v2478_v17 = vld [vmem:[#allocation19 + $0x140] sm:$0xff] }
 0x553   :  { %3884 = vtanh.f32 %v2538_v39  ;;  %v5172_v49 = vmul.f32 %v2787_v0, %v2333_v25  ;;  %v3500_v51 = vpack.c.bf16 %v3875_v6, %v3871_v12  ;;  %v2725_v21 = vmul.f32 %v3875_v6, %v3875_v6  ;;  %v2351_v7 = vpop.f32.mrb[109].mxu0  ;;  %v2479_v39 = vld [vmem:[#allocation19 + $0x148] sm:$0xff] }
 0x554   :  { %3886 = vtanh.f32 %v2539_v20  ;;  %v2104_v16 = vpop.f32.mrb[60].mxu1  ;;  %v2788_v29 = vsub.f32 1.0, %v2724_v24 }
 0x555   :  { %v3877_v43 = vpop.eup %3876  ;;  %v2540_v38 = vadd.f32 %v2476_v55, %v2104_v16  ;;  %v2106_v2 = vpop.f32.mrb[61].mxu1  ;;  %3501 = vmatprep.subr.bf16.mxu1 %v3500_v51  ;;  %v2789_v19 = vsub.f32 1.0, %v2725_v21  ;;  %v2481_v16 = vld [vmem:[#allocation19 + $0x158] sm:$0xff] }
 0x556   :  { %v3879_v22 = vpop.eup %3878  ;;  %v2541_v44 = vadd.f32 %v2477_v40, %v2106_v2  ;;  %v5174_v60 = vmul.f32 %v2788_v29, %v2337_v3  ;;  %3503 = vmatpush1.bf16.msra.mxu1 %v3502_v47  ;;  %v2726_v25 = vmul.f32 %v3877_v43, %v3877_v43  ;;  %v2355_v56 = vpop.f32.mrb[110].mxu0  ;;  %v2480_v29 = vld [vmem:[#allocation19 + $0x150] sm:$0xff] }
 0x557   :  { %3888 = vtanh.f32 %v2540_v38  ;;  %v5176_v12 = vmul.f32 %v2789_v19, %v2339_v28  ;;  %v2727_v0 = vmul.f32 %v3879_v22, %v3879_v22  ;;  %v2357_v6 = vpop.f32.mrb[111].mxu0 }
 0x558   :  { %3890 = vtanh.f32 %v2541_v44  ;;  %v2110_v20 = vpop.f32.mrb[62].mxu1  ;;  %v2790_v21 = vsub.f32 1.0, %v2726_v25 }
 0x559   :  { %v3881_v55 = vpop.eup %3880  ;;  %v2542_v3 = vadd.f32 %v2478_v17, %v2110_v20  ;;  %v2112_v40 = vpop.f32.mrb[63].mxu1  ;;  %v2791_v24 = vsub.f32 1.0, %v2727_v0 }
 0x55a   :  { %v3883_v47 = vpop.eup %3882  ;;  %v2543_v51 = vadd.f32 %v2479_v39, %v2112_v40  ;;  %v5182_v28 = vmul.f32 %v2790_v21, %v2343_v33  ;;  %v2728_v38 = vmul.f32 %v3881_v55, %v3881_v55  ;;  %v3506_v19 = vpack.c.bf16 %v3881_v55, %v3877_v43  ;;  %v2361_v44 = vpop.f32.mrb[112].mxu0  ;;  %v2482_v43 = vld [vmem:[#allocation19 + $0x160] sm:$0xff] }
 0x55b   :  { %3892 = vtanh.f32 %v2542_v3  ;;  %v5184_v34 = vmul.f32 %v2791_v24, %v2345_v42  ;;  %v3504_v25 = vpack.c.bf16 %v3883_v47, %v3879_v22  ;;  %v2729_v52 = vmul.f32 %v3883_v47, %v3883_v47  ;;  %v2363_v57 = vpop.f32.mrb[113].mxu0  ;;  %v2483_v3 = vld [vmem:[#allocation19 + $0x168] sm:$0xff] }
 0x55c   :  { %5415 = vst [vmem:[#allocation34_spill] sm:$0xff] %v5182_v28  ;;  %3894 = vtanh.f32 %v2543_v51  ;;  %v2116_v2 = vpop.f32.mrb[64].mxu1  ;;  %v2792_v17 = vsub.f32 1.0, %v2728_v38 }
 0x55d   :  { %5416 = vst [vmem:[#allocation35_spill] sm:$0xff] %v5184_v34  ;;  %v3885_v20 = vpop.eup %3884  ;;  %v2544_v0 = vadd.f32 %v2480_v29, %v2116_v2  ;;  %v2118_v18 = vpop.f32.mrb[65].mxu1  ;;  %3505 = vmatprep.subr.bf16.mxu1 %v3504_v25  ;;  %v2793_v33 = vsub.f32 1.0, %v2729_v52  ;;  %v2485_v2 = vld [vmem:[#allocation19 + $0x178] sm:$0xff] }
 0x55e   :  { %v3887_v39 = vpop.eup %3886  ;;  %v2545_v21 = vadd.f32 %v2481_v16, %v2118_v18  ;;  %v5186_v40 = vmul.f32 %v2792_v17, %v2349_v32  ;;  %3507 = vmatpush1.bf16.msra.mxu1 %v3506_v19  ;;  %v2730_v42 = vmul.f32 %v3885_v20, %v3885_v20  ;;  %v2367_v55 = vpop.f32.mrb[114].mxu0  ;;  %v2484_v17 = vld [vmem:[#allocation19 + $0x170] sm:$0xff] }
 0x55f   :  { %3896 = vtanh.f32 %v2544_v0  ;;  %v5188_v22 = vmul.f32 %v2793_v33, %v2351_v7  ;;  %v2731_v24 = vmul.f32 %v3887_v39, %v3887_v39  ;;  %v2369_v47 = vpop.f32.mrb[115].mxu0 }
 0x560   :  { %5417 = vst [vmem:[#allocation36_spill] sm:$0xff] %v5186_v40  ;;  %3898 = vtanh.f32 %v2545_v21  ;;  %v2122_v51 = vpop.f32.mrb[66].mxu1  ;;  %v2794_v52 = vsub.f32 1.0, %v2730_v42 }
 0x561   :  { %5418 = vst [vmem:[#allocation37_spill] sm:$0xff] %v5188_v22  ;;  %v3889_v29 = vpop.eup %3888  ;;  %v2546_v32 = vadd.f32 %v2482_v43, %v2122_v51  ;;  %v2124_v16 = vpop.f32.mrb[67].mxu1  ;;  %v2795_v38 = vsub.f32 1.0, %v2731_v24 }
 0x562   :  { %v3891_v19 = vpop.eup %3890  ;;  %v2547_v25 = vadd.f32 %v2483_v3, %v2124_v16  ;;  %v5194_v7 = vmul.f32 %v2794_v52, %v2355_v56  ;;  %v2732_v0 = vmul.f32 %v3889_v29, %v3889_v29  ;;  %v3510_v33 = vpack.c.bf16 %v3889_v29, %v3885_v20  ;;  %v2373_v21 = vpop.f32.mrb[116].mxu0  ;;  %v2486_v20 = vld [vmem:[#allocation19 + $0x180] sm:$0xff] }
 0x563   :  { %3900 = vtanh.f32 %v2546_v32  ;;  %v5196_v23 = vmul.f32 %v2795_v38, %v2357_v6  ;;  %v3508_v42 = vpack.c.bf16 %v3891_v19, %v3887_v39  ;;  %v2733_v28 = vmul.f32 %v3891_v19, %v3891_v19  ;;  %v2375_v40 = vpop.f32.mrb[117].mxu0  ;;  %v2487_v32 = vld [vmem:[#allocation19 + $0x188] sm:$0xff] }
 0x564   :  { %5419 = vst [vmem:[#allocation38_spill] sm:$0xff] %v5194_v7  ;;  %3902 = vtanh.f32 %v2547_v25  ;;  %v2128_v18 = vpop.f32.mrb[68].mxu1  ;;  %v2796_v43 = vsub.f32 1.0, %v2732_v0 }
 0x565   :  { %5420 = vst [vmem:[#allocation39_spill] sm:$0xff] %v5196_v23  ;;  %v3893_v51 = vpop.eup %3892  ;;  %v2548_v24 = vadd.f32 %v2484_v17, %v2128_v18  ;;  %v2130_v34 = vpop.f32.mrb[69].mxu1  ;;  %3509 = vmatprep.subr.bf16.mxu1 %v3508_v42  ;;  %v2797_v56 = vsub.f32 1.0, %v2733_v28  ;;  %v2489_v18 = vld [vmem:[#allocation19 + $0x198] sm:$0xff] }
 0x566   :  { %v3895_v3 = vpop.eup %3894  ;;  %v2549_v52 = vadd.f32 %v2485_v2, %v2130_v34  ;;  %v5198_v16 = vmul.f32 %v2796_v43, %v2361_v44  ;;  %3511 = vmatpush1.bf16.msra.mxu1 %v3510_v33  ;;  %v2734_v6 = vmul.f32 %v3893_v51, %v3893_v51  ;;  %v2379_v29 = vpop.f32.mrb[118].mxu0  ;;  %v2488_v43 = vld [vmem:[#allocation19 + $0x190] sm:$0xff] }
 0x567   :  { %3904 = vtanh.f32 %v2548_v24  ;;  %v5200_v39 = vmul.f32 %v2797_v56, %v2363_v57  ;;  %v2735_v38 = vmul.f32 %v3895_v3, %v3895_v3  ;;  %v2381_v19 = vpop.f32.mrb[119].mxu0 }
 0x568   :  { %5421 = vst [vmem:[#allocation40_spill] sm:$0xff] %v5198_v16  ;;  %3906 = vtanh.f32 %v2549_v52  ;;  %v2134_v25 = vpop.f32.mrb[70].mxu1  ;;  %v2798_v28 = vsub.f32 1.0, %v2734_v6 }
 0x569   :  { %5422 = vst [vmem:[#allocation41_spill] sm:$0xff] %v5200_v39  ;;  %v3897_v17 = vpop.eup %3896  ;;  %v2550_v44 = vadd.f32 %v2486_v20, %v2134_v25  ;;  %v2136_v2 = vpop.f32.mrb[71].mxu1  ;;  %v2799_v0 = vsub.f32 1.0, %v2735_v38 }
 0x56a   :  { %v3899_v33 = vpop.eup %3898  ;;  %v2551_v42 = vadd.f32 %v2487_v32, %v2136_v2  ;;  %v5206_v57 = vmul.f32 %v2798_v28, %v2367_v55  ;;  %v2736_v24 = vmul.f32 %v3897_v17, %v3897_v17  ;;  %v3514_v56 = vpack.c.bf16 %v3897_v17, %v3893_v51  ;;  %v2385_v52 = vpop.f32.mrb[120].mxu0  ;;  %v2490_v51 = vld [vmem:[#allocation19 + $0x1a0] sm:$0xff] }
 0x56b   :  { %3908 = vtanh.f32 %v2550_v44  ;;  %v5208_v22 = vmul.f32 %v2799_v0, %v2369_v47  ;;  %v3512_v6 = vpack.c.bf16 %v3899_v33, %v3895_v3  ;;  %v2737_v7 = vmul.f32 %v3899_v33, %v3899_v33  ;;  %v2387_v16 = vpop.f32.mrb[121].mxu0  ;;  %v2491_v44 = vld [vmem:[#allocation19 + $0x1a8] sm:$0xff] }
 0x56c   :  { %5423 = vst [vmem:[#allocation42_spill] sm:$0xff] %v5206_v57  ;;  %3910 = vtanh.f32 %v2551_v42  ;;  %v2140_v34 = vpop.f32.mrb[72].mxu1  ;;  %v2800_v20 = vsub.f32 1.0, %v2736_v24 }
 0x56d   :  { %5424 = vst [vmem:[#allocation43_spill] sm:$0xff] %v5208_v22  ;;  %v3901_v25 = vpop.eup %3900  ;;  %v2552_v38 = vadd.f32 %v2488_v43, %v2140_v34  ;;  %v2142_v23 = vpop.f32.mrb[73].mxu1  ;;  %3513 = vmatprep.subr.bf16.mxu1 %v3512_v6  ;;  %v2801_v55 = vsub.f32 1.0, %v2737_v7  ;;  %v2493_v34 = vld [vmem:[#allocation19 + $0x1b8] sm:$0xff] }
 0x56e   :  { %v3903_v32 = vpop.eup %3902  ;;  %v2553_v28 = vadd.f32 %v2489_v18, %v2142_v23  ;;  %v5210_v2 = vmul.f32 %v2800_v20, %v2373_v21  ;;  %3515 = vmatpush1.bf16.msra.mxu1 %v3514_v56  ;;  %v2738_v47 = vmul.f32 %v3901_v25, %v3901_v25  ;;  %v2391_v17 = vpop.f32.mrb[122].mxu0  ;;  %v2492_v20 = vld [vmem:[#allocation19 + $0x1b0] sm:$0xff] }
 0x56f   :  { %3912 = vtanh.f32 %v2552_v38  ;;  %v5212_v3 = vmul.f32 %v2801_v55, %v2375_v40  ;;  %v2739_v0 = vmul.f32 %v3903_v32, %v3903_v32  ;;  %v2393_v33 = vpop.f32.mrb[123].mxu0 }
 0x570   :  { %5425 = vst [vmem:[#allocation44_spill] sm:$0xff] %v5210_v2  ;;  %3914 = vtanh.f32 %v2553_v28  ;;  %v2146_v42 = vpop.f32.mrb[74].mxu1  ;;  %v2802_v7 = vsub.f32 1.0, %v2738_v47 }
 0x571   :  { %5426 = vst [vmem:[#allocation45_spill] sm:$0xff] %v5212_v3  ;;  %v3905_v43 = vpop.eup %3904  ;;  %v2554_v21 = vadd.f32 %v2490_v51, %v2146_v42  ;;  %v2148_v18 = vpop.f32.mrb[75].mxu1  ;;  %v2803_v24 = vsub.f32 1.0, %v2739_v0 }
 0x572   :  { %v3907_v56 = vpop.eup %3906  ;;  %v2555_v6 = vadd.f32 %v2491_v44, %v2148_v18  ;;  %v5218_v40 = vmul.f32 %v2802_v7, %v2379_v29  ;;  %v2740_v38 = vmul.f32 %v3905_v43, %v3905_v43  ;;  %v3518_v55 = vpack.c.bf16 %v3905_v43, %v3901_v25  ;;  %v2397_v28 = vpop.f32.mrb[124].mxu0  ;;  %v2494_v25 = vld [vmem:[#allocation19 + $0x1c0] sm:$0xff] }
 0x573   :  { %3916 = vtanh.f32 %v2554_v21  ;;  %v5220_v39 = vmul.f32 %v2803_v24, %v2381_v19  ;;  %v3516_v47 = vpack.c.bf16 %v3907_v56, %v3903_v32  ;;  %v2741_v57 = vmul.f32 %v3907_v56, %v3907_v56  ;;  %v2399_v2 = vpop.f32.mrb[125].mxu0  ;;  %v2495_v21 = vld [vmem:[#allocation19 + $0x1c8] sm:$0xff] }
 0x574   :  { %5427 = vst [vmem:[#allocation46_spill] sm:$0xff] %v5218_v40  ;;  %3918 = vtanh.f32 %v2555_v6  ;;  %v2152_v23 = vpop.f32.mrb[76].mxu1  ;;  %v2804_v51 = vsub.f32 1.0, %v2740_v38 }
 0x575   :  { %5428 = vst [vmem:[#allocation47_spill] sm:$0xff] %v5220_v39  ;;  %v3909_v42 = vpop.eup %3908  ;;  %v2556_v0 = vadd.f32 %v2492_v20, %v2152_v23  ;;  %v2154_v22 = vpop.f32.mrb[77].mxu1  ;;  %3517 = vmatprep.subr.bf16.mxu1 %v3516_v47  ;;  %v2805_v29 = vsub.f32 1.0, %v2741_v57  ;;  %v2497_v23 = vld [vmem:[#allocation19 + $0x1d8] sm:$0xff] }
 0x576   :  { %v3911_v44 = vpop.eup %3910  ;;  %v2557_v7 = vadd.f32 %v2493_v34, %v2154_v22  ;;  %v5222_v18 = vmul.f32 %v2804_v51, %v2385_v52  ;;  %3519 = vmatpush1.bf16.msra.mxu1 %v3518_v55  ;;  %v2742_v19 = vmul.f32 %v3909_v42, %v3909_v42  ;;  %v2403_v43 = vpop.f32.mrb[126].mxu0  ;;  %v2496_v51 = vld [vmem:[#allocation19 + $0x1d0] sm:$0xff] }
 0x577   :  { %3920 = vtanh.f32 %v2556_v0  ;;  %v5224_v32 = vmul.f32 %v2805_v29, %v2387_v16  ;;  %v2743_v24 = vmul.f32 %v3911_v44, %v3911_v44  ;;  %v2405_v56 = vpop.f32.mrb[127].mxu0 }
 0x578   :  { %5429 = vst [vmem:[#allocation48_spill] sm:$0xff] %v5222_v18  ;;  %3922 = vtanh.f32 %v2557_v7  ;;  %v2158_v6 = vpop.f32.mrb[78].mxu1  ;;  %v2806_v57 = vsub.f32 1.0, %v2742_v19 }
 0x579   :  { %5430 = vst [vmem:[#allocation49_spill] sm:$0xff] %v5224_v32  ;;  %v3913_v20 = vpop.eup %3912  ;;  %v2558_v52 = vadd.f32 %v2494_v25, %v2158_v6  ;;  %v2160_v34 = vpop.f32.mrb[79].mxu1  ;;  %v2807_v38 = vsub.f32 1.0, %v2743_v24 }
 0x57a   :  { %v3915_v55 = vpop.eup %3914  ;;  %v2559_v47 = vadd.f32 %v2495_v21, %v2160_v34  ;;  %v5230_v16 = vmul.f32 %v2806_v57, %v2391_v17  ;;  %v2744_v0 = vmul.f32 %v3913_v20, %v3913_v20  ;;  %v3522_v29 = vpack.c.bf16 %v3913_v20, %v3909_v42  ;;  %v2409_v7 = vpop.f32.mrb[128].mxu0  ;;  %v2498_v42 = vld [vmem:[#allocation19 + $0x1e0] sm:$0xff] }
 0x57b   :  { %3924 = vtanh.f32 %v2558_v52  ;;  %v5232_v3 = vmul.f32 %v2807_v38, %v2393_v33  ;;  %v3520_v19 = vpack.c.bf16 %v3915_v55, %v3911_v44  ;;  %v2745_v40 = vmul.f32 %v3915_v55, %v3915_v55  ;;  %v2411_v18 = vpop.f32.mrb[129].mxu0  ;;  %v2499_v52 = vld [vmem:[#allocation19 + $0x1e8] sm:$0xff] }
 0x57c   :  { %5431 = vst [vmem:[#allocation50_spill] sm:$0xff] %v5230_v16  ;;  %3926 = vtanh.f32 %v2559_v47  ;;  %v2164_v22 = vpop.f32.mrb[80].mxu1  ;;  %v2808_v25 = vsub.f32 1.0, %v2744_v0 }
 0x57d   :  { %5432 = vst [vmem:[#allocation51_spill] sm:$0xff] %v5232_v3  ;;  %v3917_v6 = vpop.eup %3916  ;;  %v2560_v24 = vadd.f32 %v2496_v51, %v2164_v22  ;;  %v2166_v39 = vpop.f32.mrb[81].mxu1  ;;  %3521 = vmatprep.subr.bf16.mxu1 %v3520_v19  ;;  %v2809_v17 = vsub.f32 1.0, %v2745_v40  ;;  %v2501_v22 = vld [vmem:[#allocation19 + $0x1f8] sm:$0xff] }
 0x57e   :  { %v3919_v21 = vpop.eup %3918  ;;  %v2561_v57 = vadd.f32 %v2497_v23, %v2166_v39  ;;  %v5234_v34 = vmul.f32 %v2808_v25, %v2397_v28  ;;  %3523 = vmatpush1.bf16.msra.mxu1 %v3522_v29  ;;  %v2746_v33 = vmul.f32 %v3917_v6, %v3917_v6  ;;  %v2415_v20 = vpop.f32.mrb[130].mxu0  ;;  %v2500_v25 = vld [vmem:[#allocation19 + $0x1f0] sm:$0xff] }
 0x57f   :  { %3928 = vtanh.f32 %v2560_v24  ;;  %v5236_v44 = vmul.f32 %v2809_v17, %v2399_v2  ;;  %v2747_v38 = vmul.f32 %v3919_v21, %v3919_v21  ;;  %v2417_v55 = vpop.f32.mrb[131].mxu0 }
 0x580   :  { %5433 = vst [vmem:[#allocation52_spill] sm:$0xff] %v5234_v34  ;;  %3930 = vtanh.f32 %v2561_v57  ;;  %v2170_v47 = vpop.f32.mrb[82].mxu1  ;;  %v2810_v40 = vsub.f32 1.0, %v2746_v33 }
 0x581   :  { %v3921_v51 = vpop.eup %3920  ;;  %v2562_v28 = vadd.f32 %v2498_v42, %v2170_v47  ;;  %v2172_v23 = vpop.f32.mrb[83].mxu1  ;;  %v2811_v0 = vsub.f32 1.0, %v2747_v38 }
 0x582   :  { %v3923_v29 = vpop.eup %3922  ;;  %v2563_v19 = vadd.f32 %v2499_v52, %v2172_v23  ;;  %v5242_v2 = vmul.f32 %v2810_v40, %v2403_v43  ;;  %v2748_v24 = vmul.f32 %v3921_v51, %v3921_v51  ;;  %v3526_v17 = vpack.c.bf16 %v3921_v51, %v3917_v6  ;;  %v2421_v57 = vpop.f32.mrb[132].mxu0 }
 0x583   :  { %3932 = vtanh.f32 %v2562_v28  ;;  %v5244_v32 = vmul.f32 %v2811_v0, %v2405_v56  ;;  %v3524_v33 = vpack.c.bf16 %v3923_v29, %v3919_v21  ;;  %v2749_v16 = vmul.f32 %v3923_v29, %v3923_v29  ;;  %v2423_v34 = vpop.f32.mrb[133].mxu0 }
 0x584   :  { %5434 = vst [vmem:[#allocation53_spill] sm:$0xff] %v5242_v2  ;;  %3934 = vtanh.f32 %v2563_v19  ;;  %v2176_v39 = vpop.f32.mrb[84].mxu1  ;;  %v2812_v42 = vsub.f32 1.0, %v2748_v24 }
 0x585   :  { %5435 = vst [vmem:[#allocation54_spill] sm:$0xff] %v5244_v32  ;;  %v3925_v47 = vpop.eup %3924  ;;  %v2564_v38 = vadd.f32 %v2500_v25, %v2176_v39  ;;  %v2178_v3 = vpop.f32.mrb[85].mxu1  ;;  %3525 = vmatprep.subr.bf16.mxu1 %v3524_v33  ;;  %v2813_v43 = vsub.f32 1.0, %v2749_v16 }
 0x586   :  { %v3927_v52 = vpop.eup %3926  ;;  %v2565_v40 = vadd.f32 %v2501_v22, %v2178_v3  ;;  %v5246_v23 = vmul.f32 %v2812_v42, %v2409_v7  ;;  %3527 = vmatpush1.bf16.msra.mxu1 %v3526_v17  ;;  %v2750_v6 = vmul.f32 %v3925_v47, %v3925_v47  ;;  %v2427_v56 = vpop.f32.mrb[134].mxu0 }
 0x587   :  { %3936 = vtanh.f32 %v2564_v38  ;;  %v5248_v51 = vmul.f32 %v2813_v43, %v2411_v18  ;;  %v2751_v21 = vmul.f32 %v3927_v52, %v3927_v52  ;;  %v2429_v28 = vpop.f32.mrb[135].mxu0 }
 0x588   :  { %5436 = vst [vmem:[#allocation55_spill] sm:$0xff] %v5246_v23  ;;  %3938 = vtanh.f32 %v2565_v40  ;;  %v2814_v39 = vsub.f32 1.0, %v2750_v6 }
 0x589   :  { %v3929_v29 = vpop.eup %3928  ;;  %v2815_v3 = vsub.f32 1.0, %v2751_v21 }
 0x58a   :  { %v3931_v7 = vpop.eup %3930  ;;  %v5254_v22 = vmul.f32 %v2814_v39, %v2415_v20  ;;  %v2752_v19 = vmul.f32 %v3929_v29, %v3929_v29  ;;  %v3530_v25 = vpack.c.bf16 %v3929_v29, %v3925_v47  ;;  %v2433_v24 = vpop.f32.mrb[136].mxu0 }
 0x58b   :  { %v5256_v18 = vmul.f32 %v2815_v3, %v2417_v55  ;;  %v3528_v17 = vpack.c.bf16 %v3931_v7, %v3927_v52  ;;  %v2753_v33 = vmul.f32 %v3931_v7, %v3931_v7  ;;  %v2435_v42 = vpop.f32.mrb[137].mxu0 }
 0x58c   :  { %v2816_v38 = vsub.f32 1.0, %v2752_v19 }
 0x58d   :  { %v3933_v43 = vpop.eup %3932  ;;  %3529 = vmatprep.subr.bf16.mxu1 %v3528_v17  ;;  %v2817_v40 = vsub.f32 1.0, %v2753_v33 }
 0x58e   :  { %v3935_v6 = vpop.eup %3934  ;;  %v2880_v0 = vmul.f32 %v2816_v38, %v2421_v57  ;;  %3531 = vmatpush1.bf16.msra.mxu1 %v3530_v25  ;;  %v2754_v16 = vmul.f32 %v3933_v43, %v3933_v43 }
 0x58f   :  { %v2881_v21 = vmul.f32 %v2817_v40, %v2423_v34  ;;  %v2755_v2 = vmul.f32 %v3935_v6, %v3935_v6  ;;  %v2950_v34 = vld [vmem:[#allocation20] sm:$0xff] }
 0x590   :  { %v3594_v20 = vpack.c.bf16 %v2880_v0, %v5254_v22  ;;  %v2818_v39 = vsub.f32 1.0, %v2754_v16  ;;  %v5437_v0 = vpack.c.bf16 %v5092_v14, %v5088_v59  ;;  %v5439_v22 = vpack.c.bf16 %v5104_v48, %v5100_v35 }
 0x591   :  { %v3937_v47 = vpop.eup %3936  ;;  %v3592_v55 = vpack.c.bf16 %v2881_v21, %v5256_v18  ;;  %v2819_v29 = vsub.f32 1.0, %v2755_v2  ;;  %v5441_v59 = vpack.c.bf16 %v5116_v31, %v5112_v8  ;;  %v5442_v14 = vpack.c.bf16 %v5114_v26, %v5110_v63  ;;  %v5475_v18 = vld [vmem:[#allocation46_spill] sm:$0xff] }
 0x592   :  { %v3939_v52 = vpop.eup %3938  ;;  %v2882_v3 = vmul.f32 %v2818_v39, %v2427_v56  ;;  %v2756_v7 = vmul.f32 %v3937_v47, %v3937_v47  ;;  %v3534_v19 = vpack.c.bf16 %v3937_v47, %v3933_v43  ;;  %v5438_v56 = vpack.c.bf16 %v5090_v11, %v5086_v54  ;;  %v5477_v43 = vld [vmem:[#allocation51_spill] sm:$0xff]  ;;  %v5480_v21 = vld [vmem:[#allocation50_spill] sm:$0xff] }
 0x593   :  { %v2883_v23 = vmul.f32 %v2819_v29, %v2429_v28  ;;  %v3532_v17 = vpack.c.bf16 %v3939_v52, %v3935_v6  ;;  %v2757_v33 = vmul.f32 %v3939_v52, %v3939_v52  ;;  %v3940_v28 = vld [vmem:[#allocation20 + $0x8] sm:$0xff]  ;;  %v5443_v54 = vpack.c.bf16 %v5128_v15, %v5124_v50  ;;  %v5456_v15 = vld [vmem:[#allocation36_spill] sm:$0xff]  ;;  %v5482_v47 = vld [vmem:[#allocation54_spill] sm:$0xff] }
 0x594   :  { %v2820_v32 = vsub.f32 1.0, %v2756_v7  ;;  %v5444_v11 = vpack.c.bf16 %v5126_v9, %v5122_v36  ;;  %v5446_v35 = vpack.c.bf16 %v5138_v4, %v5134_v13  ;;  %v5448_v48 = vpack.c.bf16 %v5150_v10, %v5146_v58  ;;  %v5453_v36 = vld [vmem:[#allocation37_spill] sm:$0xff]  ;;  %v5454_v50 = vld [vmem:[#allocation35_spill] sm:$0xff]  ;;  %v5457_v13 = vld [vmem:[#allocation34_spill] sm:$0xff] }
 0x595   :  { %3533 = vmatprep.subr.bf16.mxu1 %v3532_v17  ;;  %v2821_v57 = vsub.f32 1.0, %v2757_v33  ;;  %v5449_v63 = vpack.c.bf16 %v5164_v1, %v5160_v62  ;;  %v5450_v8 = vpack.c.bf16 %v5162_v37, %v5158_v46  ;;  %v5451_v26 = vpack.c.bf16 %v5176_v12, %v5172_v49  ;;  %v5459_v4 = vld [vmem:[#allocation41_spill] sm:$0xff]  ;;  %v5463_v10 = vld [vmem:[#allocation38_spill] sm:$0xff]  ;;  %v5466_v46 = vld [vmem:[#allocation43_spill] sm:$0xff] }
 0x596   :  { %v2884_v25 = vmul.f32 %v2820_v32, %v2433_v24  ;;  %3535 = vmatpush1.bf16.msra.mxu1 %v3534_v19  ;;  %v5440_v32 = vpack.c.bf16 %v5102_v45, %v5098_v30  ;;  %v5445_v30 = vpack.c.bf16 %v5140_v5, %v5136_v41  ;;  %v5447_v45 = vpack.c.bf16 %v5152_v61, %v5148_v27  ;;  %v5460_v5 = vld [vmem:[#allocation39_spill] sm:$0xff]  ;;  %v5462_v27 = vld [vmem:[#allocation40_spill] sm:$0xff]  ;;  %v5465_v61 = vld [vmem:[#allocation45_spill] sm:$0xff] }
 0x597   :  { %v2885_v38 = vmul.f32 %v2821_v57, %v2435_v42  ;;  %3537 = vmatprep.subr.bf16.mxu1 %v5437_v0  ;;  %v5452_v31 = vpack.c.bf16 %v5174_v60, %v5170_v53  ;;  %v5455_v9 = vpack.c.bf16 %v5453_v36, %v5454_v50  ;;  %v5458_v41 = vpack.c.bf16 %v5456_v15, %v5457_v13  ;;  %v5468_v37 = vld [vmem:[#allocation44_spill] sm:$0xff]  ;;  %v5469_v1 = vld [vmem:[#allocation42_spill] sm:$0xff]  ;;  %v5471_v60 = vld [vmem:[#allocation49_spill] sm:$0xff] }
 0x598   :  { %v3598_v16 = vpack.c.bf16 %v2884_v25, %v2882_v3  ;;  %v5461_v58 = vpack.c.bf16 %v5459_v4, %v5460_v5  ;;  %v5464_v49 = vpack.c.bf16 %v5462_v27, %v5463_v10  ;;  %v5467_v62 = vpack.c.bf16 %v5465_v61, %v5466_v46  ;;  %v5472_v12 = vld [vmem:[#allocation47_spill] sm:$0xff]  ;;  %v5474_v24 = vld [vmem:[#allocation48_spill] sm:$0xff]  ;;  %v5485_v3 = vld [vmem:[#allocation53_spill] sm:$0xff] }
 0x599   :  { %v3596_v2 = vpack.c.bf16 %v2885_v38, %v2883_v23  ;;  %3145 = vmatmul.mubr.f32.vlgmr.msra.gmra.mrb[86].mxu1 %v2950_v34  ;;  %v5470_v53 = vpack.c.bf16 %v5468_v37, %v5469_v1  ;;  %v5473_v23 = vpack.c.bf16 %v5471_v60, %v5472_v12  ;;  %v5476_v42 = vpack.c.bf16 %v5474_v24, %v5475_v18  ;;  %v5479_v6 = vld [vmem:[#allocation52_spill] sm:$0xff]  ;;  %v5484_v52 = vld [vmem:[#allocation55_spill] sm:$0xff] }
 0x59a   :  { %3539 = vmatpush1.bf16.msra.mxu1 %v5438_v56  ;;  %3215 = vmatprep.mubr.f32.mxu1 %v3940_v28  ;;  %v5478_v40 = vpack.c.bf16 %v5236_v44, %v5477_v43  ;;  %v5481_v39 = vpack.c.bf16 %v5479_v6, %v5480_v21  ;;  %v5483_v29 = vpack.c.bf16 %v5248_v51, %v5482_v47  ;;  %v3222_v19 = vld [vmem:[#allocation22] sm:$0xff]  ;;  %v3223_v44 = vld [vmem:[#allocation22 + $0x8] sm:$0xff] }
 0x59b   :  { %3541 = vmatprep.subr.bf16.mxu1 %v5439_v22  ;;  %v5486_v7 = vpack.c.bf16 %v5484_v52, %v5485_v3 }
 0x59e   :  { %3543 = vmatpush1.bf16.msra.mxu1 %v5440_v32 }
 0x59f   :  { %3545 = vmatprep.subr.bf16.mxu1 %v5441_v59 }
 0x5a2   :  { %3547 = vmatpush1.bf16.msra.mxu1 %v5442_v14 }
 0x5a3   :  { %3549 = vmatprep.subr.bf16.mxu1 %v5443_v54 }
 0x5a6   :  { %3551 = vmatpush1.bf16.msra.mxu1 %v5444_v11 }
 0x5a7   :  { %3553 = vmatprep.subr.bf16.mxu1 %v5445_v30 }
 0x5aa   :  { %3555 = vmatpush1.bf16.msra.mxu1 %v5446_v35 }
 0x5ab   :  { %3557 = vmatprep.subr.bf16.mxu1 %v5447_v45 }
 0x5ae   :  { %3559 = vmatpush1.bf16.msra.mxu1 %v5448_v48 }
 0x5af   :  { %3561 = vmatprep.subr.bf16.mxu1 %v5449_v63 }
 0x5b2   :  { %3563 = vmatpush1.bf16.msra.mxu1 %v5450_v8 }
 0x5b3   :  { %3565 = vmatprep.subr.bf16.mxu1 %v5451_v26 }
 0x5b6   :  { %3567 = vmatpush1.bf16.msra.mxu1 %v5452_v31 }
 0x5b7   :  { %3569 = vmatprep.subr.bf16.mxu1 %v5455_v9 }
 0x5ba   :  { %3571 = vmatpush1.bf16.msra.mxu1 %v5458_v41 }
 0x5bb   :  { %3573 = vmatprep.subr.bf16.mxu1 %v5461_v58 }
 0x5be   :  { %3575 = vmatpush1.bf16.msra.mxu1 %v5464_v49 }
 0x5bf   :  { %3577 = vmatprep.subr.bf16.mxu1 %v5467_v62 }
 0x5c2   :  { %3579 = vmatpush1.bf16.msra.mxu1 %v5470_v53 }
 0x5c3   :  { %3581 = vmatprep.subr.bf16.mxu1 %v5473_v23 }
 0x5c6   :  { %3583 = vmatpush1.bf16.msra.mxu1 %v5476_v42 }
 0x5c7   :  { %3585 = vmatprep.subr.bf16.mxu1 %v5478_v40 }
 0x5ca   :  { %3587 = vmatpush1.bf16.msra.mxu1 %v5481_v39 }
 0x5cb   :  { %3589 = vmatprep.subr.bf16.mxu1 %v5483_v29 }
 0x5ce   :  { %3591 = vmatpush1.bf16.msra.mxu1 %v5486_v7 }
 0x5cf   :  { %3593 = vmatprep.subr.bf16.mxu1 %v3592_v55 }
 0x5d2   :  { %3595 = vmatpush1.bf16.msra.mxu1 %v3594_v20 }
 0x5d3   :  { %3597 = vmatprep.subr.bf16.mxu1 %v3596_v2 }
 0x5d6   :  { %3599 = vmatpush1.bf16.msra.mxu1 %v3598_v16 }
 0x5d9   :  { %3216 = vmatmul.mubr.f32.vlgmr.msra.gmra.mrb[88].mxu1 %v2950_v34 }
 0x66c   :  { %v3146_v17 = vpop.f32.mrb[86].mxu1 }
 0x66d   :  { %v3224_v33 = vadd.f32 %v3222_v19, %v3146_v17  ;;  %v3148_v57 = vpop.f32.mrb[87].mxu1 }
 0x66e   :  { %v3225_v25 = vadd.f32 %v3223_v44, %v3148_v57 }
 0x66f   :  { %3226 = vst [vmem:[#allocation23] sm:$0xff] %v3224_v33 }
 0x670   :  { %3227 = vst [vmem:[#allocation23 + $0x8] sm:$0xff] %v3225_v25 }
 0x671   :  { %4194 = shalt.err (!%p4191_p8)
}
 0x672   :  { %s4195_s18 = scalar_lea.hbm %s5383_s15, 256 }
 0x673   :  { %p4196_p9 = scmp.ne.s32.totalorder %s5383_s15, %s4195_s18  ;;  %p4199_p10 = scmp.lt.u32.totalorder %s4195_s18, %s5383_s15 }
 0x675   :  { %p4201_p11 = pnand %p4199_p10, %p4196_p9 }
 0x677   :  { %4204 = shalt.err (!%p4201_p11)
}
 0x678   :  { %3239 = dma.vmem_to_hbm [thread:$0]  %s3237_s1, 256, %s5383_s15, [#allocation7]  }
 0x679   :  { %s4260_s3 = smov [#allocation24]  }
 0x67a   :  { %s3246_s7 = sshll.u32 %s4260_s3, 4  ;;  %s3247_s7 = int_to_ptr.vmem [resolvable:$true] %s3246_s7 }
 0x67b   :  { %s4205_s8 = scalar_lea.vmem %s3247_s7, 256  ;;  %p4210_p13 = scmp.lt.s32.totalorder %s3247_s7, %s3247_s7 }
 0x67c   :  { %p4206_p12 = scmp.ne.s32.totalorder %s3247_s7, %s4205_s8  ;;  %p4211_p0 = scmp.lt.s32.totalorder %s4205_s8, %s4205_s8 }
 0x67e   :  { %p4212_p1 = por %p4211_p0, %p4210_p13 }
 0x680   :  { %p4213_p2 = pnand %p4212_p1, %p4206_p12 }
 0x6ac   :  { %v3217_v51 = vpop.f32.mrb[88].mxu1 }
 0x6ad   :  { %3228 = vst [vmem:[#allocation24] sm:$0xff] %v3217_v51  ;;  %v3219_v20 = vpop.f32.mrb[89].mxu1 }
 0x6ae   :  { %3229 = vst [vmem:[#allocation24 + $0x8] sm:$0xff] %v3219_v20 }
 0x6af   :  { %4216 = shalt.err (!%p4213_p2)
}
 0x6b0   :  { %s4217_s30 = scalar_lea.hbm %s5384_s16, 256 }
 0x6b1   :  { %p4218_p3 = scmp.ne.s32.totalorder %s5384_s16, %s4217_s30  ;;  %p4221_p4 = scmp.lt.u32.totalorder %s4217_s30, %s5384_s16 }
 0x6b3   :  { %p4223_p5 = pnand %p4221_p4, %p4218_p3 }
 0x6b5   :  { %4226 = shalt.err (!%p4223_p5)
}
 0x6b6   :  { %3249 = dma.vmem_to_hbm [thread:$0]  %s3247_s7, 256, %s5384_s16, [#allocation25]  }
 0x6b7   :  { %4239 = dma.done.wait [#allocation7], 256  }
 0x6b8   :  { %4240 = vsyncadd [#allocation7], 4294967040 }
 0x6b9   :  { %4241 = dma.done.wait [#allocation25], 256  }
 0x6ba   :  { %4242 = vsyncadd [#allocation25], 4294967040 }
 0x6bb   :  { %3256 = vsyncpa [#allocation6], 1 }
 0x6bc   :  { %3257 = vsyncpa [#allocation9], 1 }
 0x6bd   :  { %3258 = vsyncpa [#allocation12], 1 }
 0x6be   :  { %3259 = vsyncpa [#allocation15], 1 }
 0x6bf   :  { %3260 = vsyncpa [#allocation18], 1 }
 0x6c0   :  { %3261 = vsyncpa [#allocation21], 1 }
 0x6c1   :  { %3262 = vsyncpa [#allocation7], 1 }
 0x6c2   :  { %3263 = vsyncpa [#allocation25], 1 }

</bundles_post_ra>
